<compile_context>
chip_gen: v6e
topology: v6e:2x2x1
jax: 0.10.0
libtpu: 0.0.40
codegen_flags: <defaults>
</compile_context>

<pallas_src>
import functools

import jax
import jax.numpy as jnp
from jax.experimental import pallas as pl
from jax.experimental.pallas import tpu as pltpu

F_PAD = 128  # lane-dense padded feature width (>= num_class, hidden=16, out=1)


# ----------------------------- Pallas kernel ------------------------------ #
def _cagcn_kernel(a_ref, x_ref, q0_ref, wn_ref, b_ref, ndst_ref, nsrc_ref,
                  o_ref, acc_ref, qpan_ref, *, tm, tk, n_pad):
    l = pl.program_id(0)          # layer
    i = pl.program_id(1)          # output row tile
    k = pl.program_id(2)          # contraction (neighbor) tile
    nl = pl.num_programs(0)
    nk = pl.num_programs(2)

    # One-time staging: copy the XLA-precomputed layer-0 panel Q_0 (bf16, laid
    # out to match the flattened ping-pong scratch) from HBM into VMEM scratch.
    @pl.when((l == 0) & (i == 0) & (k == 0))
    def _():
        pltpu.sync_copy(q0_ref, qpan_ref)

    # Zero the f32 accumulator at the start of every contraction.
    @pl.when(k == 0)
    def _():
        acc_ref[...] = jnp.zeros_like(acc_ref)

    # Aggregation: acc += A_bin[i, k] @ Q_l[k].  A is streamed int8 (0/1) and
    # upconverted on the VPU (kernel is HBM-bound, the convert hides under DMA).
    rd = pl.multiple_of((l % 2) * n_pad + k * tk, tk)
    acc_ref[...] += jnp.dot(a_ref[...].astype(jnp.bfloat16),
                            qpan_ref[pl.ds(rd, tk), :],
                            preferred_element_type=jnp.float32)

    last_k = k == nk - 1

    # Hidden-layer epilogue: h = relu(norm_dst*acc + b_l); directly emit the
    # NEXT layer's panel rows Q_{l+1}[i] = (norm_src*h) @ W_{l+1} into the
    # other ping-pong slot (dropout == identity at inference).
    @pl.when(last_k & (l < nl - 1))
    def _():
        h = jnp.maximum(ndst_ref[...] * acc_ref[...] + b_ref[0], 0.0)
        q_next = jnp.dot((nsrc_ref[...] * h).astype(jnp.bfloat16), wn_ref[0],
                         preferred_element_type=jnp.float32)
        wr = pl.multiple_of(((l + 1) % 2) * n_pad + i * tm, tm)
        qpan_ref[pl.ds(wr, tm), :] = q_next.astype(qpan_ref.dtype)

    # Final-layer epilogue: temperature = column 0 (true output width is 1);
    # calibrated = logits * softplus(temperature).  Earlier layers write this
    # output block back with junk; the last layer (outermost grid axis) visits
    # last and overwrites it with the correct values.
    @pl.when(last_k & (l == nl - 1))
    def _():
        t = (ndst_ref[...] * acc_ref[...] + b_ref[0])[:, 0:1]       # (tm, 1)
        sp = jnp.maximum(t, 0.0) + jnp.log(1.0 + jnp.exp(-jnp.abs(t)))
        o_ref[...] = (x_ref[...] * sp).astype(o_ref.dtype)


# ------------------------------ Wrapper ------------------------------------ #
def _round_up(x, m):
    return ((x + m - 1) // m) * m


def cagcn_pallas_forward(adj, logits, params, *, tm=256, tk=2048):
    """calibrated = logits * softplus(GCN(logits, adj)) as one fused kernel.

    adj:    dense binary (0/1) adjacency, A[u, v] = edge u -> v.
    tm/tk:  row / contraction tile of the streamed adjacency. tk >> tm (e.g.
            1024 on v5e, 2048 on v6e, 2048-4096 on v7x) amortizes per-grid-step
            overhead against the A DMA; double-buffered int8 A at 256x2048 is
            only 1 MiB.
    """
    n, c = logits.shape
    num_layers = len(params)
    assert num_layers >= 2
    assert c <= F_PAD
    assert all(w.shape[0] <= F_PAD and w.shape[1] <= F_PAD for w, _ in params)
    assert tm % 8 == 0 and tk % tm == 0

    n_pad_m = _round_up(n, tm)
    tk = min(tk, n_pad_m)               # clamp for small graphs
    n_pad = _round_up(n_pad_m, tk)      # divisible by both tm and tk

    logits = logits.astype(jnp.float32)
    adj_f = adj.astype(jnp.float32)
    norm_src = jnp.maximum(adj_f.sum(axis=1), 1.0) ** -0.5   # out-degree side
    norm_dst = jnp.maximum(adj_f.sum(axis=0), 1.0) ** -0.5   # in-degree side

    # Binary transposed adjacency streamed as int8 (halves the dominant HBM
    # stream vs bf16; 0/1 is exact).  Degree scalings stay f32 outside the MXU.
    a_bin = jnp.zeros((n_pad, n_pad), jnp.int8).at[:n, :n].set(
        adj_f.T.astype(jnp.int8))

    x_pad = jnp.zeros((n_pad, F_PAD), jnp.float32).at[:n, :c].set(logits)
    nsrc_pad = jnp.zeros((n_pad, 1), jnp.float32).at[:n, 0].set(norm_src)
    ndst_pad = jnp.zeros((n_pad, 1), jnp.float32).at[:n, 0].set(norm_dst)

    def pad_w(w):
        return (jnp.zeros((F_PAD, F_PAD), jnp.float32)
                .at[:w.shape[0], :w.shape[1]].set(w))

    w_pads = [pad_w(w) for (w, _) in params]

    # Layer-0 panel Q_0 = diag(norm_src) X W_0, precomputed in XLA and laid out
    # to exactly match the (2*n_pad, F_PAD) ping-pong scratch (slot 1 zeroed,
    # it is fully rewritten by layer-0 epilogues before layer 1 reads it).
    q0 = ((nsrc_pad * x_pad) @ w_pads[0]).astype(jnp.bfloat16)
    q0_pad = jnp.zeros((2 * n_pad, F_PAD), jnp.bfloat16).at[:n_pad].set(q0)

    # wnext[l] = W_{l+1} (used by layer l's epilogue to build the next panel);
    # the last entry is a never-read dummy.
    wnext = jnp.stack(w_pads[1:] + [jnp.zeros((F_PAD, F_PAD), jnp.float32)]
                      ).astype(jnp.bfloat16)                    # (L, 128, 128)
    b_stack = jnp.stack([
        jnp.zeros((1, F_PAD), jnp.float32).at[0, :b.shape[0]].set(b)
        for (_, b) in params])                                  # (L, 1, 128)

    grid = (num_layers, n_pad // tm, n_pad // tk)
    kernel = functools.partial(_cagcn_kernel, tm=tm, tk=tk, n_pad=n_pad)

    # Size scoped VMEM to the actual working set (with headroom).
    vmem_need = (3 * tm * tk                  # int8 A pipeline buffers
                 + 4 * tm * F_PAD * 4         # x + out f32 blocks (2-buffered)
                 + 4 * F_PAD * F_PAD * 2      # W_{l+1} blocks
                 + tm * F_PAD * 4             # f32 accumulator
                 + 2 * n_pad * F_PAD * 2      # panel ping-pong scratch
                 + (4 << 20))                 # bias/norm blocks + headroom
    vmem_limit = int(min(100 * 2**20, max(32 * 2**20, vmem_need)))

    out_pad = pl.pallas_call(
        kernel,
        out_shape=jax.ShapeDtypeStruct((n_pad, F_PAD), jnp.float32),
        grid_spec=pltpu.PrefetchScalarGridSpec(
            num_scalar_prefetch=0,
            grid=grid,
            in_specs=[
                # Binary adjacency: (tm, tk) int8 blocks, streamed.
                pl.BlockSpec((tm, tk), lambda l, i, k: (i, k)),
                # Padded logits: row-tiled (only consumed by the last layer).
                pl.BlockSpec((tm, F_PAD), lambda l, i, k: (i, 0)),
                # Precomputed layer-0 panel: raw HBM ref, staged via sync_copy.
                pl.BlockSpec(memory_space=pl.ANY),
                # Next-layer weight / current-layer bias selected by layer axis.
                pl.BlockSpec((1, F_PAD, F_PAD), lambda l, i, k: (l, 0, 0)),
                pl.BlockSpec((1, 1, F_PAD), lambda l, i, k: (l, 0, 0)),
                # Row-tiled degree scalings (f32).
                pl.BlockSpec((tm, 1), lambda l, i, k: (i, 0)),
                pl.BlockSpec((tm, 1), lambda l, i, k: (i, 0)),
            ],
            # Lane-dense, row-tiled output; overlapped per-tile writeback.
            out_specs=pl.BlockSpec((tm, F_PAD), lambda l, i, k: (i, 0)),
            scratch_shapes=[
                pltpu.VMEM((tm, F_PAD), jnp.float32),          # f32 accumulator
                pltpu.VMEM((2 * n_pad, F_PAD), jnp.bfloat16),  # Q panel ping-pong
            ]),
        compiler_params=pltpu.CompilerParams(
            # Layers are sequential and row tiles feed the next layer's panel
            # through VMEM scratch, so no megacore "parallel" axis is legal.
            dimension_semantics=("arbitrary", "arbitrary", "arbitrary"),
            vmem_limit_bytes=vmem_limit),
    )(a_bin, x_pad, q0_pad, wnext, b_stack, ndst_pad, nsrc_pad)

    return out_pad[:n, :c]


# ------------------------------ Model glue --------------------------------- #
def init_gcn_params(key, feature_list):
    """DGL GraphConv-style init: xavier-uniform weight; small random bias
    (DGL default is zero bias — randomized here so the kernel's bias path is
    actually exercised by the correctness check)."""
    params = []
    for i in range(len(feature_list) - 1):
        fan_in, fan_out = feature_list[i], feature_list[i + 1]
        key, kw, kb = jax.random.split(key, 3)
        limit = jnp.sqrt(6.0 / (fan_in + fan_out))
        w = jax.random.uniform(kw, (fan_in, fan_out), jnp.float32, -limit, limit)
        b = 0.05 * jax.random.normal(kb, (fan_out,), jnp.float32)
        params.append((w, b))
    return params


def cagcn_reference(adj, logits, params):
    """Pure-JAX f32 reference of the CaGCN forward (for validation)."""
    adj = adj.astype(jnp.float32)
    norm_src = jnp.maximum(adj.sum(axis=1), 1.0) ** -0.5
    norm_dst = jnp.maximum(adj.sum(axis=0), 1.0) ** -0.5
    a_hat = (norm_dst[:, None] * adj.T) * norm_src[None, :]
    x = logits
    for idx, (w, b) in enumerate(params):
        x = a_hat @ (x @ w) + b
        if idx < len(params) - 1:
            x = jnp.maximum(x, 0.0)          # relu; dropout == identity (eval)
    t = x                                    # (N, 1) temperature
    sp = jnp.maximum(t, 0.0) + jnp.log(1.0 + jnp.exp(-jnp.abs(t)))
    return logits * sp


# --------------------------------- Main ------------------------------------ #
if __name__ == "__main__":
    key = jax.random.PRNGKey(0)

    num_nodes = 512
    num_classes = 10
    cal_hidden = 16            # CaGCN: GCN(num_class, 1, num_hidden=16, layers=2)

    key, k_logits, k_adj, k_param = jax.random.split(key, 4)

    # Backbone logits (self.model(g, features) is an external module -> input).
    logits = jax.random.normal(k_logits, (num_nodes, num_classes), jnp.float32)

    # Deterministic random symmetric binary graph with self-loops.
    rand = jax.random.uniform(k_adj, (num_nodes, num_nodes))
    adj = (rand < 0.05).astype(jnp.float32)
    adj = jnp.maximum(adj, adj.T)
    adj = jnp.maximum(adj, jnp.eye(num_nodes, dtype=jnp.float32))

    # Calibration GCN: num_classes -> 16 -> 1.
    feature_list = [num_classes, cal_hidden, 1]
    params = init_gcn_params(k_param, feature_list)

    calibrated = cagcn_pallas_forward(adj, logits, params, tm=256, tk=2048)
    calibrated = jax.block_until_ready(calibrated)
    assert calibrated.shape == (num_nodes, num_classes)

    # Validate against the f32 reference (A is exact int8; panels are bf16).
    ref = cagcn_reference(adj, logits, params)
    max_err = float(jnp.max(jnp.abs(calibrated - ref)))
    assert max_err < 0.08, f"max |err| = {max_err}"

    print("KERNEL_OK")
</pallas_src>

<mosaic_0001>
module attributes {stable_mosaic.version = 11 : i64} {
  func.func @_cagcn_kernel(%arg0: i32, %arg1: i32, %arg2: i32, %arg3: memref<256x512xi8, #tpu.memory_space<vmem>>, %arg4: memref<256x128xf32, #tpu.memory_space<vmem>>, %arg5: memref<1024x128xbf16, #tpu.memory_space<any>>, %arg6: memref<1x128x128xbf16, #tpu.memory_space<vmem>>, %arg7: memref<1x1x128xf32, #tpu.memory_space<vmem>>, %arg8: memref<256x1xf32, #tpu.memory_space<vmem>>, %arg9: memref<256x1xf32, #tpu.memory_space<vmem>>, %arg10: memref<256x128xf32, #tpu.memory_space<vmem>>, %arg11: memref<256x128xf32, #tpu.memory_space<vmem>>, %arg12: memref<1024x128xbf16, #tpu.memory_space<vmem>>) attributes {dimension_semantics = [#tpu.dimension_semantics<arbitrary>, #tpu.dimension_semantics<arbitrary>, #tpu.dimension_semantics<arbitrary>], iteration_bounds = array<i64: 2, 2, 1>, scalar_prefetch = 0 : i64, scratch_operands = 2 : i64, tpu.core_type = #tpu.core_type<tc>, window_params = [{transform_indices = @transform_0, window_bounds = array<i64: 256, 512>}, {transform_indices = @transform_1, window_bounds = array<i64: 256, 128>}, {}, {transform_indices = @transform_3, window_bounds = array<i64: 1, 128, 128>}, {transform_indices = @transform_4, window_bounds = array<i64: 1, 1, 128>}, {transform_indices = @transform_5, window_bounds = array<i64: 256, 1>}, {transform_indices = @transform_6, window_bounds = array<i64: 256, 1>}, {transform_indices = @transform_7, window_bounds = array<i64: 256, 128>}]} {
    %c0_i32 = arith.constant 0 : i32
    %0 = arith.cmpi eq, %arg0, %c0_i32 : i32
    %c0_i32_0 = arith.constant 0 : i32
    %1 = arith.cmpi eq, %arg1, %c0_i32_0 : i32
    %2 = arith.andi %0, %1 : i1
    %c0_i32_1 = arith.constant 0 : i32
    %3 = arith.cmpi eq, %arg2, %c0_i32_1 : i32
    %4 = arith.andi %2, %3 : i1
    %5 = arith.extui %4 : i1 to i32
    %c0_i32_2 = arith.constant 0 : i32
    %6 = arith.cmpi ne, %5, %c0_i32_2 : i32
    scf.if %6 {
      "tpu.region"() ({
        %41 = tpu.sem_alloc : memref<!tpu.dma_semaphore, #tpu.memory_space<semaphore_mem>>
        tpu.enqueue_dma source(%arg5 : memref<1024x128xbf16, #tpu.memory_space<any>>) target(%arg12 : memref<1024x128xbf16, #tpu.memory_space<vmem>>) target_semaphore(%41 : memref<!tpu.dma_semaphore, #tpu.memory_space<semaphore_mem>>)
        tpu.wait_dma2 semaphore(%41 : memref<!tpu.dma_semaphore, #tpu.memory_space<semaphore_mem>>) src(%arg5 : memref<1024x128xbf16, #tpu.memory_space<any>>) dst(%arg12 : memref<1024x128xbf16, #tpu.memory_space<vmem>>)
        tpu.yield
      }) : () -> ()
    } else {
    }
    %c0_i32_3 = arith.constant 0 : i32
    %7 = arith.cmpi eq, %arg2, %c0_i32_3 : i32
    %8 = arith.extui %7 : i1 to i32
    %c0_i32_4 = arith.constant 0 : i32
    %9 = arith.cmpi ne, %8, %c0_i32_4 : i32
    scf.if %9 {
      %cst_21 = arith.constant 0.000000e+00 : f32
      %41 = vector.broadcast %cst_21 : f32 to vector<256x128xf32>
      %c0_22 = arith.constant 0 : index
      %c0_23 = arith.constant 0 : index
      %42 = vector.load %arg11[%c0_22, %c0_23] : memref<256x128xf32, #tpu.memory_space<vmem>>, vector<256x128xf32>
      tpu.vector_store %arg11[%c0_22, %c0_23], %41 {strides = array<i32>} : memref<256x128xf32, #tpu.memory_space<vmem>>, vector<256x128xf32>,
    } else {
    }
    %c2_i32 = arith.constant 2 : i32
    %c0_i32_5 = arith.constant 0 : i32
    %10 = arith.cmpi eq, %c2_i32, %c0_i32_5 : i32
    %c1_i32 = arith.constant 1 : i32
    %11 = arith.select %10, %c1_i32, %c2_i32 : i32
    %12 = arith.remsi %arg0, %11 : i32
    %c0_i32_6 = arith.constant 0 : i32
    %13 = arith.cmpi ne, %12, %c0_i32_6 : i32
    %c0_i32_7 = arith.constant 0 : i32
    %14 = arith.cmpi slt, %12, %c0_i32_7 : i32
    %c0_i32_8 = arith.constant 0 : i32
    %15 = arith.cmpi slt, %11, %c0_i32_8 : i32
    %16 = arith.xori %14, %15 : i1
    %17 = arith.andi %16, %13 : i1
    %18 = arith.addi %12, %11 : i32
    %19 = arith.select %17, %18, %12 : i32
    %c512_i32 = arith.constant 512 : i32
    %20 = arith.muli %19, %c512_i32 : i32
    %c512_i32_9 = arith.constant 512 : i32
    %21 = arith.muli %arg2, %c512_i32_9 : i32
    %22 = arith.addi %20, %21 : i32
    %23 = tpu.assume_multiple %22, 512 : i32
    %c0 = arith.constant 0 : index
    %c0_10 = arith.constant 0 : index
    %24 = vector.load %arg11[%c0, %c0_10] : memref<256x128xf32, #tpu.memory_space<vmem>>, vector<256x128xf32>
    %c0_11 = arith.constant 0 : index
    %c0_12 = arith.constant 0 : index
    %25 = vector.load %arg3[%c0_11, %c0_12] : memref<256x512xi8, #tpu.memory_space<vmem>>, vector<256x512xi8>
    %26 = arith.sitofp %25 : vector<256x512xi8> to vector<256x512xbf16>
    %27 = arith.index_cast %23 : i32 to index
    %c0_13 = arith.constant 0 : index
    %28 = vector.load %arg12[%27, %c0_13] : memref<1024x128xbf16, #tpu.memory_space<vmem>>, vector<512x128xbf16>
    %cst = arith.constant dense<0.000000e+00> : vector<256x128xf32>
    %29 = tpu.matmul %26, %28, %cst {dimension_numbers = #tpu.dot_dimension_numbers<[1], [0], [0], [1], [0, 0, 1, 1], [], []>} : vector<256x512xbf16>, vector<512x128xbf16>, vector<256x128xf32> -> vector<256x128xf32>
    %30 = arith.addf %24, %29 : vector<256x128xf32>
    %c0_14 = arith.constant 0 : index
    %c0_15 = arith.constant 0 : index
    %31 = vector.load %arg11[%c0_14, %c0_15] : memref<256x128xf32, #tpu.memory_space<vmem>>, vector<256x128xf32>
    tpu.vector_store %arg11[%c0_14, %c0_15], %30 {strides = array<i32>} : memref<256x128xf32, #tpu.memory_space<vmem>>, vector<256x128xf32>,
    %c0_i32_16 = arith.constant 0 : i32
    %32 = arith.cmpi eq, %arg2, %c0_i32_16 : i32
    %c1_i32_17 = arith.constant 1 : i32
    %33 = arith.cmpi slt, %arg0, %c1_i32_17 : i32
    %34 = arith.andi %32, %33 : i1
    %35 = arith.extui %34 : i1 to i32
    %c0_i32_18 = arith.constant 0 : i32
    %36 = arith.cmpi ne, %35, %c0_i32_18 : i32
    scf.if %36 {
      %c0_21 = arith.constant 0 : index
      %c0_22 = arith.constant 0 : index
      %41 = vector.load %arg8[%c0_21, %c0_22] : memref<256x1xf32, #tpu.memory_space<vmem>>, vector<256x1xf32>
      %c0_23 = arith.constant 0 : index
      %c0_24 = arith.constant 0 : index
      %42 = vector.load %arg11[%c0_23, %c0_24] : memref<256x128xf32, #tpu.memory_space<vmem>>, vector<256x128xf32>
      %43 = vector.broadcast %41 : vector<256x1xf32> to vector<256x128xf32>
      %44 = arith.mulf %43, %42 : vector<256x128xf32>
      %c0_25 = arith.constant 0 : index
      %c0_26 = arith.constant 0 : index
      %c0_27 = arith.constant 0 : index
      %45 = vector.load %arg7[%c0_25, %c0_26, %c0_27] : memref<1x1x128xf32, #tpu.memory_space<vmem>>, vector<1x1x128xf32>
      %46 = vector.shape_cast %45 : vector<1x1x128xf32> to vector<1x128xf32>
      %47 = vector.broadcast %46 : vector<1x128xf32> to vector<256x128xf32>
      %48 = arith.addf %44, %47 : vector<256x128xf32>
      %cst_28 = arith.constant 0.000000e+00 : f32
      %49 = vector.broadcast %cst_28 : f32 to vector<256x128xf32>
      %50 = arith.maximumf %48, %49 : vector<256x128xf32>
      %c0_29 = arith.constant 0 : index
      %c0_30 = arith.constant 0 : index
      %51 = vector.load %arg9[%c0_29, %c0_30] : memref<256x1xf32, #tpu.memory_space<vmem>>, vector<256x1xf32>
      %52 = vector.broadcast %51 : vector<256x1xf32> to vector<256x128xf32>
      %53 = arith.mulf %52, %50 : vector<256x128xf32>
      %54 = arith.truncf %53 : vector<256x128xf32> to vector<256x128xbf16>
      %c0_31 = arith.constant 0 : index
      %c0_32 = arith.constant 0 : index
      %c0_33 = arith.constant 0 : index
      %55 = vector.load %arg6[%c0_31, %c0_32, %c0_33] : memref<1x128x128xbf16, #tpu.memory_space<vmem>>, vector<1x128x128xbf16>
      %56 = vector.shape_cast %55 : vector<1x128x128xbf16> to vector<128x128xbf16>
      %cst_34 = arith.constant dense<0.000000e+00> : vector<256x128xf32>
      %57 = tpu.matmul %54, %56, %cst_34 {dimension_numbers = #tpu.dot_dimension_numbers<[1], [0], [0], [1], [0, 0, 1, 1], [], []>} : vector<256x128xbf16>, vector<128x128xbf16>, vector<256x128xf32> -> vector<256x128xf32>
      %c1_i32_35 = arith.constant 1 : i32
      %58 = arith.addi %arg0, %c1_i32_35 : i32
      %c2_i32_36 = arith.constant 2 : i32
      %c0_i32_37 = arith.constant 0 : i32
      %59 = arith.cmpi eq, %c2_i32_36, %c0_i32_37 : i32
      %c1_i32_38 = arith.constant 1 : i32
      %60 = arith.select %59, %c1_i32_38, %c2_i32_36 : i32
      %61 = arith.remsi %58, %60 : i32
      %c0_i32_39 = arith.constant 0 : i32
      %62 = arith.cmpi ne, %61, %c0_i32_39 : i32
      %c0_i32_40 = arith.constant 0 : i32
      %63 = arith.cmpi slt, %61, %c0_i32_40 : i32
      %c0_i32_41 = arith.constant 0 : i32
      %64 = arith.cmpi slt, %60, %c0_i32_41 : i32
      %65 = arith.xori %63, %64 : i1
      %66 = arith.andi %65, %62 : i1
      %67 = arith.addi %61, %60 : i32
      %68 = arith.select %66, %67, %61 : i32
      %c512_i32_42 = arith.constant 512 : i32
      %69 = arith.muli %68, %c512_i32_42 : i32
      %c256_i32 = arith.constant 256 : i32
      %70 = arith.muli %arg1, %c256_i32 : i32
      %71 = arith.addi %69, %70 : i32
      %72 = tpu.assume_multiple %71, 256 : i32
      %73 = arith.truncf %57 : vector<256x128xf32> to vector<256x128xbf16>
      %74 = arith.index_cast %72 : i32 to index
      %c0_43 = arith.constant 0 : index
      %75 = vector.load %arg12[%74, %c0_43] : memref<1024x128xbf16, #tpu.memory_space<vmem>>, vector<256x128xbf16>
      tpu.vector_store %arg12[%74, %c0_43], %73 {strides = array<i32>} : memref<1024x128xbf16, #tpu.memory_space<vmem>>, vector<256x128xbf16>,
    } else {
    }
    %c1_i32_19 = arith.constant 1 : i32
    %37 = arith.cmpi eq, %arg0, %c1_i32_19 : i32
    %38 = arith.andi %32, %37 : i1
    %39 = arith.extui %38 : i1 to i32
    %c0_i32_20 = arith.constant 0 : i32
    %40 = arith.cmpi ne, %39, %c0_i32_20 : i32
    scf.if %40 {
      %c0_21 = arith.constant 0 : index
      %c0_22 = arith.constant 0 : index
      %41 = vector.load %arg8[%c0_21, %c0_22] : memref<256x1xf32, #tpu.memory_space<vmem>>, vector<256x1xf32>
      %c0_23 = arith.constant 0 : index
      %c0_24 = arith.constant 0 : index
      %42 = vector.load %arg11[%c0_23, %c0_24] : memref<256x128xf32, #tpu.memory_space<vmem>>, vector<256x128xf32>
      %43 = vector.broadcast %41 : vector<256x1xf32> to vector<256x128xf32>
      %44 = arith.mulf %43, %42 : vector<256x128xf32>
      %c0_25 = arith.constant 0 : index
      %c0_26 = arith.constant 0 : index
      %c0_27 = arith.constant 0 : index
      %45 = vector.load %arg7[%c0_25, %c0_26, %c0_27] : memref<1x1x128xf32, #tpu.memory_space<vmem>>, vector<1x1x128xf32>
      %46 = vector.shape_cast %45 : vector<1x1x128xf32> to vector<1x128xf32>
      %47 = vector.broadcast %46 : vector<1x128xf32> to vector<256x128xf32>
      %48 = arith.addf %44, %47 : vector<256x128xf32>
      %49 = vector.extract_strided_slice %48 {offsets = [0, 0], sizes = [256, 1], strides = [1, 1]} : vector<256x128xf32> to vector<256x1xf32>
      %cst_28 = arith.constant 0.000000e+00 : f32
      %50 = vector.broadcast %cst_28 : f32 to vector<256x1xf32>
      %51 = arith.maximumf %49, %50 : vector<256x1xf32>
      %52 = math.absf %49 : vector<256x1xf32>
      %cst_29 = arith.constant 0.000000e+00 : f32
      %53 = vector.broadcast %cst_29 : f32 to vector<256x1xf32>
      %54 = arith.subf %53, %52 : vector<256x1xf32>
      %55 = math.exp %54 : vector<256x1xf32>
      %cst_30 = arith.constant 1.000000e+00 : f32
      %56 = vector.broadcast %cst_30 : f32 to vector<256x1xf32>
      %57 = arith.addf %56, %55 : vector<256x1xf32>
      %58 = math.log %57 : vector<256x1xf32>
      %59 = arith.addf %51, %58 : vector<256x1xf32>
      %c0_31 = arith.constant 0 : index
      %c0_32 = arith.constant 0 : index
      %60 = vector.load %arg4[%c0_31, %c0_32] : memref<256x128xf32, #tpu.memory_space<vmem>>, vector<256x128xf32>
      %61 = vector.broadcast %59 : vector<256x1xf32> to vector<256x128xf32>
      %62 = arith.mulf %60, %61 : vector<256x128xf32>
      %c0_33 = arith.constant 0 : index
      %c0_34 = arith.constant 0 : index
      %63 = vector.load %arg10[%c0_33, %c0_34] : memref<256x128xf32, #tpu.memory_space<vmem>>, vector<256x128xf32>
      tpu.vector_store %arg10[%c0_33, %c0_34], %62 {strides = array<i32>} : memref<256x128xf32, #tpu.memory_space<vmem>>, vector<256x128xf32>,
    } else {
    }
    return
  }
  func.func @transform_0(%arg0: i32, %arg1: i32, %arg2: i32) -> (i32, i32) {
    %c0_i32 = arith.constant 0 : i32
    return %arg1, %arg2 : i32, i32
  }
  func.func @transform_1(%arg0: i32, %arg1: i32, %arg2: i32) -> (i32, i32) {
    %c0_i32 = arith.constant 0 : i32
    %c0_i32_0 = arith.constant 0 : i32
    return %arg1, %c0_i32 : i32, i32
  }
  func.func @transform_3(%arg0: i32, %arg1: i32, %arg2: i32) -> (i32, i32, i32) {
    %c0_i32 = arith.constant 0 : i32
    %c0_i32_0 = arith.constant 0 : i32
    %c0_i32_1 = arith.constant 0 : i32
    return %arg0, %c0_i32, %c0_i32_0 : i32, i32, i32
  }
  func.func @transform_4(%arg0: i32, %arg1: i32, %arg2: i32) -> (i32, i32, i32) {
    %c0_i32 = arith.constant 0 : i32
    %c0_i32_0 = arith.constant 0 : i32
    %c0_i32_1 = arith.constant 0 : i32
    return %arg0, %c0_i32, %c0_i32_0 : i32, i32, i32
  }
  func.func @transform_5(%arg0: i32, %arg1: i32, %arg2: i32) -> (i32, i32) {
    %c0_i32 = arith.constant 0 : i32
    %c0_i32_0 = arith.constant 0 : i32
    return %arg1, %c0_i32 : i32, i32
  }
  func.func @transform_6(%arg0: i32, %arg1: i32, %arg2: i32) -> (i32, i32) {
    %c0_i32 = arith.constant 0 : i32
    %c0_i32_0 = arith.constant 0 : i32
    return %arg1, %c0_i32 : i32, i32
  }
  func.func @transform_7(%arg0: i32, %arg1: i32, %arg2: i32) -> (i32, i32) {
    %c0_i32 = arith.constant 0 : i32
    %c0_i32_0 = arith.constant 0 : i32
    return %arg1, %c0_i32 : i32, i32
  }
}

</mosaic_0001>

<bundles_post_ra>
// kernel: tpu_custom_call.1
= control target key start
LH: loop header
LB: loop body
LE: loop exit
PB: predicated region body
PF: predicated region fallthrough
CT: control target
= control target key end

     0   :  { %s5016_s0 = inlined_call_operand.vmem [shape: s8[512,512], index: 0, kind: input, shape index: {}]   ;;  %s5017_s1 = inlined_call_operand.vmem [shape: f32[512,128], index: 1, kind: input, shape index: {}]   ;;  %s5018_s2 = inlined_call_operand.hbm [shape: bf16[1024,128], index: 2, kind: input, shape index: {}]   ;;  %s5019_s3 = inlined_call_operand.hbm [shape: bf16[2,128,128], index: 3, kind: input, shape index: {}]   ;;  %s5020_s4 = inlined_call_operand.vmem [shape: f32[2,1,128], index: 4, kind: input, shape index: {}]   ;;  %s5021_s5 = inlined_call_operand.vmem [shape: f32[512,1], index: 5, kind: input, shape index: {}]   ;;  %s5022_s6 = inlined_call_operand.vmem [shape: f32[512,1], index: 6, kind: input, shape index: {}]   ;;  %s5023_s7 = inlined_call_operand.hbm [shape: f32[512,128], index: 7, kind: output, shape index: {}]  }
   0x1   :  { %5032 = sst [smem:[#allocation25_spill]] %s5016_s0 }
   0x2   :  { %5033 = sst [smem:[#allocation26_spill]] %s5017_s1 }
   0x3   :  { %5034 = sst [smem:[#allocation27_spill]] %s5019_s3 }
   0x4   :  { %12 = vsyncpa [#allocation5], 0 }
   0x5   :  { %14 = vsyncpa [#allocation5 + $0x1], 0 }
   0x6   :  { %15 = vsyncpa [#allocation6], 0 }
   0x7   :  { %17 = vsyncpa [#allocation6 + $0x1], 0  ;;  %s4309_s24 = smov 0   ;;  %s4311_s25 = smov 0  }
   0x8   :  { %s4313_s26 = smov 0   ;;  %s4315_s27 = smov 0  }
   0x9   :  { %s4317_s28 = smov 0   ;;  %s4319_s29 = smov 0  }
   0xa   :  { %s4321_s30 = smov 0   ;;  %s4323_s8 = smov 0  }
   0xb   :  { %s4325_s9 = smov 0   ;;  %s4327_s10 = smov 0  }
   0xc   :  { %s4329_s11 = smov 0  }
   0xd LB: > { %5035 = sst [smem:[#allocation16_spill]] %s4226_s26  ;;  %s3250_s12 = sadd.s32 4294967295, %s4258_s11   ;;  %s4258_s11 = sphi %s4329_s11, %s23_s11   ;;  %s4254_s10 = sphi %s4327_s10, %s5061_s10   ;;  %s4250_s9 = sphi %s4325_s9, %s5060_s9   ;;  %s4246_s8 = sphi %s4323_s8, %s5064_s8   ;;  %s4242_s30 = sphi %s4321_s30, %s5058_s30   ;;  %s4238_s29 = sphi %s4319_s29, %s5057_s29   ;;  %s4234_s28 = sphi %s4317_s28, %s5056_s28   ;;  %s4230_s27 = sphi %s4315_s27, %s5055_s27   ;;  %s4226_s26 = sphi %s4313_s26, %s5054_s26   ;;  %s4222_s25 = sphi %s4311_s25, %s5063_s25   ;;  %s4218_s24 = sphi %s4309_s24, %s5062_s24  }
   0xe   : > { %5036 = sst [smem:[#allocation17_spill]] %s4234_s28  ;;  %s3251_s13 = sadd.s32 4294967294, %s4258_s11  }
   0xf   : > { %5037 = sst [smem:[#allocation18_spill]] %s4238_s29  ;;  %s38_s14 = sadd.s32 1, %s4250_s9 }
  0x10   : > { %5038 = sst [smem:[#allocation19_spill]] %s4250_s9  ;;  %s42_s15 = sadd.s32 1, %s4254_s10 }
  0x11   : > { %5039 = sst [smem:[#allocation20_spill]] %s4254_s10  ;;  %p40_p0 = scmp.ge.s32.totalorder %s38_s14, 2 }
  0x12   : > { %s103_s16 = sadd.s32 1, %s4238_s29  ;;  %p110_p1 = scmp.ne.s32.totalorder %s4238_s29, %s4234_s28 }
  0x13   : > { %p111_p2 = scmp.eq.s32.totalorder %s4258_s11, 0  ;;  %s5066_s14 = smov (%p40_p0, %s38_s14), 0 }
  0x14   : > { %5040 = sst [smem:[#allocation21_spill]] %s5066_s14  ;;  %s5068_s15 = smov (!%p40_p0, %s42_s15), %s4254_s10 }
  0x15   : > { %p4373_p3 = por %p111_p2, %p110_p1  ;;  %p116_p4 = scmp.ne.s32.totalorder %s4234_s28, %s4230_s27 }
  0x16   : > { %p44_p5 = scmp.ge.s32.totalorder %s5068_s15, 2  ;;  %p117_p6 = scmp.eq.s32.totalorder %s3250_s12, 0 }
  0x17   : > { %s204_s18 = ssub.s32 %s4250_s9, %s5066_s14  ;;  %s207_s19 = sadd.s32 1, %s4226_s26 }
  0x18   : > { %s5070_s15 = smov (%p44_p5, %s5068_s15), 0  ;;  %p4383_p7 = por %p117_p6, %p116_p4 }
  0x19   : > { %5042 = sst [smem:[#allocation22_spill]] %s5070_s15  ;;  %p205_p8 = scmp.eq.s32.totalorder %s204_s18, 0 }
  0x1a   : > { %s100_s21 = ssub.s32 %s4254_s10, %s5070_s15  ;;  %p217_p9 = scmp.ne.s32.totalorder %s4226_s26, %s4222_s25 }
  0x1b   : > { %p101_p10 = scmp.eq.s32.totalorder %s100_s21, 0  ;;  %p218_p11 = scmp.eq.s32.totalorder %s3250_s12, 3 }
  0x1c   : > { %s4392_s22 = scalar_select %p205_p8, %s4226_s26, %s207_s19  }
  0x1d   : > { %s4395_s23 = scalar_select %p101_p10, %s4238_s29, %s103_s16  }
  0x1e   : > { %5044 = sst [smem:[#allocation23_spill]] %s4392_s22  ;;  %p4397_p12 = por %p218_p11, %p217_p9 }
  0x1f   : > { %5045 = sst [smem:[#allocation24_spill]] %s4395_s23  ;;  %p223_p13 = scmp.ne.s32.totalorder %s4222_s25, %s4218_s24 }
  0x20   : > { %p224_p0 = scmp.eq.s32.totalorder %s3251_s13, 3  ;;  %p3818_p1 = scmp.lt.s32.totalorder %s4258_s11, 4 }
  0x21   : > { %s268_s14 = sand.u32 1, %s4238_s29   ;;  %s3362_s15 = sshll.u32 %s4254_s10, 10 }
  0x22   : > { %p4405_p2 = por %p224_p0, %p223_p13  ;;  %s3254_s18 = sshll.u32 %s268_s14, 6 }
  0x23   : > { %s5048_s3 = sld [smem:[#allocation27_spill]]  ;;  %s272_s16 = scalar_lea.vmem [#allocation4], %s3254_s18 }
  0x24   : > { %s279_s23 = sshll.u32 %s272_s16, 4  ;;  %p4415_p4 = pnand %p3818_p1, %p4373_p3  ;;  %s280_s23 = int_to_ptr.vmem [resolvable:$true] %s279_s23 }
  0x25   : > { %s269_s13 = scalar_lea.sflag [#allocation5], %s268_s14  ;;  %s4101_s29 = scalar_lea.vmem %s280_s23, 1024 }
  0x26   : > { %p4090_p5 = pneg %p4415_p4  ;;  %p4102_p6 = scmp.ne.s32.totalorder %s280_s23, %s4101_s29 }
  0x27   : > { %s4260_s10 = smov [#allocation4]  }
  0x28   : > { %p4104_p8 = pnand %p4102_p6, %p4090_p5  ;;  %s4106_s26 = sshll.u32 %s4260_s10, 4  ;;  %s4107_s26 = int_to_ptr.vmem [resolvable:$false] %s4106_s26 }
  0x29   : > { %s278_s19 = scalar_lea.hbm %s5048_s3, %s3362_s15  ;;  %s4108_s15 = scalar_lea.vmem %s4107_s26, 2048 }
  0x2a   : > { %p4105_p9 = pneg %p4104_p8  ;;  %p4109_p10 = scmp.lt.s32.totalorder %s280_s23, %s4107_s26 }
  0x2b   : > { %p4110_p11 = scmp.lt.s32.totalorder %s4108_s15, %s4101_s29 }
  0x2d   : > { %p4111_p13 = por %p4110_p11, %p4109_p10 }
  0x2f   : > { %p4112_p3 = pnand %p4111_p13, %p4105_p9 }
  0x31   : > { %4115 = shalt.err (!%p4112_p3)
}
  0x32   : > { %s4261_s17 = smov 64   ;;  %s4262_s14 = smov 4  }
  0x33   : > { %3813 = dma.hbm_to_vmem [thread:$0]  (!%p4415_p4), %s278_s19, 1024, %s280_s23, %s269_s13, %s4261_s17, %s4261_s17, %s4262_s14  }
  0x34   : > { %p3257_p0 = scmp.ge.s32.totalorder %s4258_s11, 1  ;;  %p311_p1 = scmp.lt.s32.totalorder %s4258_s11, 5 }
  0x36   : > { %p312_p5 = pnand %p3257_p0, %p311_p1 }
  0x37   : > { %s317_s10 = sand.u32 (!%p312_p5), 1, %s4234_s28  }
  0x38   : > { %315 = sbr.rel (%p312_p5) target bundleno = 1286 (0x506), region = 44  ;;  %s3258_s18 = sshll.u32 (!%p312_p5), %s317_s10, 6 }
  0x39   : > { %s318_s26 = scalar_lea.sflag (!%p312_p5), [#allocation5], %s317_s10  ;;  %s4426_s29 = scalar_lea.vmem (!%p312_p5), [#allocation4], %s3258_s18 }
  0x3d   : > { %4207 = dma.done.wait (%p4383_p7), %s318_s26, 1024  }
  0x3e   : > { %4209 = vsyncadd (%p4383_p7), %s318_s26, 4294966272  ;;  %s5030_s22 = sand.u32 1, %s4222_s25   ;;  %s3260_s23 = sshll.u32 %s4242_s30, 3 }
  0x3f   : > { %s3259_s21 = sshll.u32 %s5030_s22, 8  ;;  %p380_p4 = scmp.lt.s32.totalorder %s3260_s23, 15 }
  0x40   : > { %s3263_s12 = sshll.u32 %s4242_s30, 5  ;;  %p396_p8 = scmp.lt.s32.totalorder %s4246_s8, 1 }
  0x41   : > { %s5072_s23 = smov (!%p380_p4, %s3260_s23), 15  ;;  %p391_p6 = scmp.lt.s32.totalorder %s3263_s12, 63 }
  0x42   : > { %s3363_s20 = sshll.u32 %s5072_s23, 5  ;;  %p413_p7 = scmp.eq.s32.totalorder %s4246_s8, 0 }
  0x43   : > { %s5050_s0 = sld [smem:[#allocation25_spill]]  ;;  %p414_p9 = scmp.eq.s32.totalorder %s4242_s30, 0 }
  0x44   : > { %s5074_s12 = smov (!%p391_p6, %s3263_s12), 63  ;;  %s5051_s1 = sld [smem:[#allocation26_spill]] }
  0x45   : > { %s397_s15 = scalar_select %p396_p8, %s4246_s8, 1 }
  0x46   : > { %s3264_s17 = sshll.u32 %s5074_s12, 3  ;;  %p415_p10 = pnand %p414_p9, %p413_p7 }
  0x47   : > { %s4456_s23 = scalar_lea.vmem %s5020_s4, %s397_s15  ;;  %s4466_s12 = scalar_lea.vmem %s5022_s6, %s3264_s17 }
  0x48   : > { %s4468_s28 = scalar_lea.vmem [#allocation7], %s3259_s21  ;;  %421 = sbr.rel (%p415_p10) target bundleno = 90 (0x5a), region = 52 }
  0x49   : > { %s4442_s13 = scalar_lea.vmem %s5050_s0, %s3363_s20  ;;  %s4461_s20 = scalar_lea.vmem %s5021_s5, %s3264_s17 }
  0x4a   : > { %s4451_s18 = scalar_lea.vmem %s5051_s1, %s3264_s17 }
  0x4d   : > { %s4263_s14 = smov [#allocation3]  }
  0x4e   : > { %s429_s10 = sshll.u32 %s4263_s14, 4  ;;  %s430_s10 = int_to_ptr.vmem [resolvable:$true] %s429_s10 }
  0x4f   : > { %s4124_s1 = scalar_lea.vmem %s430_s10, 8192  ;;  %p4129_p13 = scmp.lt.s32.totalorder %s430_s10, %s430_s10 }
  0x50   : > { %p4125_p11 = scmp.ne.s32.totalorder %s430_s10, %s4124_s1  ;;  %p4130_p3 = scmp.lt.s32.totalorder %s4124_s1, %s4124_s1 }
  0x52   : > { %p4131_p0 = por %p4130_p3, %p4129_p13 }
  0x54   : > { %p4132_p1 = pnand %p4131_p0, %p4125_p11 }
  0x56   : > { %4135 = shalt.err (!%p4132_p1)  }
  0x57   : > { %432 = dma.hbm_to_vmem [thread:$0]  %s5018_s2, 8192, %s430_s10, [#allocation8] }
  0x58   : > { %4210 = dma.done.wait [#allocation8], 8192 }
  0x59   : > { %4211 = vsyncadd [#allocation8], 4294959104 }
  0x5a PF: > { %p472_p5 = scmp.lt.s32.totalorder %s4246_s8, 0  ;;  %s473_s0 = ssub.s32 0, %s4246_s8  ;;  %v4476_v0 = vld [vmem:[%s4442_s13 + $0x8] sm:$0xff]  ;;  %v4479_v1 = vld [vmem:[%s4442_s13 + $0x18] sm:$0xff]  ;;  %v519_v31 = vld [vmem:[%s4442_s13] sm:$0xff] }
  0x5b   : > { %s3270_s1 = smin.u32 %s4246_s8, %s473_s0  ;;  %v552_v2 = vunpack.c.l.s8.bf16 %v4476_v0  ;;  %v554_v3 = vunpack.c.l.s8.bf16 %v4479_v1  ;;  %v521_v33 = vld [vmem:[%s4442_s13 + $0x10] sm:$0xff]  ;;  %v551_v38 = vunpack.c.l.s8.bf16 %v519_v31  ;;  %v556_v39 = vunpack.c.h.s8.bf16 %v4476_v0  ;;  %v524_v42 = vld [vmem:[%s4442_s13 + $0x28] sm:$0xff]  ;;  %v526_v43 = vld [vmem:[%s4442_s13 + $0x38] sm:$0xff] }
  0x5c   : > { %s475_s21 = sand.u32 1, %s3270_s1   ;;  %v553_v40 = vunpack.c.l.s8.bf16 %v521_v33  ;;  %v558_v41 = vunpack.c.h.s8.bf16 %v4479_v1  ;;  %v555_v44 = vunpack.c.h.s8.bf16 %v519_v31  ;;  %v557_v45 = vunpack.c.h.s8.bf16 %v521_v33  ;;  %v523_v48 = vld [vmem:[%s4442_s13 + $0x20] sm:$0xff]  ;;  %v525_v49 = vld [vmem:[%s4442_s13 + $0x30] sm:$0xff]  ;;  %v528_v54 = vld [vmem:[%s4442_s13 + $0x48] sm:$0xff]  ;;  %s3321_s1 = sshll.u32 (%p396_p8), %s4242_s30, 8 }
  0x5d   : > { %s476_s15 = ssub.s32 0, %s475_s21  ;;  %907 = vmatprep.mubr.bf16.mxu0 %v552_v2  ;;  %1068 = vmatprep.mubr.bf16.mxu1 %v554_v3  ;;  %v560_v46 = vunpack.c.l.s8.bf16 %v524_v42  ;;  %v562_v47 = vunpack.c.l.s8.bf16 %v526_v43  ;;  %v559_v50 = vunpack.c.l.s8.bf16 %v523_v48  ;;  %v561_v51 = vunpack.c.l.s8.bf16 %v525_v49  ;;  %v530_v55 = vld [vmem:[%s4442_s13 + $0x58] sm:$0xff]  ;;  %v527_v60 = vld [vmem:[%s4442_s13 + $0x40] sm:$0xff]  ;;  %v529_v61 = vld [vmem:[%s4442_s13 + $0x50] sm:$0xff] }
  0x5e   : > { %s5076_s15 = smov (!%p472_p5, %s476_s15), %s475_s21  ;;  %v564_v52 = vunpack.c.h.s8.bf16 %v524_v42  ;;  %v566_v53 = vunpack.c.h.s8.bf16 %v526_v43  ;;  %v563_v56 = vunpack.c.h.s8.bf16 %v523_v48  ;;  %v565_v57 = vunpack.c.h.s8.bf16 %v525_v49  ;;  %v532_v2 = vld [vmem:[%s4442_s13 + $0x68] sm:$0xff]  ;;  %v534_v3 = vld [vmem:[%s4442_s13 + $0x78] sm:$0xff]  ;;  %v541_v33 = vld [vmem:[%s4442_s13 + $0xb0] sm:$0xff] }
  0x5f   : > { %p3272_p4 = scmp.lt.s32.totalorder %s5076_s15, 0  ;;  %s482_s17 = sadd.s32 2, %s5076_s15  ;;  %v568_v58 = vunpack.c.l.s8.bf16 %v528_v54  ;;  %v570_v59 = vunpack.c.l.s8.bf16 %v530_v55  ;;  %v567_v62 = vunpack.c.l.s8.bf16 %v527_v60  ;;  %v569_v63 = vunpack.c.l.s8.bf16 %v529_v61 }
  0x60   : > { %v572_v0 = vunpack.c.h.s8.bf16 %v528_v54  ;;  %v574_v1 = vunpack.c.h.s8.bf16 %v530_v55 }
  0x61   : > { %s5078_s17 = smov (!%p3272_p4, %s482_s17), %s5076_s15 }
  0x62   : > { %s3273_s26 = sshll.u32 %s5078_s17, 9 }
  0x63   : > { %s615_s19 = sshra.s32 %s3273_s26, 3 }
  0x64   : > { %s3274_s16 = sshll.u32 %s615_s19, 2 }
  0x65   : > { %s4484_s14 = scalar_lea.vmem [#allocation3], %s3274_s16 }
  0x66   : > { %v3916_v4 = vld [vmem:[%s4484_s14 + $0x78] sm:$0xff]   ;;  %v3920_v8 = vld [vmem:[%s4484_s14 + $0x70] sm:$0xff]   ;;  %v3924_v12 = vld [vmem:[%s4484_s14 + $0x68] sm:$0xff]  }
  0x67   : > { %v3917_v5 = vld [vmem:[%s4484_s14 + $0xf8] sm:$0xff]   ;;  %3494 = vmatprep.subr.bf16.mxu0 %v3916_v4  ;;  %v3921_v9 = vld [vmem:[%s4484_s14 + $0xf0] sm:$0xff]   ;;  %v3925_v13 = vld [vmem:[%s4484_s14 + $0xe8] sm:$0xff]   ;;  %v571_v4 = vunpack.c.h.s8.bf16 %v527_v60 }
  0x68   : > { %v3918_v6 = vld [vmem:[%s4484_s14 + $0x38] sm:$0xff]   ;;  %3606 = vmatprep.subr.bf16.mxu1 %v3917_v5  ;;  %v3922_v10 = vld [vmem:[%s4484_s14 + $0x30] sm:$0xff]   ;;  %v3926_v14 = vld [vmem:[%s4484_s14 + $0x28] sm:$0xff]   ;;  %v573_v5 = vunpack.c.h.s8.bf16 %v529_v61 }
  0x69   : > { %v3919_v7 = vld [vmem:[%s4484_s14 + $0xb8] sm:$0xff]   ;;  %3495 = vmatpush3.bf16.msra.mxu0 %v3918_v6  ;;  %v3923_v11 = vld [vmem:[%s4484_s14 + $0xb0] sm:$0xff]   ;;  %v3927_v15 = vld [vmem:[%s4484_s14 + $0xa8] sm:$0xff]   ;;  %v576_v6 = vunpack.c.l.s8.bf16 %v532_v2 }
  0x6a   : > { %3607 = vmatpush3.bf16.msra.mxu1 %v3919_v7  ;;  %3496 = vmatprep.subr.bf16.mxu0 %v3920_v8  ;;  %v3928_v16 = vld [vmem:[%s4484_s14 + $0x60] sm:$0xff]   ;;  %v3932_v20 = vld [vmem:[%s4484_s14 + $0x58] sm:$0xff]   ;;  %v3936_v24 = vld [vmem:[%s4484_s14 + $0x50] sm:$0xff]   ;;  %v578_v7 = vunpack.c.l.s8.bf16 %v534_v3 }
  0x6b   : > { %3608 = vmatprep.subr.bf16.mxu1 %v3921_v9  ;;  %v3929_v17 = vld [vmem:[%s4484_s14 + $0xe0] sm:$0xff]   ;;  %v3933_v21 = vld [vmem:[%s4484_s14 + $0xd8] sm:$0xff]   ;;  %v3937_v25 = vld [vmem:[%s4484_s14 + $0xd0] sm:$0xff]  }
  0x6c   : > { %v3930_v18 = vld [vmem:[%s4484_s14 + $0x20] sm:$0xff]   ;;  %v3934_v22 = vld [vmem:[%s4484_s14 + $0x18] sm:$0xff]   ;;  %v3938_v26 = vld [vmem:[%s4484_s14 + $0x10] sm:$0xff]  }
  0x6d   : > { %3497 = vmatpush3.bf16.msra.mxu0 %v3922_v10  ;;  %v3931_v19 = vld [vmem:[%s4484_s14 + $0xa0] sm:$0xff]   ;;  %v3935_v23 = vld [vmem:[%s4484_s14 + $0x98] sm:$0xff]   ;;  %v3939_v27 = vld [vmem:[%s4484_s14 + $0x90] sm:$0xff]  }
  0x6e   : > { %3609 = vmatpush3.bf16.msra.mxu1 %v3923_v11  ;;  %3498 = vmatprep.subr.bf16.mxu0 %v3924_v12  ;;  %v3940_v28 = vld [vmem:[%s4484_s14 + $0x48] sm:$0xff]   ;;  %v3944_v34 = vld [vmem:[%s4484_s14 + $0x40] sm:$0xff]   ;;  %v533_v9 = vld [vmem:[%s4442_s13 + $0x70] sm:$0xff]  ;;  %v580_v12 = vunpack.c.h.s8.bf16 %v532_v2 }
  0x6f   : > { %3610 = vmatprep.subr.bf16.mxu1 %v3925_v13  ;;  %v3941_v29 = vld [vmem:[%s4484_s14 + $0xc8] sm:$0xff]   ;;  %v3945_v35 = vld [vmem:[%s4484_s14 + $0xc0] sm:$0xff]   ;;  %v577_v11 = vunpack.c.l.s8.bf16 %v533_v9  ;;  %v582_v13 = vunpack.c.h.s8.bf16 %v534_v3 }
  0x70   : > { %v3942_v30 = vld [vmem:[%s4484_s14 + $0x8] sm:$0xff]   ;;  %v3946_v36 = vld [vmem:[%s4484_s14] sm:$0xff]  }
  0x71   : > { %3499 = vmatpush3.bf16.msra.mxu0 %v3926_v14  ;;  %v3943_v32 = vld [vmem:[%s4484_s14 + $0x88] sm:$0xff]   ;;  %v3947_v37 = vld [vmem:[%s4484_s14 + $0x80] sm:$0xff]  }
  0x72   : > { %3611 = vmatpush3.bf16.msra.mxu1 %v3927_v15  ;;  %3500 = vmatprep.subr.bf16.mxu0 %v3928_v16  ;;  %v531_v8 = vld [vmem:[%s4442_s13 + $0x60] sm:$0xff]  ;;  %v536_v14 = vld [vmem:[%s4442_s13 + $0x88] sm:$0xff]  ;;  %v538_v15 = vld [vmem:[%s4442_s13 + $0x98] sm:$0xff] }
  0x73   : > { %3612 = vmatprep.subr.bf16.mxu1 %v3929_v17  ;;  %v575_v10 = vunpack.c.l.s8.bf16 %v531_v8  ;;  %v579_v16 = vunpack.c.h.s8.bf16 %v531_v8  ;;  %v581_v17 = vunpack.c.h.s8.bf16 %v533_v9 }
  0x75   : > { %3501 = vmatpush3.bf16.msra.mxu0 %v3930_v18  ;;  %v584_v18 = vunpack.c.l.s8.bf16 %v536_v14 }
  0x76   : > { %3613 = vmatpush3.bf16.msra.mxu1 %v3931_v19  ;;  %3502 = vmatprep.subr.bf16.mxu0 %v3932_v20  ;;  %v586_v19 = vunpack.c.l.s8.bf16 %v538_v15  ;;  %v535_v20 = vld [vmem:[%s4442_s13 + $0x80] sm:$0xff] }
  0x77   : > { %3614 = vmatprep.subr.bf16.mxu1 %v3933_v21  ;;  %v537_v21 = vld [vmem:[%s4442_s13 + $0x90] sm:$0xff] }
  0x79   : > { %3503 = vmatpush3.bf16.msra.mxu0 %v3934_v22  ;;  %v583_v22 = vunpack.c.l.s8.bf16 %v535_v20 }
  0x7a   : > { %3615 = vmatpush3.bf16.msra.mxu1 %v3935_v23  ;;  %3504 = vmatprep.subr.bf16.mxu0 %v3936_v24  ;;  %v585_v23 = vunpack.c.l.s8.bf16 %v537_v21  ;;  %v588_v24 = vunpack.c.h.s8.bf16 %v536_v14 }
  0x7b   : > { %3616 = vmatprep.subr.bf16.mxu1 %v3937_v25  ;;  %v590_v25 = vunpack.c.h.s8.bf16 %v538_v15 }
  0x7d   : > { %3505 = vmatpush3.bf16.msra.mxu0 %v3938_v26  ;;  %v540_v26 = vld [vmem:[%s4442_s13 + $0xa8] sm:$0xff] }
  0x7e   : > { %3617 = vmatpush3.bf16.msra.mxu1 %v3939_v27  ;;  %3506 = vmatprep.subr.bf16.mxu0 %v3940_v28  ;;  %v542_v27 = vld [vmem:[%s4442_s13 + $0xb8] sm:$0xff]  ;;  %v587_v28 = vunpack.c.h.s8.bf16 %v535_v20 }
  0x7f   : > { %3618 = vmatprep.subr.bf16.mxu1 %v3941_v29  ;;  %v589_v29 = vunpack.c.h.s8.bf16 %v537_v21  ;;  %v594_v31 = vunpack.c.l.s8.bf16 %v542_v27 }
  0x81   : > { %3507 = vmatpush3.bf16.msra.mxu0 %v3942_v30  ;;  %v592_v30 = vunpack.c.l.s8.bf16 %v540_v26 }
  0x82   : > { %3619 = vmatpush3.bf16.msra.mxu1 %v3943_v32  ;;  %3508 = vmatprep.subr.bf16.mxu0 %v3944_v34  ;;  %v539_v32 = vld [vmem:[%s4442_s13 + $0xa0] sm:$0xff] }
  0x83   : > { %3620 = vmatprep.subr.bf16.mxu1 %v3945_v35  ;;  %v591_v34 = vunpack.c.l.s8.bf16 %v539_v32  ;;  %v593_v35 = vunpack.c.l.s8.bf16 %v541_v33 }
  0x85   : > { %3509 = vmatpush3.bf16.msra.mxu0 %v3946_v36  ;;  %v596_v36 = vunpack.c.h.s8.bf16 %v540_v26 }
  0x86   : > { %3621 = vmatpush3.bf16.msra.mxu1 %v3947_v37  ;;  %v598_v37 = vunpack.c.h.s8.bf16 %v542_v27 }
  0x88   : > { %908 = vmatmul.mubr.bf16.vlgmr.msra.gmra.mxu0 %v551_v38  ;;  %v544_v38 = vld [vmem:[%s4442_s13 + $0xc8] sm:$0xff] }
  0x89   : > { %1069 = vmatmul.mubr.bf16.vlgmr.msra.gmra.mxu1 %v553_v40  ;;  %915 = vmatprep.mubr.bf16.mxu0 %v556_v39  ;;  %v546_v39 = vld [vmem:[%s4442_s13 + $0xd8] sm:$0xff]  ;;  %v595_v40 = vunpack.c.h.s8.bf16 %v539_v32  ;;  %v600_v42 = vunpack.c.l.s8.bf16 %v544_v38  ;;  %v604_v48 = vunpack.c.h.s8.bf16 %v544_v38 }
  0x8a   : > { %1076 = vmatprep.mubr.bf16.mxu1 %v558_v41  ;;  %v597_v41 = vunpack.c.h.s8.bf16 %v541_v33  ;;  %v602_v43 = vunpack.c.l.s8.bf16 %v546_v39  ;;  %v606_v49 = vunpack.c.h.s8.bf16 %v546_v39 }
  0x90   : > { %916 = vmatmul.mubr.bf16.gmra.mxu0 %v555_v44  ;;  %v543_v44 = vld [vmem:[%s4442_s13 + $0xc0] sm:$0xff] }
  0x91   : > { %1077 = vmatmul.mubr.bf16.gmra.mxu1 %v557_v45  ;;  %923 = vmatprep.mubr.bf16.mxu0 %v560_v46  ;;  %v545_v45 = vld [vmem:[%s4442_s13 + $0xd0] sm:$0xff]  ;;  %v599_v46 = vunpack.c.l.s8.bf16 %v543_v44 }
  0x92   : > { %1084 = vmatprep.mubr.bf16.mxu1 %v562_v47  ;;  %v601_v47 = vunpack.c.l.s8.bf16 %v545_v45 }
  0x98   : > { %924 = vmatmul.mubr.bf16.gmra.mxu0 %v559_v50  ;;  %v548_v50 = vld [vmem:[%s4442_s13 + $0xe8] sm:$0xff] }
  0x99   : > { %1085 = vmatmul.mubr.bf16.gmra.mxu1 %v561_v51  ;;  %931 = vmatprep.mubr.bf16.mxu0 %v564_v52  ;;  %v550_v51 = vld [vmem:[%s4442_s13 + $0xf8] sm:$0xff]  ;;  %v603_v52 = vunpack.c.h.s8.bf16 %v543_v44  ;;  %v608_v54 = vunpack.c.l.s8.bf16 %v548_v50  ;;  %v612_v60 = vunpack.c.h.s8.bf16 %v548_v50 }
  0x9a   : > { %1092 = vmatprep.mubr.bf16.mxu1 %v566_v53  ;;  %v605_v53 = vunpack.c.h.s8.bf16 %v545_v45  ;;  %v610_v55 = vunpack.c.l.s8.bf16 %v550_v51  ;;  %v614_v61 = vunpack.c.h.s8.bf16 %v550_v51 }
  0xa0   : > { %932 = vmatmul.mubr.bf16.gmra.mxu0 %v563_v56  ;;  %v547_v56 = vld [vmem:[%s4442_s13 + $0xe0] sm:$0xff] }
  0xa1   : > { %1093 = vmatmul.mubr.bf16.gmra.mxu1 %v565_v57  ;;  %939 = vmatprep.mubr.bf16.mxu0 %v568_v58  ;;  %v549_v57 = vld [vmem:[%s4442_s13 + $0xf0] sm:$0xff]  ;;  %v607_v58 = vunpack.c.l.s8.bf16 %v547_v56 }
  0xa2   : > { %1100 = vmatprep.mubr.bf16.mxu1 %v570_v59  ;;  %v609_v59 = vunpack.c.l.s8.bf16 %v549_v57 }
  0xa8   : > { %940 = vmatmul.mubr.bf16.gmra.mxu0 %v567_v62  ;;  %v611_v62 = vunpack.c.h.s8.bf16 %v547_v56 }
  0xa9   : > { %1101 = vmatmul.mubr.bf16.gmra.mxu1 %v569_v63  ;;  %947 = vmatprep.mubr.bf16.mxu0 %v572_v0  ;;  %v613_v63 = vunpack.c.h.s8.bf16 %v549_v57 }
  0xaa   : > { %1108 = vmatprep.mubr.bf16.mxu1 %v574_v1 }
  0xb0   : > { %948 = vmatmul.mubr.bf16.gmra.mxu0 %v571_v4 }
  0xb1   : > { %1109 = vmatmul.mubr.bf16.gmra.mxu1 %v573_v5  ;;  %955 = vmatprep.mubr.bf16.mxu0 %v576_v6 }
  0xb2   : > { %1116 = vmatprep.mubr.bf16.mxu1 %v578_v7 }
  0xb8   : > { %956 = vmatmul.mubr.bf16.gmra.mxu0 %v575_v10 }
  0xb9   : > { %1117 = vmatmul.mubr.bf16.gmra.mxu1 %v577_v11  ;;  %963 = vmatprep.mubr.bf16.mxu0 %v580_v12 }
  0xba   : > { %1124 = vmatprep.mubr.bf16.mxu1 %v582_v13 }
  0xc0   : > { %964 = vmatmul.mubr.bf16.gmra.mxu0 %v579_v16 }
  0xc1   : > { %1125 = vmatmul.mubr.bf16.gmra.mxu1 %v581_v17  ;;  %971 = vmatprep.mubr.bf16.mxu0 %v584_v18 }
  0xc2   : > { %1132 = vmatprep.mubr.bf16.mxu1 %v586_v19 }
  0xc8   : > { %972 = vmatmul.mubr.bf16.gmra.mxu0 %v583_v22 }
  0xc9   : > { %1133 = vmatmul.mubr.bf16.gmra.mxu1 %v585_v23  ;;  %979 = vmatprep.mubr.bf16.mxu0 %v588_v24 }
  0xca   : > { %1140 = vmatprep.mubr.bf16.mxu1 %v590_v25 }
  0xd0   : > { %980 = vmatmul.mubr.bf16.gmra.mxu0 %v587_v28 }
  0xd1   : > { %1141 = vmatmul.mubr.bf16.gmra.mxu1 %v589_v29  ;;  %987 = vmatprep.mubr.bf16.mxu0 %v592_v30 }
  0xd2   : > { %1148 = vmatprep.mubr.bf16.mxu1 %v594_v31 }
  0xd8   : > { %988 = vmatmul.mubr.bf16.gmra.mxu0 %v591_v34 }
  0xd9   : > { %1149 = vmatmul.mubr.bf16.gmra.mxu1 %v593_v35  ;;  %995 = vmatprep.mubr.bf16.mxu0 %v596_v36 }
  0xda   : > { %1156 = vmatprep.mubr.bf16.mxu1 %v598_v37 }
  0xe0   : > { %996 = vmatmul.mubr.bf16.gmra.mxu0 %v595_v40 }
  0xe1   : > { %1157 = vmatmul.mubr.bf16.gmra.mxu1 %v597_v41  ;;  %1003 = vmatprep.mubr.bf16.mxu0 %v600_v42 }
  0xe2   : > { %1164 = vmatprep.mubr.bf16.mxu1 %v602_v43 }
  0xe8   : > { %1004 = vmatmul.mubr.bf16.gmra.mxu0 %v599_v46 }
  0xe9   : > { %1165 = vmatmul.mubr.bf16.gmra.mxu1 %v601_v47  ;;  %1011 = vmatprep.mubr.bf16.mxu0 %v604_v48 }
  0xea   : > { %1172 = vmatprep.mubr.bf16.mxu1 %v606_v49 }
  0xf0   : > { %1012 = vmatmul.mubr.bf16.gmra.mxu0 %v603_v52 }
  0xf1   : > { %1173 = vmatmul.mubr.bf16.gmra.mxu1 %v605_v53  ;;  %1019 = vmatprep.mubr.bf16.mxu0 %v608_v54 }
  0xf2   : > { %1180 = vmatprep.mubr.bf16.mxu1 %v610_v55 }
  0xf8   : > { %1020 = vmatmul.mubr.bf16.gmra.mxu0 %v607_v58 }
  0xf9   : > { %1181 = vmatmul.mubr.bf16.gmra.mxu1 %v609_v59  ;;  %1027 = vmatprep.mubr.bf16.mxu0 %v612_v60 }
  0xfa   : > { %1188 = vmatprep.mubr.bf16.mxu1 %v614_v61 }
 0x100   : > { %1028 = vmatmul.mubr.bf16.gmra.mxu0 %v611_v62 }
 0x101   : > { %1189 = vmatmul.mubr.bf16.gmra.mxu1 %v613_v63 }
 0x148   : > { %v3510_v0 = vpop.f32.mrf.mxu0 }
 0x149   : > { %v3622_v1 = vpop.f32.mrf.mxu1 }
 0x14a   : > { %v3511_v2 = vpop.f32.mrf.mxu0 }
 0x14b   : > { %v3512_v3 = vadd.f32 %v3511_v2, %v3510_v0  ;;  %v3623_v4 = vpop.f32.mrf.mxu1 }
 0x14c   : > { %v3624_v5 = vadd.f32 %v3623_v4, %v3622_v1  ;;  %v3513_v6 = vpop.f32.mrf.mxu0 }
 0x14d   : > { %v3625_v7 = vpop.f32.mrf.mxu1 }
 0x14e   : > { %v1071_v8 = vadd.f32 %v3624_v5, %v3512_v3  ;;  %v3514_v9 = vpop.f32.mrf.mxu0 }
 0x14f   : > { %v3515_v10 = vadd.f32 %v3514_v9, %v3513_v6  ;;  %v3626_v11 = vpop.f32.mrf.mxu1 }
 0x150   : > { %v3627_v12 = vadd.f32 %v3626_v11, %v3625_v7  ;;  %v3516_v13 = vpop.f32.mrf.mxu0  ;;  %1229 = vst [vmem:[#allocation2 + $0xb0] sm:$0xff] %v1071_v8 }
 0x151   : > { %v3628_v14 = vpop.f32.mrf.mxu1 }
 0x152   : > { %v1074_v15 = vadd.f32 %v3627_v12, %v3515_v10  ;;  %v3517_v16 = vpop.f32.mrf.mxu0 }
 0x153   : > { %v3518_v17 = vadd.f32 %v3517_v16, %v3516_v13  ;;  %v3629_v18 = vpop.f32.mrf.mxu1 }
 0x154   : > { %v3630_v19 = vadd.f32 %v3629_v18, %v3628_v14  ;;  %v3519_v20 = vpop.f32.mrf.mxu0  ;;  %1230 = vst [vmem:[#allocation2] sm:$0xff] %v1074_v15 }
 0x155   : > { %v3631_v21 = vpop.f32.mrf.mxu1 }
 0x156   : > { %v1079_v22 = vadd.f32 %v3630_v19, %v3518_v17  ;;  %v3520_v23 = vpop.f32.mrf.mxu0 }
 0x157   : > { %v3521_v24 = vadd.f32 %v3520_v23, %v3519_v20  ;;  %v3632_v25 = vpop.f32.mrf.mxu1 }
 0x158   : > { %v3633_v26 = vadd.f32 %v3632_v25, %v3631_v21  ;;  %v3522_v27 = vpop.f32.mrf.mxu0  ;;  %1231 = vst [vmem:[#allocation2 + $0xd8] sm:$0xff] %v1079_v22 }
 0x159   : > { %v3634_v28 = vpop.f32.mrf.mxu1 }
 0x15a   : > { %v1082_v29 = vadd.f32 %v3633_v26, %v3521_v24  ;;  %v3523_v30 = vpop.f32.mrf.mxu0 }
 0x15b   : > { %v3524_v31 = vadd.f32 %v3523_v30, %v3522_v27  ;;  %v3635_v32 = vpop.f32.mrf.mxu1 }
 0x15c   : > { %v3636_v33 = vadd.f32 %v3635_v32, %v3634_v28  ;;  %v3525_v34 = vpop.f32.mrf.mxu0  ;;  %1232 = vst [vmem:[#allocation2 + $0x18] sm:$0xff] %v1082_v29 }
 0x15d   : > { %v3637_v35 = vpop.f32.mrf.mxu1 }
 0x15e   : > { %v1087_v36 = vadd.f32 %v3636_v33, %v3524_v31  ;;  %v3526_v37 = vpop.f32.mrf.mxu0 }
 0x15f   : > { %v3527_v38 = vadd.f32 %v3526_v37, %v3525_v34  ;;  %v3638_v39 = vpop.f32.mrf.mxu1 }
 0x160   : > { %v3639_v40 = vadd.f32 %v3638_v39, %v3637_v35  ;;  %v3528_v41 = vpop.f32.mrf.mxu0  ;;  %1233 = vst [vmem:[#allocation2 + $0x50] sm:$0xff] %v1087_v36 }
 0x161   : > { %v3640_v42 = vpop.f32.mrf.mxu1 }
 0x162   : > { %v1090_v43 = vadd.f32 %v3639_v40, %v3527_v38  ;;  %v3529_v44 = vpop.f32.mrf.mxu0 }
 0x163   : > { %v3530_v45 = vadd.f32 %v3529_v44, %v3528_v41  ;;  %v3641_v46 = vpop.f32.mrf.mxu1 }
 0x164   : > { %v3642_v47 = vadd.f32 %v3641_v46, %v3640_v42  ;;  %v3531_v48 = vpop.f32.mrf.mxu0  ;;  %1234 = vst [vmem:[#allocation2 + $0x68] sm:$0xff] %v1090_v43 }
 0x165   : > { %v3643_v49 = vpop.f32.mrf.mxu1 }
 0x166   : > { %v1095_v50 = vadd.f32 %v3642_v47, %v3530_v45  ;;  %v3532_v51 = vpop.f32.mrf.mxu0 }
 0x167   : > { %v3533_v52 = vadd.f32 %v3532_v51, %v3531_v48  ;;  %v3644_v53 = vpop.f32.mrf.mxu1 }
 0x168   : > { %v3645_v54 = vadd.f32 %v3644_v53, %v3643_v49  ;;  %v3534_v55 = vpop.f32.mrf.mxu0  ;;  %1235 = vst [vmem:[#allocation2 + $0x30] sm:$0xff] %v1095_v50 }
 0x169   : > { %v3646_v56 = vpop.f32.mrf.mxu1 }
 0x16a   : > { %v1098_v57 = vadd.f32 %v3645_v54, %v3533_v52  ;;  %v3535_v58 = vpop.f32.mrf.mxu0 }
 0x16b   : > { %v3536_v59 = vadd.f32 %v3535_v58, %v3534_v55  ;;  %v3647_v60 = vpop.f32.mrf.mxu1 }
 0x16c   : > { %v3648_v61 = vadd.f32 %v3647_v60, %v3646_v56  ;;  %v3537_v62 = vpop.f32.mrf.mxu0  ;;  %1236 = vst [vmem:[#allocation2 + $0x48] sm:$0xff] %v1098_v57 }
 0x16d   : > { %v3649_v63 = vpop.f32.mrf.mxu1 }
 0x16e   : > { %v1103_v0 = vadd.f32 %v3648_v61, %v3536_v59  ;;  %v3538_v1 = vpop.f32.mrf.mxu0 }
 0x16f   : > { %v3539_v2 = vadd.f32 %v3538_v1, %v3537_v62  ;;  %v3650_v3 = vpop.f32.mrf.mxu1 }
 0x170   : > { %v3651_v4 = vadd.f32 %v3650_v3, %v3649_v63  ;;  %v3540_v5 = vpop.f32.mrf.mxu0  ;;  %1237 = vst [vmem:[#allocation2 + $0x80] sm:$0xff] %v1103_v0 }
 0x171   : > { %v3652_v6 = vpop.f32.mrf.mxu1 }
 0x172   : > { %v1106_v7 = vadd.f32 %v3651_v4, %v3539_v2  ;;  %v3541_v8 = vpop.f32.mrf.mxu0 }
 0x173   : > { %v3542_v9 = vadd.f32 %v3541_v8, %v3540_v5  ;;  %v3653_v10 = vpop.f32.mrf.mxu1 }
 0x174   : > { %v3654_v11 = vadd.f32 %v3653_v10, %v3652_v6  ;;  %v3543_v12 = vpop.f32.mrf.mxu0  ;;  %1238 = vst [vmem:[#allocation2 + $0x88] sm:$0xff] %v1106_v7 }
 0x175   : > { %v3655_v13 = vpop.f32.mrf.mxu1 }
 0x176   : > { %v1111_v14 = vadd.f32 %v3654_v11, %v3542_v9  ;;  %v3544_v15 = vpop.f32.mrf.mxu0 }
 0x177   : > { %v3545_v16 = vadd.f32 %v3544_v15, %v3543_v12  ;;  %v3656_v17 = vpop.f32.mrf.mxu1 }
 0x178   : > { %v3657_v18 = vadd.f32 %v3656_v17, %v3655_v13  ;;  %v3546_v19 = vpop.f32.mrf.mxu0  ;;  %1239 = vst [vmem:[#allocation2 + $0xe8] sm:$0xff] %v1111_v14 }
 0x179   : > { %v3658_v20 = vpop.f32.mrf.mxu1 }
 0x17a   : > { %v1114_v21 = vadd.f32 %v3657_v18, %v3545_v16  ;;  %v3547_v22 = vpop.f32.mrf.mxu0 }
 0x17b   : > { %v3548_v23 = vadd.f32 %v3547_v22, %v3546_v19  ;;  %v3659_v24 = vpop.f32.mrf.mxu1 }
 0x17c   : > { %v3660_v25 = vadd.f32 %v3659_v24, %v3658_v20  ;;  %v3549_v26 = vpop.f32.mrf.mxu0  ;;  %1240 = vst [vmem:[#allocation2 + $0xb8] sm:$0xff] %v1114_v21 }
 0x17d   : > { %v3661_v27 = vpop.f32.mrf.mxu1 }
 0x17e   : > { %v1119_v28 = vadd.f32 %v3660_v25, %v3548_v23  ;;  %v3550_v29 = vpop.f32.mrf.mxu0 }
 0x17f   : > { %v3551_v30 = vadd.f32 %v3550_v29, %v3549_v26  ;;  %v3662_v31 = vpop.f32.mrf.mxu1 }
 0x180   : > { %v3663_v32 = vadd.f32 %v3662_v31, %v3661_v27  ;;  %v3552_v33 = vpop.f32.mrf.mxu0  ;;  %1241 = vst [vmem:[#allocation2 + $0x60] sm:$0xff] %v1119_v28 }
 0x181   : > { %v3664_v34 = vpop.f32.mrf.mxu1 }
 0x182   : > { %v1122_v35 = vadd.f32 %v3663_v32, %v3551_v30  ;;  %v3553_v36 = vpop.f32.mrf.mxu0 }
 0x183   : > { %v3554_v37 = vadd.f32 %v3553_v36, %v3552_v33  ;;  %v3665_v38 = vpop.f32.mrf.mxu1 }
 0x184   : > { %v3666_v39 = vadd.f32 %v3665_v38, %v3664_v34  ;;  %v3555_v40 = vpop.f32.mrf.mxu0  ;;  %1242 = vst [vmem:[#allocation2 + $0xf0] sm:$0xff] %v1122_v35 }
 0x185   : > { %v3667_v41 = vpop.f32.mrf.mxu1 }
 0x186   : > { %v1127_v42 = vadd.f32 %v3666_v39, %v3554_v37  ;;  %v3556_v43 = vpop.f32.mrf.mxu0 }
 0x187   : > { %v3557_v44 = vadd.f32 %v3556_v43, %v3555_v40  ;;  %v3668_v45 = vpop.f32.mrf.mxu1 }
 0x188   : > { %v3669_v46 = vadd.f32 %v3668_v45, %v3667_v41  ;;  %v3558_v47 = vpop.f32.mrf.mxu0  ;;  %1243 = vst [vmem:[#allocation2 + $0x8] sm:$0xff] %v1127_v42 }
 0x189   : > { %v3670_v48 = vpop.f32.mrf.mxu1 }
 0x18a   : > { %v1130_v49 = vadd.f32 %v3669_v46, %v3557_v44  ;;  %v3559_v50 = vpop.f32.mrf.mxu0 }
 0x18b   : > { %v3560_v51 = vadd.f32 %v3559_v50, %v3558_v47  ;;  %v3671_v52 = vpop.f32.mrf.mxu1 }
 0x18c   : > { %v3672_v53 = vadd.f32 %v3671_v52, %v3670_v48  ;;  %v3561_v54 = vpop.f32.mrf.mxu0  ;;  %1244 = vst [vmem:[#allocation2 + $0x78] sm:$0xff] %v1130_v49 }
 0x18d   : > { %v3673_v55 = vpop.f32.mrf.mxu1 }
 0x18e   : > { %v1135_v56 = vadd.f32 %v3672_v53, %v3560_v51  ;;  %v3562_v57 = vpop.f32.mrf.mxu0 }
 0x18f   : > { %v3563_v58 = vadd.f32 %v3562_v57, %v3561_v54  ;;  %v3674_v59 = vpop.f32.mrf.mxu1 }
 0x190   : > { %v3675_v60 = vadd.f32 %v3674_v59, %v3673_v55  ;;  %v3564_v61 = vpop.f32.mrf.mxu0  ;;  %1245 = vst [vmem:[#allocation2 + $0x38] sm:$0xff] %v1135_v56 }
 0x191   : > { %v3676_v62 = vpop.f32.mrf.mxu1 }
 0x192   : > { %v1138_v63 = vadd.f32 %v3675_v60, %v3563_v58  ;;  %v3565_v0 = vpop.f32.mrf.mxu0 }
 0x193   : > { %v3566_v1 = vadd.f32 %v3565_v0, %v3564_v61  ;;  %v3677_v2 = vpop.f32.mrf.mxu1 }
 0x194   : > { %v3678_v3 = vadd.f32 %v3677_v2, %v3676_v62  ;;  %v3567_v4 = vpop.f32.mrf.mxu0  ;;  %1246 = vst [vmem:[#allocation2 + $0x58] sm:$0xff] %v1138_v63 }
 0x195   : > { %v3679_v5 = vpop.f32.mrf.mxu1 }
 0x196   : > { %v1143_v6 = vadd.f32 %v3678_v3, %v3566_v1  ;;  %v3568_v7 = vpop.f32.mrf.mxu0 }
 0x197   : > { %v3569_v8 = vadd.f32 %v3568_v7, %v3567_v4  ;;  %v3680_v9 = vpop.f32.mrf.mxu1 }
 0x198   : > { %v3681_v10 = vadd.f32 %v3680_v9, %v3679_v5  ;;  %v3570_v11 = vpop.f32.mrf.mxu0  ;;  %1247 = vst [vmem:[#allocation2 + $0x40] sm:$0xff] %v1143_v6 }
 0x199   : > { %v3682_v12 = vpop.f32.mrf.mxu1 }
 0x19a   : > { %v1146_v13 = vadd.f32 %v3681_v10, %v3569_v8  ;;  %v3571_v14 = vpop.f32.mrf.mxu0 }
 0x19b   : > { %v3572_v15 = vadd.f32 %v3571_v14, %v3570_v11  ;;  %v3683_v16 = vpop.f32.mrf.mxu1 }
 0x19c   : > { %v3684_v17 = vadd.f32 %v3683_v16, %v3682_v12  ;;  %v3573_v18 = vpop.f32.mrf.mxu0  ;;  %1248 = vst [vmem:[#allocation2 + $0xc8] sm:$0xff] %v1146_v13 }
 0x19d   : > { %v3685_v19 = vpop.f32.mrf.mxu1 }
 0x19e   : > { %v1151_v20 = vadd.f32 %v3684_v17, %v3572_v15  ;;  %v3574_v21 = vpop.f32.mrf.mxu0 }
 0x19f   : > { %v3575_v22 = vadd.f32 %v3574_v21, %v3573_v18  ;;  %v3686_v23 = vpop.f32.mrf.mxu1 }
 0x1a0   : > { %v3687_v24 = vadd.f32 %v3686_v23, %v3685_v19  ;;  %v3576_v25 = vpop.f32.mrf.mxu0  ;;  %1249 = vst [vmem:[#allocation2 + $0xe0] sm:$0xff] %v1151_v20 }
 0x1a1   : > { %v3688_v26 = vpop.f32.mrf.mxu1 }
 0x1a2   : > { %v1154_v27 = vadd.f32 %v3687_v24, %v3575_v22  ;;  %v3577_v28 = vpop.f32.mrf.mxu0 }
 0x1a3   : > { %v3578_v29 = vadd.f32 %v3577_v28, %v3576_v25  ;;  %v3689_v30 = vpop.f32.mrf.mxu1 }
 0x1a4   : > { %v3690_v31 = vadd.f32 %v3689_v30, %v3688_v26  ;;  %v3579_v32 = vpop.f32.mrf.mxu0  ;;  %1250 = vst [vmem:[#allocation2 + $0x90] sm:$0xff] %v1154_v27 }
 0x1a5   : > { %v3691_v33 = vpop.f32.mrf.mxu1 }
 0x1a6   : > { %v1159_v34 = vadd.f32 %v3690_v31, %v3578_v29  ;;  %v3580_v35 = vpop.f32.mrf.mxu0 }
 0x1a7   : > { %v3581_v36 = vadd.f32 %v3580_v35, %v3579_v32  ;;  %v3692_v37 = vpop.f32.mrf.mxu1  ;;  %v1282_v32 = vld [vmem:[%s4461_s20 + $0x80] sm:$0xff] (%p396_p8)  ;;  %v1283_v35 = vld [vmem:[%s4461_s20 + $0x88] sm:$0xff] (%p396_p8) }
 0x1a8   : > { %v3693_v38 = vadd.f32 %v3692_v37, %v3691_v33  ;;  %v3582_v39 = vpop.f32.mrf.mxu0  ;;  %1251 = vst [vmem:[#allocation2 + $0x70] sm:$0xff] %v1159_v34  ;;  %v1266_v33 = vld [vmem:[%s4461_s20] sm:$0xff] (%p396_p8)  ;;  %v4264_v34 = vmov (%p396_p8), 0   ;;  %v1269_v37 = vld [vmem:[%s4461_s20 + $0x18] sm:$0xff] (%p396_p8) }
 0x1a9   : > { %v3694_v40 = vpop.f32.mrf.mxu1  ;;  %3949 = vset.pattern.permute.xlu1 (%p396_p8), %v4264_v34  ;;  %3948 = vset.pattern.permute.xlu0 (%p396_p8), %v4264_v34  ;;  %v1605_v34 = vld [vmem:[%s4466_s12 + $0x60] sm:$0xff] (%p396_p8) }
 0x1aa   : > { %v1162_v41 = vadd.f32 %v3693_v38, %v3581_v36  ;;  %v3583_v42 = vpop.f32.mrf.mxu0  ;;  %1412 = vperm.xlu1 (%p396_p8), %3949, %v1282_v32   ;;  %1332 = vperm.xlu0 (%p396_p8), %3948, %v1266_v33   ;;  %v1267_v36 = vld [vmem:[%s4461_s20 + $0x8] sm:$0xff] (%p396_p8)  ;;  %v1268_v38 = vld [vmem:[%s4461_s20 + $0x10] sm:$0xff] (%p396_p8) }
 0x1ab   : > { %v3584_v43 = vadd.f32 %v3583_v42, %v3582_v39  ;;  %v3695_v44 = vpop.f32.mrf.mxu1  ;;  %v1285_v39 = vld [vmem:[%s4461_s20 + $0x98] sm:$0xff] (%p396_p8)  ;;  %v1593_v42 = vld [vmem:[%s4466_s12] sm:$0xff] (%p396_p8)  ;;  %v1296_v32 = vld [vmem:[%s4461_s20 + $0xf0] sm:$0xff] (%p396_p8) }
 0x1ac   : > { %v3696_v45 = vadd.f32 %v3695_v44, %v3694_v40  ;;  %v3585_v46 = vpop.f32.mrf.mxu0  ;;  %1252 = vst [vmem:[#allocation2 + $0xc0] sm:$0xff] %v1162_v41  ;;  %v1284_v40 = vld [vmem:[%s4461_s20 + $0x90] sm:$0xff] (%p396_p8)  ;;  %v1594_v41 = vld [vmem:[%s4466_s12 + $0x8] sm:$0xff] (%p396_p8)  ;;  %v1609_v44 = vld [vmem:[%s4466_s12 + $0x80] sm:$0xff] (%p396_p8) }
 0x1ad   : > { %v3697_v47 = vpop.f32.mrf.mxu1  ;;  %v1606_v33 = vld [vmem:[%s4466_s12 + $0x68] sm:$0xff] (%p396_p8) }
 0x1ae   : > { %v1167_v48 = vadd.f32 %v3696_v45, %v3584_v43  ;;  %v3586_v49 = vpop.f32.mrf.mxu0  ;;  %1417 = vperm.xlu1 (%p396_p8), %3949, %v1283_v35   ;;  %1337 = vperm.xlu0 (%p396_p8), %3948, %v1267_v36   ;;  %v1610_v43 = vld [vmem:[%s4466_s12 + $0x88] sm:$0xff] (%p396_p8)  ;;  %v3950_v45 = vld [vmem:[%s4426_s29 + $0x38] sm:$0xff] (%p396_p8)   ;;  %v1621_v36 = vld [vmem:[%s4466_s12 + $0xe0] sm:$0xff] (%p396_p8) }
 0x1af   : > { %v3587_v50 = vadd.f32 %v3586_v49, %v3585_v46  ;;  %v3698_v51 = vpop.f32.mrf.mxu1  ;;  %v1596_v46 = vld [vmem:[%s4466_s12 + $0x18] sm:$0xff] (%p396_p8)  ;;  %3742 = vmatprep.subr.bf16.mxu0 (%p396_p8), %v3950_v45  ;;  %3790 = vmatprep.subr.bf16.mxu1 (%p396_p8), %v3950_v45  ;;  %v3952_v49 = vld [vmem:[%s4426_s29 + $0x28] sm:$0xff] (%p396_p8)  }
 0x1b0   : > { %v3699_v52 = vadd.f32 %v3698_v51, %v3697_v47  ;;  %v3588_v53 = vpop.f32.mrf.mxu0  ;;  %1253 = vst [vmem:[#allocation2 + $0xa8] sm:$0xff] %v1167_v48  ;;  %v1595_v47 = vld [vmem:[%s4466_s12 + $0x10] sm:$0xff] (%p396_p8)  ;;  %3743 = vmatpush3.bf16.msra.mxu0 (%p396_p8), %v3950_v45  ;;  %3798 = vmatpush3.bf16.msra.mxu1 (%p396_p8), %v3950_v45  ;;  %v1622_v35 = vld [vmem:[%s4466_s12 + $0xe8] sm:$0xff] (%p396_p8)  ;;  %v1299_v45 = vld [vmem:[#allocation2] sm:$0xff] (%p396_p8) }
 0x1b1   : > { %v3700_v54 = vpop.f32.mrf.mxu1  ;;  %v3951_v48 = vld [vmem:[%s4426_s29 + $0x30] sm:$0xff] (%p396_p8)  }
 0x1b2   : > { %v1170_v55 = vadd.f32 %v3699_v52, %v3587_v50  ;;  %v3589_v56 = vpop.f32.mrf.mxu0  ;;  %1347 = vperm.xlu1 (%p396_p8), %3949, %v1269_v37   ;;  %1342 = vperm.xlu0 (%p396_p8), %3948, %v1268_v38   ;;  %v1612_v50 = vld [vmem:[%s4466_s12 + $0x98] sm:$0xff] (%p396_p8)  ;;  %v1611_v51 = vld [vmem:[%s4466_s12 + $0x90] sm:$0xff] (%p396_p8)  ;;  %v3953_v52 = vld [vmem:[%s4426_s29 + $0x20] sm:$0xff] (%p396_p8)  }
 0x1b3   : > { %v3590_v57 = vadd.f32 %v3589_v56, %v3588_v53  ;;  %v3701_v58 = vpop.f32.mrf.mxu1  ;;  %3744 = vmatprep.subr.bf16.mxu0 (%p396_p8), %v3951_v48  ;;  %3791 = vmatprep.subr.bf16.mxu1 (%p396_p8), %v3951_v48  ;;  %v1271_v53 = vld [vmem:[%s4461_s20 + $0x28] sm:$0xff] (%p396_p8)  ;;  %v1608_v37 = vld [vmem:[%s4466_s12 + $0x78] sm:$0xff] (%p396_p8)  ;;  %v1607_v38 = vld [vmem:[%s4466_s12 + $0x70] sm:$0xff] (%p396_p8) }
 0x1b4   : > { %v3702_v59 = vadd.f32 %v3701_v58, %v3700_v54  ;;  %v3591_v60 = vpop.f32.mrf.mxu0  ;;  %1254 = vst [vmem:[#allocation2 + $0xd0] sm:$0xff] %v1170_v55  ;;  %3745 = vmatpush3.bf16.msra.mxu0 (%p396_p8), %v3951_v48  ;;  %3799 = vmatpush3.bf16.msra.mxu1 (%p396_p8), %v3951_v48  ;;  %v1270_v54 = vld [vmem:[%s4461_s20 + $0x20] sm:$0xff] (%p396_p8)  ;;  %v3954_v55 = vld [vmem:[%s4426_s29 + $0x18] sm:$0xff] (%p396_p8)   ;;  %v1287_v56 = vld [vmem:[%s4461_s20 + $0xa8] sm:$0xff] (%p396_p8) }
 0x1b5   : > { %v3703_v61 = vpop.f32.mrf.mxu1  ;;  %3746 = vmatprep.subr.bf16.mxu0 (%p396_p8), %v3952_v49  ;;  %3792 = vmatprep.subr.bf16.mxu1 (%p396_p8), %v3952_v49  ;;  %v3955_v58 = vld [vmem:[%s4426_s29 + $0x10] sm:$0xff] (%p396_p8)  }
 0x1b6   : > { %v1175_v62 = vadd.f32 %v3702_v59, %v3590_v57  ;;  %v3592_v63 = vpop.f32.mrf.mxu0  ;;  %1427 = vperm.xlu1 (%p396_p8), %3949, %v1285_v39   ;;  %1422 = vperm.xlu0 (%p396_p8), %3948, %v1284_v40   ;;  %v1286_v57 = vld [vmem:[%s4461_s20 + $0xa0] sm:$0xff] (%p396_p8)  ;;  %v1273_v59 = vld [vmem:[%s4461_s20 + $0x38] sm:$0xff] (%p396_p8)  ;;  %v1623_v40 = vld [vmem:[%s4466_s12 + $0xf0] sm:$0xff] (%p396_p8) }
 0x1b7   : > { %v3593_v0 = vadd.f32 %v3592_v63, %v3591_v60  ;;  %v3704_v1 = vpop.f32.mrf.mxu1  ;;  %v1272_v60 = vld [vmem:[%s4461_s20 + $0x30] sm:$0xff] (%p396_p8)  ;;  %v1624_v39 = vld [vmem:[%s4466_s12 + $0xf8] sm:$0xff] (%p396_p8) }
 0x1b8   : > { %v3705_v2 = vadd.f32 %v3704_v1, %v3703_v61  ;;  %v3594_v3 = vpop.f32.mrf.mxu0  ;;  %1255 = vst [vmem:[#allocation2 + $0x10] sm:$0xff] %v1175_v62  ;;  %3747 = vmatpush3.bf16.msra.mxu0 (%p396_p8), %v3952_v49  ;;  %3800 = vmatpush3.bf16.msra.mxu1 (%p396_p8), %v3952_v49  ;;  %v3956_v61 = vld [vmem:[%s4426_s29 + $0x8] sm:$0xff] (%p396_p8)   ;;  %v1289_v62 = vld [vmem:[%s4461_s20 + $0xb8] sm:$0xff] (%p396_p8)  ;;  %v1288_v63 = vld [vmem:[%s4461_s20 + $0xb0] sm:$0xff] (%p396_p8) }
 0x1b9   : > { %v3706_v4 = vpop.f32.mrf.mxu1  ;;  %3748 = vmatprep.subr.bf16.mxu0 (%p396_p8), %v3953_v52  ;;  %3793 = vmatprep.subr.bf16.mxu1 (%p396_p8), %v3953_v52  ;;  %v1598_v1 = vld [vmem:[%s4466_s12 + $0x28] sm:$0xff] (%p396_p8)  ;;  %v1315_v49 = vld [vmem:[#allocation2 + $0x58] sm:$0xff] (%p396_p8) }
 0x1ba   : > { %v1178_v5 = vadd.f32 %v3705_v2, %v3593_v0  ;;  %v3595_v6 = vpop.f32.mrf.mxu0  ;;  %1632 = vperm.xlu1 (%p396_p8), %3949, %v1594_v41   ;;  %1627 = vperm.xlu0 (%p396_p8), %3948, %v1593_v42   ;;  %v3957_v0 = vld [vmem:[%s4426_s29] sm:$0xff] (%p396_p8)   ;;  %s2058_s29 = sadd.s32 (%p396_p8), 1, %s4246_s8 }
 0x1bb   : > { %v3596_v7 = vadd.f32 %v3595_v6, %v3594_v3  ;;  %v3707_v8 = vpop.f32.mrf.mxu1  ;;  %v1597_v2 = vld [vmem:[%s4466_s12 + $0x20] sm:$0xff] (%p396_p8)  ;;  %v1614_v3 = vld [vmem:[%s4466_s12 + $0xa8] sm:$0xff] (%p396_p8)  ;;  %v1599_v6 = vld [vmem:[%s4466_s12 + $0x30] sm:$0xff] (%p396_p8)  ;;  %s2060_s13 = ssub.s32 (%p396_p8), 0, %s2058_s29  ;;  %p2059_p6 = scmp.lt.s32.totalorder (%p396_p8), %s2058_s29, 0 }
 0x1bc   : > { %v3708_v9 = vadd.f32 %v3707_v8, %v3706_v4  ;;  %v3597_v10 = vpop.f32.mrf.mxu0  ;;  %1256 = vst [vmem:[#allocation2 + $0x28] sm:$0xff] %v1178_v5  ;;  %3749 = vmatpush3.bf16.msra.mxu0 (%p396_p8), %v3953_v52  ;;  %3801 = vmatpush3.bf16.msra.mxu1 (%p396_p8), %v3953_v52  ;;  %v1613_v4 = vld [vmem:[%s4466_s12 + $0xa0] sm:$0xff] (%p396_p8)  ;;  %v1600_v5 = vld [vmem:[%s4466_s12 + $0x38] sm:$0xff] (%p396_p8)  ;;  %v1615_v8 = vld [vmem:[%s4466_s12 + $0xb0] sm:$0xff] (%p396_p8) }
 0x1bd   : > { %v3709_v11 = vpop.f32.mrf.mxu1  ;;  %3750 = vmatprep.subr.bf16.mxu0 (%p396_p8), %v3954_v55  ;;  %3794 = vmatprep.subr.bf16.mxu1 (%p396_p8), %v3954_v55 }
 0x1be   : > { %v1183_v12 = vadd.f32 %v3708_v9, %v3596_v7  ;;  %v3598_v13 = vpop.f32.mrf.mxu0  ;;  %1712 = vperm.xlu1 (%p396_p8), %3949, %v1610_v43   ;;  %1707 = vperm.xlu0 (%p396_p8), %3948, %v1609_v44   ;;  %v1616_v7 = vld [vmem:[%s4466_s12 + $0xb8] sm:$0xff] (%p396_p8)  ;;  %v1275_v9 = vld [vmem:[%s4461_s20 + $0x48] sm:$0xff] (%p396_p8)  ;;  %v1298_v43 = vld [vmem:[#allocation2 + $0xb0] sm:$0xff] (%p396_p8) }
 0x1bf   : > { %v3599_v14 = vadd.f32 %v3598_v13, %v3597_v10  ;;  %v3710_v15 = vpop.f32.mrf.mxu1  ;;  %v1274_v10 = vld [vmem:[%s4461_s20 + $0x40] sm:$0xff] (%p396_p8)  ;;  %v1277_v13 = vld [vmem:[%s4461_s20 + $0x58] sm:$0xff] (%p396_p8) }
 0x1c0   : > { %v3711_v16 = vadd.f32 %v3710_v15, %v3709_v11  ;;  %v3600_v17 = vpop.f32.mrf.mxu0  ;;  %1257 = vst [vmem:[#allocation2 + $0xa0] sm:$0xff] %v1183_v12  ;;  %3751 = vmatpush3.bf16.msra.mxu0 (%p396_p8), %v3954_v55  ;;  %3802 = vmatpush3.bf16.msra.mxu1 (%p396_p8), %v3954_v55  ;;  %v1291_v11 = vld [vmem:[%s4461_s20 + $0xc8] sm:$0xff] (%p396_p8)  ;;  %v1290_v12 = vld [vmem:[%s4461_s20 + $0xc0] sm:$0xff] (%p396_p8)  ;;  %v1293_v15 = vld [vmem:[%s4461_s20 + $0xd8] sm:$0xff] (%p396_p8) }
 0x1c1   : > { %v3712_v18 = vpop.f32.mrf.mxu1  ;;  %3752 = vmatprep.subr.bf16.mxu0 (%p396_p8), %v3955_v58  ;;  %3795 = vmatprep.subr.bf16.mxu1 (%p396_p8), %v3955_v58 }
 0x1c2   : > { %v1186_v19 = vadd.f32 %v3711_v16, %v3599_v14  ;;  %v3601_v20 = vpop.f32.mrf.mxu0  ;;  %1642 = vperm.xlu1 (%p396_p8), %3949, %v1596_v46   ;;  %1637 = vperm.xlu0 (%p396_p8), %3948, %v1595_v47   ;;  %v1276_v14 = vld [vmem:[%s4461_s20 + $0x50] sm:$0xff] (%p396_p8)  ;;  %v1314_v47 = vld [vmem:[#allocation2 + $0x38] sm:$0xff] (%p396_p8) }
 0x1c3   : > { %v3602_v21 = vadd.f32 %v3601_v20, %v3600_v17  ;;  %v3713_v22 = vpop.f32.mrf.mxu1  ;;  %v1292_v16 = vld [vmem:[%s4461_s20 + $0xd0] sm:$0xff] (%p396_p8)  ;;  %v1602_v17 = vld [vmem:[%s4466_s12 + $0x48] sm:$0xff] (%p396_p8)  ;;  %v1617_v20 = vld [vmem:[%s4466_s12 + $0xc0] sm:$0xff] (%p396_p8) }
 0x1c4   : > { %v3714_v23 = vadd.f32 %v3713_v22, %v3712_v18  ;;  %v3603_v24 = vpop.f32.mrf.mxu0  ;;  %1258 = vst [vmem:[#allocation2 + $0xf8] sm:$0xff] %v1186_v19  ;;  %3753 = vmatpush3.bf16.msra.mxu0 (%p396_p8), %v3955_v58  ;;  %3803 = vmatpush3.bf16.msra.mxu1 (%p396_p8), %v3955_v58  ;;  %v1601_v18 = vld [vmem:[%s4466_s12 + $0x40] sm:$0xff] (%p396_p8)  ;;  %v1618_v19 = vld [vmem:[%s4466_s12 + $0xc8] sm:$0xff] (%p396_p8)  ;;  %v1603_v22 = vld [vmem:[%s4466_s12 + $0x50] sm:$0xff] (%p396_p8) }
 0x1c5   : > { %v3715_v25 = vpop.f32.mrf.mxu1  ;;  %3754 = vmatprep.subr.bf16.mxu0 (%p396_p8), %v3956_v61  ;;  %3796 = vmatprep.subr.bf16.mxu1 (%p396_p8), %v3956_v61  ;;  %v1301_v58 = vld [vmem:[#allocation2 + $0x18] sm:$0xff] (%p396_p8) }
 0x1c6   : > { %v1191_v26 = vadd.f32 %v3714_v23, %v3602_v21  ;;  %v3604_v27 = vpop.f32.mrf.mxu0  ;;  %1722 = vperm.xlu1 (%p396_p8), %3949, %v1612_v50   ;;  %1717 = vperm.xlu0 (%p396_p8), %3948, %v1611_v51   ;;  %v1604_v21 = vld [vmem:[%s4466_s12 + $0x58] sm:$0xff] (%p396_p8)  ;;  %v4625_v51 = vld [vmem:[%s4456_s23] ss:$0 sm:$0xff] (%p396_p8) }
 0x1c7   : > { %v3605_v28 = vadd.f32 %v3604_v27, %v3603_v24  ;;  %v3716_v29 = vpop.f32.mrf.mxu1  ;;  %v1620_v23 = vld [vmem:[%s4466_s12 + $0xd8] sm:$0xff] (%p396_p8)  ;;  %v1619_v24 = vld [vmem:[%s4466_s12 + $0xd0] sm:$0xff] (%p396_p8)  ;;  %v1295_v27 = vld [vmem:[%s4461_s20 + $0xe8] sm:$0xff] (%p396_p8)  ;;  %s3317_s12 = smin.u32 (%p396_p8), %s2060_s13, %s2058_s29 }
 0x1c8   : > { %v3717_v30 = vadd.f32 %v3716_v29, %v3715_v25  ;;  %1259 = vst [vmem:[#allocation2 + $0x20] sm:$0xff] %v1191_v26  ;;  %1265 = sbr.rel (!%p396_p8) target bundleno = 880 (0x370), region = 65  ;;  %3755 = vmatpush3.bf16.msra.mxu0 (%p396_p8), %v3956_v61  ;;  %3804 = vmatpush3.bf16.msra.mxu1 (%p396_p8), %v3956_v61  ;;  %v1279_v25 = vld [vmem:[%s4461_s20 + $0x68] sm:$0xff] (%p396_p8)  ;;  %v1278_v26 = vld [vmem:[%s4461_s20 + $0x60] sm:$0xff] (%p396_p8)  ;;  %v1281_v29 = vld [vmem:[%s4461_s20 + $0x78] sm:$0xff] (%p396_p8)  ;;  %s2062_s10 = sand.u32 (%p396_p8), 1, %s3317_s12  }
 0x1c9   : > { %3756 = vmatprep.subr.bf16.mxu0 (%p396_p8), %v3957_v0  ;;  %3797 = vmatprep.subr.bf16.mxu1 (%p396_p8), %v3957_v0  ;;  %s2063_s3 = ssub.s32 (%p396_p8), 0, %s2062_s10 }
 0x1ca   : > { %v1194_v31 = vadd.f32 %v3717_v30, %v3605_v28  ;;  %1357 = vperm.xlu1 (%p396_p8), %3949, %v1271_v53   ;;  %1352 = vperm.xlu0 (%p396_p8), %3948, %v1270_v54   ;;  %v1294_v28 = vld [vmem:[%s4461_s20 + $0xe0] sm:$0xff] (%p396_p8)  ;;  %v1280_v30 = vld [vmem:[%s4461_s20 + $0x70] sm:$0xff] (%p396_p8) }
 0x1cc   : > { %1260 = vst [vmem:[#allocation2 + $0x98] sm:$0xff] %v1194_v31  ;;  %3757 = vmatpush3.bf16.msra.mxu0 (%p396_p8), %v3957_v0  ;;  %3805 = vmatpush3.bf16.msra.mxu1 (%p396_p8), %v3957_v0  ;;  %v1297_v31 = vld [vmem:[%s4461_s20 + $0xf8] sm:$0xff] (%p396_p8) }
 0x1cd   : > { %s5080_s3 = smov (!%p2059_p6, %s2063_s3), %s2062_s10 }
 0x1ce   : > { %1437 = vperm.xlu1 %3949, %v1287_v56   ;;  %1432 = vperm.xlu0 %3948, %v1286_v57   ;;  %p3319_p8 = scmp.lt.s32.totalorder %s5080_s3, 0  ;;  %s2069_s22 = sadd.s32 2, %s5080_s3 }
 0x1d0   : > { %s5082_s22 = smov (!%p3319_p8, %s2069_s22), %s5080_s3 }
 0x1d1   : > { %s3320_s0 = sshll.u32 %s5082_s22, 9 }
 0x1d2   : > { %1367 = vperm.xlu1 %3949, %v1273_v59   ;;  %1362 = vperm.xlu0 %3948, %v1272_v60   ;;  %v1300_v59 = vld [vmem:[#allocation2 + $0xd8] sm:$0xff]  ;;  %s2073_s21 = sadd.s32 %s3321_s1, %s3320_s0 }
 0x1d3   : > { %s2202_s15 = sshra.s32 %s2073_s21, 3 }
 0x1d4   : > { %s3354_s17 = sshll.u32 %s2202_s15, 2 }
 0x1d5   : > { %s4661_s26 = scalar_lea.vmem [#allocation3], %s3354_s17 }
 0x1d6   : > { %1447 = vperm.xlu1 %3949, %v1289_v62   ;;  %1442 = vperm.xlu0 %3948, %v1288_v63  }
 0x1da   : > { %1652 = vperm.xlu1 %3949, %v1598_v1   ;;  %1647 = vperm.xlu0 %3948, %v1597_v2  }
 0x1de   : > { %1732 = vperm.xlu1 %3949, %v1614_v3   ;;  %1727 = vperm.xlu0 %3948, %v1613_v4   ;;  %v1317_v4 = vld [vmem:[#allocation2 + $0xc8] sm:$0xff] }
 0x1e2   : > { %1662 = vperm.xlu1 %3949, %v1600_v5   ;;  %1657 = vperm.xlu0 %3948, %v1599_v6   ;;  %v1316_v5 = vld [vmem:[#allocation2 + $0x40] sm:$0xff] }
 0x1e6   : > { %1742 = vperm.xlu1 %3949, %v1616_v7   ;;  %1737 = vperm.xlu0 %3948, %v1615_v8  }
 0x1ea   : > { %1377 = vperm.xlu1 %3949, %v1275_v9   ;;  %1372 = vperm.xlu0 %3948, %v1274_v10  }
 0x1ee   : > { %1457 = vperm.xlu1 %3949, %v1291_v11   ;;  %1452 = vperm.xlu0 %3948, %v1290_v12  }
 0x1f2   : > { %1387 = vperm.xlu1 %3949, %v1277_v13   ;;  %1382 = vperm.xlu0 %3948, %v1276_v14  }
 0x1f6   : > { %1467 = vperm.xlu1 %3949, %v1293_v15   ;;  %1462 = vperm.xlu0 %3948, %v1292_v16  }
 0x1fa   : > { %1672 = vperm.xlu1 %3949, %v1602_v17   ;;  %1667 = vperm.xlu0 %3948, %v1601_v18  }
 0x1fe   : > { %1752 = vperm.xlu1 %3949, %v1618_v19   ;;  %1747 = vperm.xlu0 %3948, %v1617_v20  }
 0x202   : > { %1682 = vperm.xlu1 %3949, %v1604_v21   ;;  %1677 = vperm.xlu0 %3948, %v1603_v22  }
 0x206   : > { %1762 = vperm.xlu1 %3949, %v1620_v23   ;;  %1757 = vperm.xlu0 %3948, %v1619_v24  }
 0x20a   : > { %1397 = vperm.xlu1 %3949, %v1279_v25   ;;  %1392 = vperm.xlu0 %3948, %v1278_v26  }
 0x20e   : > { %1477 = vperm.xlu1 %3949, %v1295_v27   ;;  %1472 = vperm.xlu0 %3948, %v1294_v28  }
 0x212   : > { %1407 = vperm.xlu1 %3949, %v1281_v29   ;;  %1402 = vperm.xlu0 %3948, %v1280_v30  }
 0x216   : > { %1487 = vperm.xlu1 %3949, %v1297_v31   ;;  %1482 = vperm.xlu0 %3948, %v1296_v32  }
 0x21a   : > { %1692 = vperm.xlu1 %3949, %v1606_v33   ;;  %1687 = vperm.xlu0 %3948, %v1605_v34  }
 0x21e   : > { %1772 = vperm.xlu1 %3949, %v1622_v35   ;;  %1767 = vperm.xlu0 %3948, %v1621_v36  }
 0x222   : > { %1702 = vperm.xlu1 %3949, %v1608_v37   ;;  %1697 = vperm.xlu0 %3948, %v1607_v38  }
 0x225   : > { %v1413_v41 = vpop.permute.xlu1 %1412  ;;  %v1333_v42 = vpop.permute.xlu0 %1332 }
 0x226   : > { %1782 = vperm.xlu1 %3949, %v1624_v39   ;;  %1777 = vperm.xlu0 %3948, %v1623_v40   ;;  %v1490_v48 = vmul.f32 %v1333_v42, %v1298_v43  ;;  %v1506_v54 = vmul.f32 %v1413_v41, %v1314_v47  ;;  %v1303_v40 = vld [vmem:[#allocation2 + $0x68] sm:$0xff]  ;;  %v1302_v41 = vld [vmem:[#allocation2 + $0x50] sm:$0xff]  ;;  %v1318_v47 = vld [vmem:[#allocation2 + $0xe0] sm:$0xff] }
 0x228   : > { %v1529_v56 = vadd.f32 %v4625_v51, %v1490_v48  ;;  %v1545_v62 = vadd.f32 %v4625_v51, %v1506_v54 }
 0x229   : > { %v1418_v44 = vpop.permute.xlu1 %1417  ;;  %v1338_v46 = vpop.permute.xlu0 %1337 }
 0x22a   : > { %v1491_v50 = vmul.f32 %v1338_v46, %v1299_v45  ;;  %v1507_v55 = vmul.f32 %v1418_v44, %v1315_v49  ;;  %v1561_v3 = vmax.f32 %v1529_v56, 0.0  ;;  %v1577_v12 = vmax.f32 %v1545_v62, 0.0  ;;  %v1319_v46 = vld [vmem:[#allocation2 + $0x90] sm:$0xff] }
 0x22b   : > { %v1304_v56 = vld [vmem:[#allocation2 + $0x30] sm:$0xff] }
 0x22c   : > { %v1530_v57 = vadd.f32 %v4625_v51, %v1491_v50  ;;  %v1546_v63 = vadd.f32 %v4625_v51, %v1507_v55  ;;  %v1305_v55 = vld [vmem:[#allocation2 + $0x48] sm:$0xff] }
 0x22d   : > { %v1348_v52 = vpop.permute.xlu1 %1347  ;;  %v1343_v53 = vpop.permute.xlu0 %1342 }
 0x22e   : > { %v1493_v0 = vmul.f32 %v1348_v52, %v1301_v58  ;;  %v1492_v1 = vmul.f32 %v1343_v53, %v1300_v59  ;;  %v1562_v2 = vmax.f32 %v1530_v57, 0.0  ;;  %v1578_v11 = vmax.f32 %v1546_v63, 0.0 }
 0x230   : > { %v1532_v10 = vadd.f32 %v4625_v51, %v1493_v0  ;;  %v1531_v13 = vadd.f32 %v4625_v51, %v1492_v1  ;;  %v1321_v1 = vld [vmem:[#allocation2 + $0xc0] sm:$0xff] }
 0x231   : > { %v1428_v60 = vpop.permute.xlu1 %1427  ;;  %v1423_v61 = vpop.permute.xlu0 %1422 }
 0x232   : > { %v1509_v14 = vmul.f32 %v1428_v60, %v1317_v4  ;;  %v1508_v15 = vmul.f32 %v1423_v61, %v1316_v5  ;;  %v1564_v21 = vmax.f32 %v1532_v10, 0.0  ;;  %v1563_v24 = vmax.f32 %v1531_v13, 0.0 }
 0x234   : > { %v1548_v22 = vadd.f32 %v4625_v51, %v1509_v14  ;;  %v1547_v23 = vadd.f32 %v4625_v51, %v1508_v15 }
 0x235   : > { %v1633_v6 = vpop.permute.xlu1 %1632  ;;  %v1628_v7 = vpop.permute.xlu0 %1627 }
 0x236   : > { %v1786_v8 = vmul.f32 %v1633_v6, %v1562_v2  ;;  %v1785_v9 = vmul.f32 %v1628_v7, %v1561_v3  ;;  %v1580_v31 = vmax.f32 %v1548_v22, 0.0  ;;  %v1579_v32 = vmax.f32 %v1547_v23, 0.0  ;;  %v1320_v2 = vld [vmem:[#allocation2 + $0x70] sm:$0xff] }
 0x238   : > { %v1817_v16 = vpack.c.bf16 %v1786_v8, %v1785_v9 }
 0x239   : > { %v1713_v17 = vpop.permute.xlu1 %1712  ;;  %v1708_v18 = vpop.permute.xlu0 %1707 }
 0x23a   : > { %v1802_v19 = vmul.f32 %v1713_v17, %v1578_v11  ;;  %v1801_v20 = vmul.f32 %v1708_v18, %v1577_v12  ;;  %3758 = vmatprep.mubr.bf16.mxu0 %v1817_v16 }
 0x23c   : > { %v1825_v25 = vpack.c.bf16 %v1802_v19, %v1801_v20 }
 0x23d   : > { %v1643_v26 = vpop.permute.xlu1 %1642  ;;  %v1638_v27 = vpop.permute.xlu0 %1637 }
 0x23e   : > { %v1788_v28 = vmul.f32 %v1643_v26, %v1564_v21  ;;  %v1787_v29 = vmul.f32 %v1638_v27, %v1563_v24  ;;  %3774 = vmatprep.mubr.bf16.mxu1 %v1825_v25 }
 0x240   : > { %v1818_v30 = vpack.c.bf16 %v1788_v28, %v1787_v29 }
 0x241   : > { %v1723_v33 = vpop.permute.xlu1 %1722  ;;  %v1718_v34 = vpop.permute.xlu0 %1717 }
 0x242   : > { %v1804_v35 = vmul.f32 %v1723_v33, %v1580_v31  ;;  %v1803_v36 = vmul.f32 %v1718_v34, %v1579_v32  ;;  %3759 = vmatmul.mubr.bf16.vlgmr.msra.gmra.mxu0 %v1818_v30 }
 0x244   : > { %v1826_v37 = vpack.c.bf16 %v1804_v35, %v1803_v36 }
 0x245   : > { %v1358_v38 = vpop.permute.xlu1 %1357  ;;  %v1353_v39 = vpop.permute.xlu0 %1352 }
 0x246   : > { %3775 = vmatmul.mubr.bf16.vlgmr.msra.gmra.mxu1 %v1826_v37  ;;  %v1495_v44 = vmul.f32 %v1358_v38, %v1303_v40  ;;  %v1494_v45 = vmul.f32 %v1353_v39, %v1302_v41  ;;  %v1307_v37 = vld [vmem:[#allocation2 + $0x88] sm:$0xff]  ;;  %v1306_v38 = vld [vmem:[#allocation2 + $0x80] sm:$0xff] }
 0x248   : > { %v1534_v53 = vadd.f32 %v4625_v51, %v1495_v44  ;;  %v1533_v54 = vadd.f32 %v4625_v51, %v1494_v45  ;;  %v1322_v44 = vld [vmem:[#allocation2 + $0xa8] sm:$0xff] }
 0x249   : > { %v1438_v42 = vpop.permute.xlu1 %1437  ;;  %v1433_v43 = vpop.permute.xlu0 %1432 }
 0x24a   : > { %v1511_v50 = vmul.f32 %v1438_v42, %v1319_v46  ;;  %v1510_v52 = vmul.f32 %v1433_v43, %v1318_v47  ;;  %v1566_v63 = vmax.f32 %v1534_v53, 0.0  ;;  %v1565_v0 = vmax.f32 %v1533_v54, 0.0  ;;  %v1323_v43 = vld [vmem:[#allocation2 + $0xd0] sm:$0xff]  ;;  %v1308_v53 = vld [vmem:[#allocation2 + $0xe8] sm:$0xff] }
 0x24c   : > { %v1550_v59 = vadd.f32 %v4625_v51, %v1511_v50  ;;  %v1549_v60 = vadd.f32 %v4625_v51, %v1510_v52  ;;  %v1309_v52 = vld [vmem:[#allocation2 + $0xb8] sm:$0xff] }
 0x24d   : > { %v1368_v48 = vpop.permute.xlu1 %1367  ;;  %v1363_v49 = vpop.permute.xlu0 %1362 }
 0x24e   : > { %v1497_v61 = vmul.f32 %v1368_v48, %v1305_v55  ;;  %v1496_v62 = vmul.f32 %v1363_v49, %v1304_v56  ;;  %v1582_v8 = vmax.f32 %v1550_v59, 0.0  ;;  %v1581_v9 = vmax.f32 %v1549_v60, 0.0 }
 0x250   : > { %v1536_v7 = vadd.f32 %v4625_v51, %v1497_v61  ;;  %v1535_v10 = vadd.f32 %v4625_v51, %v1496_v62  ;;  %v1325_v62 = vld [vmem:[#allocation2 + $0x28] sm:$0xff] }
 0x251   : > { %v1448_v57 = vpop.permute.xlu1 %1447  ;;  %v1443_v58 = vpop.permute.xlu0 %1442 }
 0x252   : > { %v1513_v11 = vmul.f32 %v1448_v57, %v1321_v1  ;;  %v1512_v12 = vmul.f32 %v1443_v58, %v1320_v2  ;;  %v1568_v18 = vmax.f32 %v1536_v7, 0.0  ;;  %v1567_v22 = vmax.f32 %v1535_v10, 0.0 }
 0x254   : > { %v1552_v19 = vadd.f32 %v4625_v51, %v1513_v11  ;;  %v1551_v20 = vadd.f32 %v4625_v51, %v1512_v12 }
 0x255   : > { %v1653_v3 = vpop.permute.xlu1 %1652  ;;  %v1648_v4 = vpop.permute.xlu0 %1647 }
 0x256   : > { %v1790_v5 = vmul.f32 %v1653_v3, %v1566_v63  ;;  %v1789_v6 = vmul.f32 %v1648_v4, %v1565_v0  ;;  %v1584_v28 = vmax.f32 %v1552_v19, 0.0  ;;  %v1583_v29 = vmax.f32 %v1551_v20, 0.0  ;;  %v1324_v63 = vld [vmem:[#allocation2 + $0x10] sm:$0xff] }
 0x258   : > { %v1819_v13 = vpack.c.bf16 %v1790_v5, %v1789_v6 }
 0x259   : > { %v1733_v14 = vpop.permute.xlu1 %1732  ;;  %v1728_v15 = vpop.permute.xlu0 %1727 }
 0x25a   : > { %v1806_v16 = vmul.f32 %v1733_v14, %v1582_v8  ;;  %v1805_v17 = vmul.f32 %v1728_v15, %v1581_v9  ;;  %3762 = vmatprep.mubr.bf16.mxu0 %v1819_v13 }
 0x25c   : > { %v1827_v21 = vpack.c.bf16 %v1806_v16, %v1805_v17 }
 0x25d   : > { %v1663_v23 = vpop.permute.xlu1 %1662  ;;  %v1658_v24 = vpop.permute.xlu0 %1657 }
 0x25e   : > { %v1792_v25 = vmul.f32 %v1663_v23, %v1568_v18  ;;  %v1791_v26 = vmul.f32 %v1658_v24, %v1567_v22  ;;  %3778 = vmatprep.mubr.bf16.mxu1 %v1827_v21 }
 0x260   : > { %v1820_v27 = vpack.c.bf16 %v1792_v25, %v1791_v26 }
 0x261   : > { %v1743_v30 = vpop.permute.xlu1 %1742  ;;  %v1738_v31 = vpop.permute.xlu0 %1737 }
 0x262   : > { %v1808_v32 = vmul.f32 %v1743_v30, %v1584_v28  ;;  %v1807_v33 = vmul.f32 %v1738_v31, %v1583_v29  ;;  %3763 = vmatmul.mubr.bf16.gmra.mxu0 %v1820_v27 }
 0x264   : > { %v1828_v34 = vpack.c.bf16 %v1808_v32, %v1807_v33 }
 0x265   : > { %v1378_v35 = vpop.permute.xlu1 %1377  ;;  %v1373_v36 = vpop.permute.xlu0 %1372 }
 0x266   : > { %3779 = vmatmul.mubr.bf16.gmra.mxu1 %v1828_v34  ;;  %v1499_v41 = vmul.f32 %v1378_v35, %v1307_v37  ;;  %v1498_v42 = vmul.f32 %v1373_v36, %v1306_v38  ;;  %v1311_v34 = vld [vmem:[#allocation2 + $0xf0] sm:$0xff]  ;;  %v1310_v35 = vld [vmem:[#allocation2 + $0x60] sm:$0xff] }
 0x268   : > { %v1538_v49 = vadd.f32 %v4625_v51, %v1499_v41  ;;  %v1537_v50 = vadd.f32 %v4625_v51, %v1498_v42  ;;  %v1326_v41 = vld [vmem:[#allocation2 + $0xa0] sm:$0xff] }
 0x269   : > { %v1458_v39 = vpop.permute.xlu1 %1457  ;;  %v1453_v40 = vpop.permute.xlu0 %1452 }
 0x26a   : > { %v1515_v47 = vmul.f32 %v1458_v39, %v1323_v43  ;;  %v1514_v48 = vmul.f32 %v1453_v40, %v1322_v44  ;;  %v1570_v60 = vmax.f32 %v1538_v49, 0.0  ;;  %v1569_v61 = vmax.f32 %v1537_v50, 0.0  ;;  %v1327_v40 = vld [vmem:[#allocation2 + $0xf8] sm:$0xff]  ;;  %v1312_v49 = vld [vmem:[#allocation2 + $0x8] sm:$0xff] }
 0x26c   : > { %v1554_v56 = vadd.f32 %v4625_v51, %v1515_v47  ;;  %v1553_v57 = vadd.f32 %v4625_v51, %v1514_v48  ;;  %v1313_v48 = vld [vmem:[#allocation2 + $0x78] sm:$0xff] }
 0x26d   : > { %v1388_v45 = vpop.permute.xlu1 %1387  ;;  %v1383_v46 = vpop.permute.xlu0 %1382 }
 0x26e   : > { %v1501_v58 = vmul.f32 %v1388_v45, %v1309_v52  ;;  %v1500_v59 = vmul.f32 %v1383_v46, %v1308_v53  ;;  %v1586_v5 = vmax.f32 %v1554_v56, 0.0  ;;  %v1585_v6 = vmax.f32 %v1553_v57, 0.0 }
 0x270   : > { %v1540_v4 = vadd.f32 %v4625_v51, %v1501_v58  ;;  %v1539_v7 = vadd.f32 %v4625_v51, %v1500_v59  ;;  %v1329_v59 = vld [vmem:[#allocation2 + $0x98] sm:$0xff] }
 0x271   : > { %v1468_v54 = vpop.permute.xlu1 %1467  ;;  %v1463_v55 = vpop.permute.xlu0 %1462 }
 0x272   : > { %v1517_v8 = vmul.f32 %v1468_v54, %v1325_v62  ;;  %v1516_v9 = vmul.f32 %v1463_v55, %v1324_v63  ;;  %v1572_v15 = vmax.f32 %v1540_v4, 0.0  ;;  %v1571_v19 = vmax.f32 %v1539_v7, 0.0 }
 0x274   : > { %v1556_v16 = vadd.f32 %v4625_v51, %v1517_v8  ;;  %v1555_v17 = vadd.f32 %v4625_v51, %v1516_v9 }
 0x275   : > { %v1673_v0 = vpop.permute.xlu1 %1672  ;;  %v1668_v1 = vpop.permute.xlu0 %1667 }
 0x276   : > { %v1794_v2 = vmul.f32 %v1673_v0, %v1570_v60  ;;  %v1793_v3 = vmul.f32 %v1668_v1, %v1569_v61  ;;  %v1588_v25 = vmax.f32 %v1556_v16, 0.0  ;;  %v1587_v26 = vmax.f32 %v1555_v17, 0.0  ;;  %v1328_v60 = vld [vmem:[#allocation2 + $0x20] sm:$0xff] }
 0x278   : > { %v1821_v10 = vpack.c.bf16 %v1794_v2, %v1793_v3 }
 0x279   : > { %v1753_v11 = vpop.permute.xlu1 %1752  ;;  %v1748_v12 = vpop.permute.xlu0 %1747 }
 0x27a   : > { %v1810_v13 = vmul.f32 %v1753_v11, %v1586_v5  ;;  %v1809_v14 = vmul.f32 %v1748_v12, %v1585_v6  ;;  %3766 = vmatprep.mubr.bf16.mxu0 %v1821_v10 }
 0x27c   : > { %v1829_v18 = vpack.c.bf16 %v1810_v13, %v1809_v14 }
 0x27d   : > { %v1683_v20 = vpop.permute.xlu1 %1682  ;;  %v1678_v21 = vpop.permute.xlu0 %1677 }
 0x27e   : > { %v1796_v22 = vmul.f32 %v1683_v20, %v1572_v15  ;;  %v1795_v23 = vmul.f32 %v1678_v21, %v1571_v19  ;;  %3782 = vmatprep.mubr.bf16.mxu1 %v1829_v18 }
 0x280   : > { %v1822_v24 = vpack.c.bf16 %v1796_v22, %v1795_v23 }
 0x281   : > { %v1763_v27 = vpop.permute.xlu1 %1762  ;;  %v1758_v28 = vpop.permute.xlu0 %1757 }
 0x282   : > { %v1812_v29 = vmul.f32 %v1763_v27, %v1588_v25  ;;  %v1811_v30 = vmul.f32 %v1758_v28, %v1587_v26  ;;  %3767 = vmatmul.mubr.bf16.gmra.mxu0 %v1822_v24 }
 0x284   : > { %v1830_v31 = vpack.c.bf16 %v1812_v29, %v1811_v30 }
 0x285   : > { %v1398_v32 = vpop.permute.xlu1 %1397  ;;  %v1393_v33 = vpop.permute.xlu0 %1392 }
 0x286   : > { %3783 = vmatmul.mubr.bf16.gmra.mxu1 %v1830_v31  ;;  %v1503_v38 = vmul.f32 %v1398_v32, %v1311_v34  ;;  %v1502_v39 = vmul.f32 %v1393_v33, %v1310_v35 }
 0x288   : > { %v1542_v46 = vadd.f32 %v4625_v51, %v1503_v38  ;;  %v1541_v47 = vadd.f32 %v4625_v51, %v1502_v39 }
 0x289   : > { %v1478_v36 = vpop.permute.xlu1 %1477  ;;  %v1473_v37 = vpop.permute.xlu0 %1472 }
 0x28a   : > { %v1519_v44 = vmul.f32 %v1478_v36, %v1327_v40  ;;  %v1518_v45 = vmul.f32 %v1473_v37, %v1326_v41  ;;  %v1574_v57 = vmax.f32 %v1542_v46, 0.0  ;;  %v1573_v58 = vmax.f32 %v1541_v47, 0.0 }
 0x28c   : > { %v1558_v53 = vadd.f32 %v4625_v51, %v1519_v44  ;;  %v1557_v54 = vadd.f32 %v4625_v51, %v1518_v45 }
 0x28d   : > { %v1408_v42 = vpop.permute.xlu1 %1407  ;;  %v1403_v43 = vpop.permute.xlu0 %1402 }
 0x28e   : > { %v1505_v55 = vmul.f32 %v1408_v42, %v1313_v48  ;;  %v1504_v56 = vmul.f32 %v1403_v43, %v1312_v49  ;;  %v1590_v2 = vmax.f32 %v1558_v53, 0.0  ;;  %v1589_v3 = vmax.f32 %v1557_v54, 0.0 }
 0x290   : > { %v1544_v1 = vadd.f32 %v4625_v51, %v1505_v55  ;;  %v1543_v4 = vadd.f32 %v4625_v51, %v1504_v56 }
 0x291   : > { %v1488_v50 = vpop.permute.xlu1 %1487  ;;  %v1483_v52 = vpop.permute.xlu0 %1482 }
 0x292   : > { %v1521_v5 = vmul.f32 %v1488_v50, %v1329_v59  ;;  %v1520_v6 = vmul.f32 %v1483_v52, %v1328_v60  ;;  %v1576_v12 = vmax.f32 %v1544_v1, 0.0  ;;  %v1575_v16 = vmax.f32 %v1543_v4, 0.0 }
 0x294   : > { %v1560_v13 = vadd.f32 %v4625_v51, %v1521_v5  ;;  %v1559_v14 = vadd.f32 %v4625_v51, %v1520_v6 }
 0x295   : > { %v1693_v61 = vpop.permute.xlu1 %1692  ;;  %v1688_v62 = vpop.permute.xlu0 %1687 }
 0x296   : > { %v1798_v63 = vmul.f32 %v1693_v61, %v1574_v57  ;;  %v1797_v0 = vmul.f32 %v1688_v62, %v1573_v58  ;;  %v1592_v22 = vmax.f32 %v1560_v13, 0.0  ;;  %v1591_v23 = vmax.f32 %v1559_v14, 0.0 }
 0x298   : > { %v1823_v7 = vpack.c.bf16 %v1798_v63, %v1797_v0 }
 0x299   : > { %v1773_v8 = vpop.permute.xlu1 %1772  ;;  %v1768_v9 = vpop.permute.xlu0 %1767 }
 0x29a   : > { %v1814_v10 = vmul.f32 %v1773_v8, %v1590_v2  ;;  %v1813_v11 = vmul.f32 %v1768_v9, %v1589_v3  ;;  %3770 = vmatprep.mubr.bf16.mxu0 %v1823_v7 }
 0x29c   : > { %v1831_v15 = vpack.c.bf16 %v1814_v10, %v1813_v11 }
 0x29d   : > { %v1703_v17 = vpop.permute.xlu1 %1702  ;;  %v1698_v18 = vpop.permute.xlu0 %1697 }
 0x29e   : > { %v1800_v19 = vmul.f32 %v1703_v17, %v1576_v12  ;;  %v1799_v20 = vmul.f32 %v1698_v18, %v1575_v16  ;;  %3786 = vmatprep.mubr.bf16.mxu1 %v1831_v15 }
 0x2a0   : > { %v1824_v21 = vpack.c.bf16 %v1800_v19, %v1799_v20 }
 0x2a1   : > { %v1783_v24 = vpop.permute.xlu1 %1782  ;;  %v1778_v25 = vpop.permute.xlu0 %1777 }
 0x2a2   : > { %v1816_v26 = vmul.f32 %v1783_v24, %v1592_v22  ;;  %v1815_v27 = vmul.f32 %v1778_v25, %v1591_v23  ;;  %3771 = vmatmul.mubr.bf16.gmra.mxu0 %v1824_v21 }
 0x2a4   : > { %v1832_v28 = vpack.c.bf16 %v1816_v26, %v1815_v27 }
 0x2a6   : > { %3787 = vmatmul.mubr.bf16.gmra.mxu1 %v1832_v28 }
 0x302   : > { %v3760_v51 = vpop.f32.mrf.mxu0 }
 0x304   : > { %v1931_v29 = vpop.f32.mrf.mxu0 }
 0x306   : > { %v3761_v30 = vpop.f32.mrf.mxu0  ;;  %v3776_v31 = vpop.f32.mrf.mxu1 }
 0x307   : > { %v3407_v32 = vpack.c.bf16 %v3761_v30, %v3760_v51 }
 0x308   : > { %v1934_v33 = vpop.f32.mrf.mxu0  ;;  %v1995_v34 = vpop.f32.mrf.mxu1 }
 0x309   : > { %3479 = vst [vmem:[%s4661_s26 + $0x8] sm:$0xff] %v3407_v32   ;;  %v3402_v35 = vpack.c.bf16 %v1934_v33, %v1931_v29 }
 0x30a   : > { %v3777_v36 = vpop.f32.mrf.mxu1 }
 0x30b   : > { %3403 = vst [vmem:[%s4661_s26] sm:$0xff] %v3402_v35   ;;  %v3447_v37 = vpack.c.bf16 %v3777_v36, %v3776_v31 }
 0x30c   : > { %v1998_v38 = vpop.f32.mrf.mxu1 }
 0x30d   : > { %3487 = vst [vmem:[%s4661_s26 + $0x48] sm:$0xff] %v3447_v37   ;;  %v3442_v39 = vpack.c.bf16 %v1998_v38, %v1995_v34 }
 0x30f   : > { %3486 = vst [vmem:[%s4661_s26 + $0x40] sm:$0xff] %v3442_v39  }
 0x322   : > { %v3764_v40 = vpop.f32.mrf.mxu0 }
 0x324   : > { %v1947_v41 = vpop.f32.mrf.mxu0 }
 0x326   : > { %v3765_v42 = vpop.f32.mrf.mxu0  ;;  %v3780_v43 = vpop.f32.mrf.mxu1 }
 0x327   : > { %v3417_v44 = vpack.c.bf16 %v3765_v42, %v3764_v40 }
 0x328   : > { %v1950_v45 = vpop.f32.mrf.mxu0  ;;  %v2011_v46 = vpop.f32.mrf.mxu1 }
 0x329   : > { %3481 = vst [vmem:[%s4661_s26 + $0x18] sm:$0xff] %v3417_v44   ;;  %v3412_v47 = vpack.c.bf16 %v1950_v45, %v1947_v41 }
 0x32a   : > { %v3781_v48 = vpop.f32.mrf.mxu1 }
 0x32b   : > { %3480 = vst [vmem:[%s4661_s26 + $0x10] sm:$0xff] %v3412_v47   ;;  %v3457_v49 = vpack.c.bf16 %v3781_v48, %v3780_v43 }
 0x32c   : > { %v2014_v50 = vpop.f32.mrf.mxu1 }
 0x32d   : > { %3489 = vst [vmem:[%s4661_s26 + $0x58] sm:$0xff] %v3457_v49   ;;  %v3452_v52 = vpack.c.bf16 %v2014_v50, %v2011_v46 }
 0x32f   : > { %3488 = vst [vmem:[%s4661_s26 + $0x50] sm:$0xff] %v3452_v52  }
 0x342   : > { %v3768_v53 = vpop.f32.mrf.mxu0 }
 0x344   : > { %v1963_v54 = vpop.f32.mrf.mxu0 }
 0x346   : > { %v3769_v55 = vpop.f32.mrf.mxu0  ;;  %v3784_v56 = vpop.f32.mrf.mxu1 }
 0x347   : > { %v3427_v57 = vpack.c.bf16 %v3769_v55, %v3768_v53 }
 0x348   : > { %v1966_v58 = vpop.f32.mrf.mxu0  ;;  %v2027_v59 = vpop.f32.mrf.mxu1 }
 0x349   : > { %3483 = vst [vmem:[%s4661_s26 + $0x28] sm:$0xff] %v3427_v57   ;;  %v3422_v60 = vpack.c.bf16 %v1966_v58, %v1963_v54 }
 0x34a   : > { %v3785_v61 = vpop.f32.mrf.mxu1 }
 0x34b   : > { %3482 = vst [vmem:[%s4661_s26 + $0x20] sm:$0xff] %v3422_v60   ;;  %v3467_v62 = vpack.c.bf16 %v3785_v61, %v3784_v56 }
 0x34c   : > { %v2030_v63 = vpop.f32.mrf.mxu1 }
 0x34d   : > { %3491 = vst [vmem:[%s4661_s26 + $0x68] sm:$0xff] %v3467_v62   ;;  %v3462_v0 = vpack.c.bf16 %v2030_v63, %v2027_v59 }
 0x34f   : > { %3490 = vst [vmem:[%s4661_s26 + $0x60] sm:$0xff] %v3462_v0  }
 0x362   : > { %v3772_v1 = vpop.f32.mrf.mxu0 }
 0x364   : > { %v1979_v2 = vpop.f32.mrf.mxu0 }
 0x366   : > { %v3773_v3 = vpop.f32.mrf.mxu0  ;;  %v3788_v4 = vpop.f32.mrf.mxu1 }
 0x367   : > { %v3437_v5 = vpack.c.bf16 %v3773_v3, %v3772_v1 }
 0x368   : > { %v1982_v6 = vpop.f32.mrf.mxu0  ;;  %v2043_v7 = vpop.f32.mrf.mxu1 }
 0x369   : > { %3485 = vst [vmem:[%s4661_s26 + $0x38] sm:$0xff] %v3437_v5   ;;  %v3432_v8 = vpack.c.bf16 %v1982_v6, %v1979_v2 }
 0x36a   : > { %v3789_v9 = vpop.f32.mrf.mxu1 }
 0x36b   : > { %3484 = vst [vmem:[%s4661_s26 + $0x30] sm:$0xff] %v3432_v8   ;;  %v3477_v10 = vpack.c.bf16 %v3789_v9, %v3788_v4 }
 0x36c   : > { %v2046_v11 = vpop.f32.mrf.mxu1 }
 0x36d   : > { %3493 = vst [vmem:[%s4661_s26 + $0x78] sm:$0xff] %v3477_v10   ;;  %v3472_v12 = vpack.c.bf16 %v2046_v11, %v2043_v7 }
 0x36f   : > { %3492 = vst [vmem:[%s4661_s26 + $0x70] sm:$0xff] %v3472_v12  }
 0x370 PF: > { %p2238_p7 = scmp.eq.s32.totalorder %s4246_s8, 1 }
 0x371   : > { %v2245_v13 = vld [vmem:[%s4461_s20 + $0x10] sm:$0xff] (%p2238_p7)  ;;  %v2243_v14 = vld [vmem:[%s4461_s20] sm:$0xff] (%p2238_p7)  ;;  %v4265_v15 = vmov (%p2238_p7), 0   ;;  %v2246_v16 = vld [vmem:[%s4461_s20 + $0x18] sm:$0xff] (%p2238_p7) }
 0x372   : > { %2242 = sbr.rel (!%p2238_p7) target bundleno = 1261 (0x4ed), region = 69  ;;  %3959 = vset.pattern.permute.xlu1 (%p2238_p7), %v4265_v15  ;;  %3958 = vset.pattern.permute.xlu0 (%p2238_p7), %v4265_v15  ;;  %v2244_v17 = vld [vmem:[%s4461_s20 + $0x8] sm:$0xff] (%p2238_p7)  ;;  %v2247_v19 = vld [vmem:[%s4461_s20 + $0x20] sm:$0xff] (%p2238_p7)  ;;  %v2250_v20 = vld [vmem:[%s4461_s20 + $0x38] sm:$0xff] (%p2238_p7) }
 0x373   : > { %2319 = vperm.xlu1 (%p2238_p7), %3959, %v2245_v13   ;;  %2309 = vperm.xlu0 (%p2238_p7), %3958, %v2243_v14   ;;  %v2248_v18 = vld [vmem:[%s4461_s20 + $0x28] sm:$0xff] (%p2238_p7)  ;;  %v2249_v21 = vld [vmem:[%s4461_s20 + $0x30] sm:$0xff] (%p2238_p7)  ;;  %v2251_v23 = vld [vmem:[%s4461_s20 + $0x40] sm:$0xff] (%p2238_p7) }
 0x374   : > { %v2252_v22 = vld [vmem:[%s4461_s20 + $0x48] sm:$0xff] (%p2238_p7)  ;;  %v2254_v24 = vld [vmem:[%s4461_s20 + $0x58] sm:$0xff] (%p2238_p7)  ;;  %v2253_v25 = vld [vmem:[%s4461_s20 + $0x50] sm:$0xff] (%p2238_p7) }
 0x375   : > { %v2256_v26 = vld [vmem:[%s4461_s20 + $0x68] sm:$0xff] (%p2238_p7)  ;;  %v2255_v27 = vld [vmem:[%s4461_s20 + $0x60] sm:$0xff] (%p2238_p7)  ;;  %v2258_v28 = vld [vmem:[%s4461_s20 + $0x78] sm:$0xff] (%p2238_p7) }
 0x376   : > { %v2257_v51 = vld [vmem:[%s4461_s20 + $0x70] sm:$0xff] (%p2238_p7)  ;;  %v2260_v29 = vld [vmem:[%s4461_s20 + $0x88] sm:$0xff] (%p2238_p7)  ;;  %v2259_v30 = vld [vmem:[%s4461_s20 + $0x80] sm:$0xff] (%p2238_p7) }
 0x377   : > { %2324 = vperm.xlu1 %3959, %v2246_v16   ;;  %2314 = vperm.xlu0 %3958, %v2244_v17   ;;  %v2262_v31 = vld [vmem:[%s4461_s20 + $0x98] sm:$0xff]  ;;  %v2261_v32 = vld [vmem:[%s4461_s20 + $0x90] sm:$0xff]  ;;  %v2264_v33 = vld [vmem:[%s4461_s20 + $0xa8] sm:$0xff] }
 0x378   : > { %v2263_v34 = vld [vmem:[%s4461_s20 + $0xa0] sm:$0xff]  ;;  %v2266_v35 = vld [vmem:[%s4461_s20 + $0xb8] sm:$0xff]  ;;  %v2265_v36 = vld [vmem:[%s4461_s20 + $0xb0] sm:$0xff] }
 0x379   : > { %v2268_v37 = vld [vmem:[%s4461_s20 + $0xc8] sm:$0xff]  ;;  %v2267_v38 = vld [vmem:[%s4461_s20 + $0xc0] sm:$0xff]  ;;  %v2270_v39 = vld [vmem:[%s4461_s20 + $0xd8] sm:$0xff] }
 0x37a   : > { %v2269_v40 = vld [vmem:[%s4461_s20 + $0xd0] sm:$0xff]  ;;  %v2272_v41 = vld [vmem:[%s4461_s20 + $0xe8] sm:$0xff]  ;;  %v2271_v42 = vld [vmem:[%s4461_s20 + $0xe0] sm:$0xff] }
 0x37b   : > { %2334 = vperm.xlu1 %3959, %v2248_v18   ;;  %2329 = vperm.xlu0 %3958, %v2247_v19   ;;  %v2274_v43 = vld [vmem:[%s4461_s20 + $0xf8] sm:$0xff]  ;;  %v2273_v44 = vld [vmem:[%s4461_s20 + $0xf0] sm:$0xff]  ;;  %v4713_v47 = vld [vmem:[%s4456_s23] ss:$0 sm:$0xff] }
 0x37c   : > { %v2277_v45 = vld [vmem:[#allocation2 + $0xd8] sm:$0xff]  ;;  %v2275_v46 = vld [vmem:[#allocation2 + $0xb0] sm:$0xff]  ;;  %v2276_v1 = vld [vmem:[#allocation2] sm:$0xff] }
 0x37d   : > { %v2278_v63 = vld [vmem:[#allocation2 + $0x18] sm:$0xff]  ;;  %v2280_v6 = vld [vmem:[#allocation2 + $0x68] sm:$0xff]  ;;  %v2279_v12 = vld [vmem:[#allocation2 + $0x50] sm:$0xff] }
 0x37e   : > { %v2282_v14 = vld [vmem:[#allocation2 + $0x48] sm:$0xff] }
 0x37f   : > { %2344 = vperm.xlu1 %3959, %v2250_v20   ;;  %2339 = vperm.xlu0 %3958, %v2249_v21   ;;  %v2281_v20 = vld [vmem:[#allocation2 + $0x30] sm:$0xff] }
 0x383   : > { %2354 = vperm.xlu1 %3959, %v2252_v22   ;;  %2349 = vperm.xlu0 %3958, %v2251_v23   ;;  %v2284_v23 = vld [vmem:[#allocation2 + $0x88] sm:$0xff] }
 0x387   : > { %2364 = vperm.xlu1 %3959, %v2254_v24   ;;  %2359 = vperm.xlu0 %3958, %v2253_v25   ;;  %v2283_v24 = vld [vmem:[#allocation2 + $0x80] sm:$0xff] }
 0x38b   : > { %2374 = vperm.xlu1 %3959, %v2256_v26   ;;  %2369 = vperm.xlu0 %3958, %v2255_v27   ;;  %v2286_v27 = vld [vmem:[#allocation2 + $0xb8] sm:$0xff] }
 0x38f   : > { %2384 = vperm.xlu1 %3959, %v2258_v28   ;;  %2379 = vperm.xlu0 %3958, %v2257_v51  }
 0x393   : > { %2394 = vperm.xlu1 %3959, %v2260_v29   ;;  %2389 = vperm.xlu0 %3958, %v2259_v30  }
 0x397   : > { %2404 = vperm.xlu1 %3959, %v2262_v31   ;;  %2399 = vperm.xlu0 %3958, %v2261_v32  }
 0x39b   : > { %2414 = vperm.xlu1 %3959, %v2264_v33   ;;  %2409 = vperm.xlu0 %3958, %v2263_v34   ;;  %v2285_v33 = vld [vmem:[#allocation2 + $0xe8] sm:$0xff] }
 0x39f   : > { %2424 = vperm.xlu1 %3959, %v2266_v35   ;;  %2419 = vperm.xlu0 %3958, %v2265_v36  }
 0x3a3   : > { %2434 = vperm.xlu1 %3959, %v2268_v37   ;;  %2429 = vperm.xlu0 %3958, %v2267_v38  }
 0x3a7   : > { %2444 = vperm.xlu1 %3959, %v2270_v39   ;;  %2439 = vperm.xlu0 %3958, %v2269_v40  }
 0x3ab   : > { %2454 = vperm.xlu1 %3959, %v2272_v41   ;;  %2449 = vperm.xlu0 %3958, %v2271_v42   ;;  %v2288_v42 = vld [vmem:[#allocation2 + $0xf0] sm:$0xff] }
 0x3af   : > { %2464 = vperm.xlu1 %3959, %v2274_v43   ;;  %2459 = vperm.xlu0 %3958, %v2273_v44  }
 0x3ee   : > { %v2320_v48 = vpop.permute.xlu1 %2319  ;;  %v2310_v49 = vpop.permute.xlu0 %2309 }
 0x3ef   : > { %v2469_v50 = vmul.f32 %v2320_v48, %v2277_v45  ;;  %v2467_v52 = vmul.f32 %v2310_v49, %v2275_v46  ;;  %v2287_v49 = vld [vmem:[#allocation2 + $0x60] sm:$0xff] }
 0x3f1   : > { %v4716_v53 = vadd.f32 %v4713_v47, %v2469_v50  ;;  %v4719_v54 = vadd.f32 %v4713_v47, %v2467_v52 }
 0x3f2   : > { %v2325_v55 = vpop.permute.xlu1 %2324  ;;  %v2315_v56 = vpop.permute.xlu0 %2314 }
 0x3f3   : > { %v2570_v57 = vand.u32 2147483647, %v4719_v54  ;;  %v2572_v58 = vand.u32 2147483647, %v4716_v53  ;;  %v2470_v4 = vmul.f32 %v2325_v55, %v2278_v63  ;;  %v2468_v5 = vmul.f32 %v2315_v56, %v2276_v1  ;;  %v2290_v56 = vld [vmem:[#allocation2 + $0x78] sm:$0xff]  ;;  %v2289_v1 = vld [vmem:[#allocation2 + $0x8] sm:$0xff] }
 0x3f5   : > { %v2602_v59 = vsub.f32 0.0, %v2570_v57  ;;  %v2604_v0 = vsub.f32 0.0, %v2572_v58  ;;  %v4724_v10 = vadd.f32 %v4713_v47, %v2470_v4  ;;  %v4727_v13 = vadd.f32 %v4713_v47, %v2468_v5 }
 0x3f6   : > { %v2335_v60 = vpop.permute.xlu1 %2334  ;;  %v2330_v61 = vpop.permute.xlu0 %2329  ;;  %v2540_v57 = vmax.f32 %v4716_v53, 0.0 }
 0x3f7   : > { %v2634_v62 = vmul.f32 1.442695, %v2602_v59  ;;  %v2638_v7 = vmul.f32 1.442695, %v2604_v0  ;;  %v2472_v11 = vmul.f32 %v2335_v60, %v2280_v6  ;;  %v2471_v15 = vmul.f32 %v2330_v61, %v2279_v12 }
 0x3f8   : > { %v2573_v18 = vand.u32 2147483647, %v4724_v10  ;;  %v2571_v21 = vand.u32 2147483647, %v4727_v13 }
 0x3f9   : > { %3960 = vpow2.f32 %v2634_v62  ;;  %v4731_v19 = vadd.f32 %v4713_v47, %v2472_v11  ;;  %v4735_v25 = vadd.f32 %v4713_v47, %v2471_v15  ;;  %v2292_v11 = vld [vmem:[#allocation2 + $0x58] sm:$0xff] }
 0x3fa   : > { %v2345_v2 = vpop.permute.xlu1 %2344  ;;  %v2340_v3 = vpop.permute.xlu0 %2339  ;;  %3962 = vpow2.f32 %v2638_v7  ;;  %v2605_v30 = vsub.f32 0.0, %v2573_v18  ;;  %v2603_v35 = vsub.f32 0.0, %v2571_v21  ;;  %v2538_v7 = vmax.f32 %v4719_v54, 0.0  ;;  %v2294_v18 = vld [vmem:[#allocation2 + $0xc8] sm:$0xff] }
 0x3fb   : > { %v2474_v22 = vmul.f32 %v2345_v2, %v2282_v14  ;;  %v2473_v26 = vmul.f32 %v2340_v3, %v2281_v20  ;;  %v2575_v31 = vand.u32 2147483647, %v4731_v19  ;;  %v2574_v39 = vand.u32 2147483647, %v4735_v25 }
 0x3fc   : > { %v2640_v45 = vmul.f32 1.442695, %v2605_v30  ;;  %v2636_v50 = vmul.f32 1.442695, %v2603_v35 }
 0x3fd   : > { %v4739_v36 = vadd.f32 %v4713_v47, %v2474_v22  ;;  %v4743_v40 = vadd.f32 %v4713_v47, %v2473_v26  ;;  %v2607_v46 = vsub.f32 0.0, %v2575_v31  ;;  %v2606_v61 = vsub.f32 0.0, %v2574_v39 }
 0x3fe   : > { %v2355_v8 = vpop.permute.xlu1 %2354  ;;  %v2350_v9 = vpop.permute.xlu0 %2349 }
 0x3ff   : > { %v2476_v32 = vmul.f32 %v2355_v8, %v2284_v23  ;;  %v2475_v37 = vmul.f32 %v2350_v9, %v2283_v24  ;;  %v2577_v52 = vand.u32 2147483647, %v4739_v36  ;;  %v2576_v62 = vand.u32 2147483647, %v4743_v40 }
 0x400   : > { %v2644_v4 = vmul.f32 1.442695, %v2607_v46  ;;  %v2642_v20 = vmul.f32 1.442695, %v2606_v61 }
 0x401   : > { %v4746_v48 = vadd.f32 %v4713_v47, %v2476_v32  ;;  %v4750_v55 = vadd.f32 %v4713_v47, %v2475_v37  ;;  %v2609_v8 = vsub.f32 0.0, %v2577_v52  ;;  %v2608_v21 = vsub.f32 0.0, %v2576_v62 }
 0x402   : > { %v2365_v16 = vpop.permute.xlu1 %2364  ;;  %v2360_v17 = vpop.permute.xlu0 %2359 }
 0x403   : > { %v2478_v38 = vmul.f32 %v2365_v16, %v2286_v27  ;;  %v2477_v41 = vmul.f32 %v2360_v17, %v2285_v33  ;;  %v2579_v5 = vand.u32 2147483647, %v4746_v48  ;;  %v2578_v9 = vand.u32 2147483647, %v4750_v55  ;;  %v2291_v17 = vld [vmem:[#allocation2 + $0x38] sm:$0xff]  ;;  %v2293_v33 = vld [vmem:[#allocation2 + $0x40] sm:$0xff] }
 0x405   : > { %v4754_v58 = vadd.f32 %v4713_v47, %v2478_v38  ;;  %v4758_v63 = vadd.f32 %v4713_v47, %v2477_v41  ;;  %v2611_v27 = vsub.f32 0.0, %v2579_v5  ;;  %v2610_v30 = vsub.f32 0.0, %v2578_v9 }
 0x406   : > { %v2375_v28 = vpop.permute.xlu1 %2374  ;;  %v2370_v51 = vpop.permute.xlu0 %2369  ;;  %v2646_v38 = vmul.f32 1.442695, %v2608_v21  ;;  %v2297_v21 = vld [vmem:[#allocation2 + $0x70] sm:$0xff] }
 0x407   : > { %v3961_v29 = vpop.eup %3960  ;;  %v2480_v59 = vmul.f32 %v2375_v28, %v2288_v42  ;;  %v2479_v0 = vmul.f32 %v2370_v51, %v2287_v49  ;;  %v2581_v14 = vand.u32 2147483647, %v4754_v58  ;;  %v2580_v22 = vand.u32 2147483647, %v4758_v63  ;;  %v2296_v42 = vld [vmem:[#allocation2 + $0x90] sm:$0xff] }
 0x408   : > { %v2698_v34 = vadd.f32 1.0, %v3961_v29  ;;  %v3963_v60 = vpop.eup %3962  ;;  %v2648_v29 = vmul.f32 1.442695, %v2609_v8 }
 0x409   : > { %v2700_v12 = vadd.f32 1.0, %v3963_v60  ;;  %v4765_v15 = vadd.f32 %v4713_v47, %v2480_v59  ;;  %v4769_v23 = vadd.f32 %v4713_v47, %v2479_v0  ;;  %v2612_v39 = vsub.f32 0.0, %v2580_v22 }
 0x40a   : > { %v2385_v43 = vpop.permute.xlu1 %2384  ;;  %v2380_v44 = vpop.permute.xlu0 %2379  ;;  %3964 = vlog2.f32 %v2698_v34  ;;  %v2613_v34 = vsub.f32 0.0, %v2581_v14 }
 0x40b   : > { %3966 = vpow2.f32 %v2640_v45  ;;  %v2482_v6 = vmul.f32 %v2385_v43, %v2290_v56  ;;  %v2481_v16 = vmul.f32 %v2380_v44, %v2289_v1  ;;  %v2583_v35 = vand.u32 2147483647, %v4765_v15 }
 0x40c   : > { %3968 = vpow2.f32 %v2636_v50  ;;  %v2582_v41 = vand.u32 2147483647, %v4769_v23  ;;  %v2652_v45 = vmul.f32 1.442695, %v2611_v27  ;;  %v2650_v56 = vmul.f32 1.442695, %v2610_v30 }
 0x40d   : > { %3970 = vpow2.f32 %v2644_v4  ;;  %v4772_v28 = vadd.f32 %v4713_v47, %v2482_v6  ;;  %v4776_v37 = vadd.f32 %v4713_v47, %v2481_v16  ;;  %v2656_v61 = vmul.f32 1.442695, %v2613_v34 }
 0x40e   : > { %v2395_v2 = vpop.permute.xlu1 %2394  ;;  %v2390_v3 = vpop.permute.xlu0 %2389  ;;  %3972 = vlog2.f32 %v2700_v12  ;;  %v2615_v62 = vsub.f32 0.0, %v2583_v35  ;;  %v2614_v4 = vsub.f32 0.0, %v2582_v41  ;;  %v2298_v12 = vld [vmem:[#allocation2 + $0xc0] sm:$0xff]  ;;  %v2299_v41 = vld [vmem:[#allocation2 + $0xa8] sm:$0xff] }
 0x40f   : > { %v2484_v51 = vmul.f32 %v2395_v2, %v2292_v11  ;;  %v2483_v31 = vmul.f32 %v2390_v3, %v2291_v17  ;;  %3974 = vpow2.f32 %v2642_v20  ;;  %v2585_v46 = vand.u32 2147483647, %v4772_v28  ;;  %v2295_v2 = vld [vmem:[#allocation2 + $0xe0] sm:$0xff] }
 0x410   : > { %3976 = vpow2.f32 %v2648_v29  ;;  %v2584_v0 = vand.u32 2147483647, %v4776_v37  ;;  %v2654_v3 = vmul.f32 1.442695, %v2612_v39  ;;  %v2658_v29 = vmul.f32 1.442695, %v2614_v4 }
 0x411   : > { %v4781_v49 = vadd.f32 %v4713_v47, %v2484_v51  ;;  %v4784_v59 = vadd.f32 %v4713_v47, %v2483_v31  ;;  %3978 = vpow2.f32 %v2646_v38  ;;  %v2617_v9 = vsub.f32 0.0, %v2585_v46  ;;  %v2300_v51 = vld [vmem:[#allocation2 + $0xd0] sm:$0xff] }
 0x412   : > { %v2405_v24 = vpop.permute.xlu1 %2404  ;;  %v2400_v26 = vpop.permute.xlu0 %2399  ;;  %3980 = vpow2.f32 %v2652_v45 }
 0x413   : > { %v2486_v32 = vmul.f32 %v2405_v24, %v2294_v18  ;;  %v2485_v50 = vmul.f32 %v2400_v26, %v2293_v33  ;;  %v2587_v11 = vand.u32 2147483647, %v4781_v49  ;;  %3982 = vpow2.f32 %v2650_v56 }
 0x414   : > { %v2586_v17 = vand.u32 2147483647, %v4784_v59  ;;  %3984 = vpow2.f32 %v2656_v61  ;;  %v2660_v24 = vmul.f32 1.442695, %v2615_v62  ;;  %v2616_v26 = vsub.f32 0.0, %v2584_v0 }
 0x415   : > { %v4787_v60 = vadd.f32 %v4713_v47, %v2486_v32  ;;  %v4791_v5 = vadd.f32 %v4713_v47, %v2485_v50  ;;  %3986 = vpow2.f32 %v2654_v3  ;;  %v2664_v34 = vmul.f32 1.442695, %v2617_v9 }
 0x416   : > { %v2415_v43 = vpop.permute.xlu1 %2414  ;;  %v2410_v44 = vpop.permute.xlu0 %2409  ;;  %v2619_v35 = vsub.f32 0.0, %v2587_v11  ;;  %3988 = vpow2.f32 %v2660_v24  ;;  %v2662_v50 = vmul.f32 1.442695, %v2616_v26 }
 0x417   : > { %v3965_v52 = vpop.eup %3964  ;;  %v2488_v1 = vmul.f32 %v2415_v43, %v2296_v42  ;;  %v2589_v18 = vand.u32 2147483647, %v4787_v60  ;;  %v2487_v20 = vmul.f32 %v2410_v44, %v2295_v2  ;;  %v2588_v30 = vand.u32 2147483647, %v4791_v5 }
 0x418   : > { %v2731_v14 = vmul.f32 0.6931472, %v3965_v52  ;;  %v3967_v16 = vpop.eup %3966  ;;  %v2618_v43 = vsub.f32 0.0, %v2586_v17  ;;  %3990 = vpow2.f32 %v2658_v29  ;;  %v2668_v3 = vmul.f32 1.442695, %v2619_v35 }
 0x419   : > { %v3969_v22 = vpop.eup %3968  ;;  %v4797_v27 = vadd.f32 %v4713_v47, %v2488_v1  ;;  %v2621_v44 = vsub.f32 0.0, %v2589_v18  ;;  %v4803_v45 = vadd.f32 %v4713_v47, %v2487_v20  ;;  %v2620_v54 = vsub.f32 0.0, %v2588_v30 }
 0x41a   : > { %v2425_v6 = vpop.permute.xlu1 %2424  ;;  %v2420_v8 = vpop.permute.xlu0 %2419  ;;  %v2794_v39 = vadd.f32 %v2731_v14, %v2538_v7  ;;  %v2699_v62 = vadd.f32 1.0, %v3969_v22  ;;  %v2701_v2 = vadd.f32 1.0, %v3967_v16  ;;  %3992 = vpow2.f32 %v2664_v34 }
 0x41b   : > { %v2490_v31 = vmul.f32 %v2425_v6, %v2298_v12  ;;  %v2489_v38 = vmul.f32 %v2420_v8, %v2297_v21  ;;  %v3971_v42 = vpop.eup %3970  ;;  %v2591_v52 = vand.u32 2147483647, %v4797_v27  ;;  %v2302_v6 = vld [vmem:[#allocation2 + $0x28] sm:$0xff]  ;;  %v2666_v9 = vmul.f32 1.442695, %v2618_v43  ;;  %v2301_v21 = vld [vmem:[#allocation2 + $0x10] sm:$0xff] }
 0x41c   : > { %2860 = vperm.xlu0 %3958, %v2794_v39   ;;  %v3973_v61 = vpop.eup %3972  ;;  %v2672_v11 = vmul.f32 1.442695, %v2621_v44  ;;  %v2590_v12 = vand.u32 2147483647, %v4803_v45  ;;  %3994 = vpow2.f32 %v2662_v50  ;;  %v2670_v22 = vmul.f32 1.442695, %v2620_v54 }
 0x41d   : > { %v4807_v56 = vadd.f32 %v4713_v47, %v2490_v31  ;;  %v3975_v1 = vpop.eup %3974  ;;  %v4810_v4 = vadd.f32 %v4713_v47, %v2489_v38  ;;  %v2623_v18 = vsub.f32 0.0, %v2591_v52  ;;  %v2735_v16 = vmul.f32 0.6931472, %v3973_v61 }
 0x41e   : > { %v2435_v32 = vpop.permute.xlu1 %2434  ;;  %v2430_v33 = vpop.permute.xlu0 %2429  ;;  %3996 = vlog2.f32 %v2699_v62  ;;  %v2702_v29 = vadd.f32 1.0, %v3975_v1  ;;  %v2703_v50 = vadd.f32 1.0, %v3971_v42 }
 0x41f   : > { %v2492_v46 = vmul.f32 %v2435_v32, %v2300_v51  ;;  %v2491_v7 = vmul.f32 %v2430_v33, %v2299_v41  ;;  %v3977_v17 = vpop.eup %3976  ;;  %v2593_v20 = vand.u32 2147483647, %v4807_v56  ;;  %3998 = vpow2.f32 %v2668_v3  ;;  %v2304_v3 = vld [vmem:[#allocation2 + $0xf8] sm:$0xff] }
 0x420   : > { %v3979_v51 = vpop.eup %3978  ;;  %v2592_v30 = vand.u32 2147483647, %v4810_v4  ;;  %v2796_v31 = vadd.f32 %v2735_v16, %v2540_v57  ;;  %4000 = vpow2.f32 %v2666_v9  ;;  %v2622_v33 = vsub.f32 0.0, %v2590_v12  ;;  %v2303_v57 = vld [vmem:[#allocation2 + $0xa0] sm:$0xff] }
 0x421   : > { %v4814_v14 = vadd.f32 %v4713_v47, %v2492_v46  ;;  %v4818_v24 = vadd.f32 %v4713_v47, %v2491_v7  ;;  %v3981_v32 = vpop.eup %3980  ;;  %4002 = vpow2.f32 %v2672_v11  ;;  %v2676_v41 = vmul.f32 1.442695, %v2623_v18  ;;  %v2305_v18 = vld [vmem:[#allocation2 + $0x20] sm:$0xff] }
 0x422   : > { %v2440_v0 = vpop.permute.xlu0 %2439  ;;  %v2445_v8 = vpop.permute.xlu1 %2444  ;;  %v2625_v43 = vsub.f32 0.0, %v2593_v20  ;;  %2870 = vperm.xlu0 %3958, %v2796_v31   ;;  %4004 = vpow2.f32 %v2670_v22  ;;  %v2704_v61 = vadd.f32 1.0, %v3979_v51  ;;  %v2624_v62 = vsub.f32 0.0, %v2592_v30 }
 0x423   : > { %v2494_v26 = vmul.f32 %v2445_v8, %v2302_v6  ;;  %v2595_v34 = vand.u32 2147483647, %v4814_v14  ;;  %v2493_v35 = vmul.f32 %v2440_v0, %v2301_v21  ;;  %v3983_v39 = vpop.eup %3982  ;;  %v2594_v53 = vand.u32 2147483647, %v4818_v24 }
 0x424   : > { %v3985_v46 = vpop.eup %3984  ;;  %4006 = vlog2.f32 %v2701_v2  ;;  %v2674_v0 = vmul.f32 1.442695, %v2622_v33  ;;  %v2680_v6 = vmul.f32 1.442695, %v2625_v43  ;;  %v2705_v11 = vadd.f32 1.0, %v3977_v17  ;;  %v2306_v33 = vld [vmem:[#allocation2 + $0x98] sm:$0xff] }
 0x425   : > { %v4825_v44 = vadd.f32 %v4713_v47, %v2494_v26  ;;  %v3987_v52 = vpop.eup %3986  ;;  %v4829_v54 = vadd.f32 %v4713_v47, %v2493_v35  ;;  %v2627_v1 = vsub.f32 0.0, %v2595_v34  ;;  %4008 = vlog2.f32 %v2702_v29 }
 0x426   : > { %v2450_v38 = vpop.permute.xlu0 %2449  ;;  %v2455_v7 = vpop.permute.xlu1 %2454  ;;  %4010 = vpow2.f32 %v2676_v41  ;;  %v2626_v12 = vsub.f32 0.0, %v2594_v53  ;;  %v2678_v21 = vmul.f32 1.442695, %v2624_v62  ;;  %v2541_v51 = vmax.f32 %v4724_v10, 0.0 }
 0x427   : > { %v2597_v42 = vand.u32 2147483647, %v4825_v44  ;;  %v2495_v8 = vmul.f32 %v2450_v38, %v2303_v57  ;;  %v3989_v9 = vpop.eup %3988  ;;  %4012 = vlog2.f32 %v2703_v50  ;;  %v2596_v2 = vand.u32 2147483647, %v4829_v54 }
 0x428   : > { %v3991_v16 = vpop.eup %3990  ;;  %v2496_v22 = vmul.f32 %v2455_v7, %v2304_v3  ;;  %4014 = vlog2.f32 %v2704_v61  ;;  %v2706_v29 = vadd.f32 1.0, %v3983_v39  ;;  %v2684_v30 = vmul.f32 1.442695, %v2627_v1 }
 0x429   : > { %v3993_v26 = vpop.eup %3992  ;;  %4016 = vpow2.f32 %v2674_v0  ;;  %v2629_v31 = vsub.f32 0.0, %v2597_v42  ;;  %v4835_v17 = vadd.f32 %v4713_v47, %v2495_v8  ;;  %v2539_v41 = vmax.f32 %v4727_v13, 0.0 }
 0x42a   : > { %v2460_v20 = vpop.permute.xlu0 %2459  ;;  %4018 = vpow2.f32 %v2680_v6  ;;  %v2465_v34 = vpop.permute.xlu1 %2464  ;;  %v2543_v43 = vmax.f32 %v4731_v19, 0.0  ;;  %v2682_v50 = vmul.f32 1.442695, %v2626_v12  ;;  %v2707_v10 = vadd.f32 1.0, %v3981_v32 }
 0x42b   : > { %v2497_v35 = vmul.f32 %v2460_v20, %v2305_v18  ;;  %v3995_v38 = vpop.eup %3994  ;;  %4020 = vlog2.f32 %v2705_v11  ;;  %v2628_v39 = vsub.f32 0.0, %v2596_v2  ;;  %v4840_v57 = vadd.f32 %v4713_v47, %v2496_v22 }
 0x42c   : > { %v3997_v53 = vpop.eup %3996  ;;  %4022 = vpow2.f32 %v2678_v21  ;;  %v2708_v62 = vadd.f32 1.0, %v3987_v52  ;;  %v2498_v0 = vmul.f32 %v2465_v34, %v2306_v33  ;;  %v2688_v3 = vmul.f32 1.442695, %v2629_v31 }
 0x42d   : > { %v3999_v61 = vpop.eup %3998  ;;  %4024 = vpow2.f32 %v2684_v30  ;;  %v2733_v7 = vmul.f32 0.6931472, %v3997_v53  ;;  %v2598_v13 = vand.u32 2147483647, %v4835_v17  ;;  %v4844_v6 = vadd.f32 %v4713_v47, %v2497_v35 }
 0x42e   : > { %v4001_v1 = vpop.eup %4000  ;;  %4026 = vlog2.f32 %v2706_v29  ;;  %v2542_v32 = vmax.f32 %v4735_v25, 0.0  ;;  %v2709_v8 = vadd.f32 1.0, %v3985_v46  ;;  %v2544_v52 = vmax.f32 %v4743_v40, 0.0 }
 0x42f   : > { %v4003_v42 = vpop.eup %4002  ;;  %4028 = vpow2.f32 %v2682_v50  ;;  %v2795_v11 = vadd.f32 %v2733_v7, %v2539_v41  ;;  %v2686_v18 = vmul.f32 1.442695, %v2628_v39  ;;  %v2599_v20 = vand.u32 2147483647, %v4840_v57 }
 0x430   : > { %v4005_v12 = vpop.eup %4004  ;;  %4030 = vlog2.f32 %v2707_v10  ;;  %v2711_v2 = vadd.f32 1.0, %v3989_v9  ;;  %v2710_v22 = vadd.f32 1.0, %v3991_v16  ;;  %v4850_v30 = vadd.f32 %v4713_v47, %v2498_v0 }
 0x431   : > { %v4007_v21 = vpop.eup %4006  ;;  %2865 = vperm.xlu1 %3959, %v2795_v11   ;;  %4032 = vlog2.f32 %v2708_v62  ;;  %v2630_v46 = vsub.f32 0.0, %v2598_v13  ;;  %v2600_v31 = vand.u32 2147483647, %v4844_v6  ;;  %v2713_v40 = vadd.f32 1.0, %v3993_v26 }
 0x432   : > { %v4009_v29 = vpop.eup %4008  ;;  %4034 = vpow2.f32 %v2688_v3  ;;  %v2737_v25 = vmul.f32 0.6931472, %v4007_v21  ;;  %v2712_v34 = vadd.f32 1.0, %v3995_v38  ;;  %v2714_v50 = vadd.f32 1.0, %v4001_v1 }
 0x433   : > { %v4011_v33 = vpop.eup %4010  ;;  %v2739_v35 = vmul.f32 0.6931472, %v4009_v29  ;;  %4036 = vlog2.f32 %v2709_v8  ;;  %v2631_v16 = vsub.f32 0.0, %v2599_v20  ;;  %v2601_v39 = vand.u32 2147483647, %v4850_v30 }
 0x434   : > { %v4013_v41 = vpop.eup %4012  ;;  %4038 = vpow2.f32 %v2686_v18  ;;  %v2797_v9 = vadd.f32 %v2737_v25, %v2541_v51  ;;  %v2690_v7 = vmul.f32 1.442695, %v2630_v46  ;;  %v2632_v3 = vsub.f32 0.0, %v2600_v31 }
 0x435   : > { %v4015_v53 = vpop.eup %4014  ;;  %v2798_v47 = vadd.f32 %v2739_v35, %v2542_v32  ;;  %v2741_v10 = vmul.f32 0.6931472, %v4013_v41  ;;  %4040 = vlog2.f32 %v2710_v22  ;;  %v2715_v38 = vadd.f32 1.0, %v3999_v61 }
 0x436   : > { %v4017_v62 = vpop.eup %4016  ;;  %2875 = vperm.xlu1 %3959, %v2797_v9   ;;  %v2743_v0 = vmul.f32 0.6931472, %v4015_v53  ;;  %4042 = vlog2.f32 %v2711_v2  ;;  %v2716_v13 = vadd.f32 1.0, %v4005_v12  ;;  %v2692_v11 = vmul.f32 1.442695, %v2631_v16 }
 0x437   : > { %v4019_v26 = vpop.eup %4018  ;;  %2880 = vperm.xlu0 %3958, %v2798_v47   ;;  %4044 = vlog2.f32 %v2712_v34  ;;  %v2799_v51 = vadd.f32 %v2741_v10, %v2543_v43  ;;  %v2545_v21 = vmax.f32 %v4739_v36, 0.0  ;;  %v2633_v2 = vsub.f32 0.0, %v2601_v39 }
 0x438   : > { %v4021_v1 = vpop.eup %4020  ;;  %v2800_v32 = vadd.f32 %v2743_v0, %v2544_v52  ;;  %4046 = vlog2.f32 %v2713_v40  ;;  %v2694_v61 = vmul.f32 1.442695, %v2632_v3  ;;  %v2546_v29 = vmax.f32 %v4750_v55, 0.0 }
 0x439   : > { %v4023_v8 = vpop.eup %4022  ;;  %v2745_v18 = vmul.f32 0.6931472, %v4021_v1  ;;  %4048 = vlog2.f32 %v2714_v50  ;;  %v2717_v12 = vadd.f32 1.0, %v4003_v42  ;;  %v2718_v43 = vadd.f32 1.0, %v4017_v62 }
 0x43a   : > { %v4025_v20 = vpop.eup %4024  ;;  %4050 = vpow2.f32 %v2690_v7  ;;  %2885 = vperm.xlu1 %3959, %v2799_v51   ;;  %v2547_v31 = vmax.f32 %v4746_v48, 0.0  ;;  %v2696_v40 = vmul.f32 1.442695, %v2633_v2  ;;  %v2548_v55 = vmax.f32 %v4758_v63, 0.0 }
 0x43b   : > { %v4027_v22 = vpop.eup %4026  ;;  %2890 = vperm.xlu0 %3958, %v2800_v32   ;;  %4052 = vlog2.f32 %v2715_v38  ;;  %v2801_v52 = vadd.f32 %v2745_v18, %v2545_v21  ;;  %v2719_v42 = vadd.f32 1.0, %v4011_v33  ;;  %v2720_v16 = vadd.f32 1.0, %v4023_v8 }
 0x43c   : > { %v4029_v19 = vpop.eup %4028  ;;  %v2747_v25 = vmul.f32 0.6931472, %v4027_v22  ;;  %4054 = vlog2.f32 %v2716_v13  ;;  %v2549_v62 = vmax.f32 %v4754_v58, 0.0  ;;  %v2721_v7 = vadd.f32 1.0, %v4019_v26 }
 0x43d   : > { %v4031_v46 = vpop.eup %4030  ;;  %4056 = vpow2.f32 %v2692_v11  ;;  %v2550_v63 = vmax.f32 %v4769_v23, 0.0  ;;  %v2722_v33 = vadd.f32 1.0, %v4029_v19  ;;  %v2551_v58 = vmax.f32 %v4765_v15, 0.0 }
 0x43e   : > { %v4033_v36 = vpop.eup %4032  ;;  %4058 = vpow2.f32 %v2694_v61  ;;  %2895 = vperm.xlu1 %3959, %v2801_v52   ;;  %v2802_v34 = vadd.f32 %v2747_v25, %v2546_v29  ;;  %v2749_v35 = vmul.f32 0.6931472, %v4031_v46  ;;  %v2552_v26 = vmax.f32 %v4776_v37, 0.0 }
 0x43f   : > { %v4035_v41 = vpop.eup %4034  ;;  %v2751_v50 = vmul.f32 0.6931472, %v4033_v36  ;;  %4060 = vlog2.f32 %v2717_v12  ;;  %v2723_v18 = vadd.f32 1.0, %v4025_v20  ;;  %v2553_v52 = vmax.f32 %v4772_v28, 0.0 }
 0x440   : > { %v4037_v9 = vpop.eup %4036  ;;  %2900 = vperm.xlu0 %3958, %v2802_v34   ;;  %v2803_v53 = vadd.f32 %v2749_v35, %v2547_v31  ;;  %4062 = vlog2.f32 %v2718_v43  ;;  %v2554_v15 = vmax.f32 %v4784_v59, 0.0  ;;  %v2725_v25 = vadd.f32 1.0, %v4035_v41 }
 0x441   : > { %v4039_v47 = vpop.eup %4038  ;;  %v2804_v48 = vadd.f32 %v2751_v50, %v2548_v55  ;;  %v2753_v10 = vmul.f32 0.6931472, %v4037_v9  ;;  %4064 = vpow2.f32 %v2696_v40  ;;  %v2555_v55 = vmax.f32 %v4781_v49, 0.0 }
 0x442   : > { %v4041_v39 = vpop.eup %4040  ;;  %2905 = vperm.xlu1 %3959, %v2803_v53   ;;  %4066 = vlog2.f32 %v2719_v42  ;;  %v2724_v21 = vadd.f32 1.0, %v4039_v47  ;;  %v2556_v42 = vmax.f32 %v4791_v5, 0.0 }
 0x443   : > { %v4043_v0 = vpop.eup %4042  ;;  %v2755_v3 = vmul.f32 0.6931472, %v4041_v39  ;;  %v2805_v1 = vadd.f32 %v2753_v10, %v2549_v62  ;;  %4068 = vlog2.f32 %v2720_v16  ;;  %v2557_v10 = vmax.f32 %v4787_v60, 0.0 }
 0x444   : > { %v4045_v38 = vpop.eup %4044  ;;  %2910 = vperm.xlu0 %3958, %v2804_v48   ;;  %v2757_v13 = vmul.f32 0.6931472, %v4043_v0  ;;  %4070 = vlog2.f32 %v2721_v7  ;;  %v2558_v39 = vmax.f32 %v4803_v45, 0.0 }
 0x445   : > { %v4047_v51 = vpop.eup %4046  ;;  %v2806_v32 = vadd.f32 %v2755_v3, %v2550_v63  ;;  %v2759_v8 = vmul.f32 0.6931472, %v4045_v38  ;;  %4072 = vlog2.f32 %v2722_v33  ;;  %v2559_v3 = vmax.f32 %v4797_v27, 0.0 }
 0x446   : > { %v4049_v11 = vpop.eup %4048  ;;  %2915 = vperm.xlu1 %3959, %v2805_v1   ;;  %v2807_v61 = vadd.f32 %v2757_v13, %v2551_v58  ;;  %v2761_v29 = vmul.f32 0.6931472, %v4047_v51  ;;  %4074 = vlog2.f32 %v2723_v18  ;;  %v2560_v38 = vmax.f32 %v4810_v4, 0.0 }
 0x447   : > { %v4051_v23 = vpop.eup %4050  ;;  %v2808_v22 = vadd.f32 %v2759_v8, %v2552_v26  ;;  %v2763_v12 = vmul.f32 0.6931472, %v4049_v11  ;;  %4076 = vlog2.f32 %v2724_v21  ;;  %v2561_v8 = vmax.f32 %v4807_v56, 0.0 }
 0x448   : > { %v4053_v2 = vpop.eup %4052  ;;  %2920 = vperm.xlu0 %3958, %v2806_v32   ;;  %v2726_v20 = vadd.f32 1.0, %v4051_v23  ;;  %v2809_v31 = vadd.f32 %v2761_v29, %v2553_v52  ;;  %4078 = vlog2.f32 %v2725_v25  ;;  %v2562_v11 = vmax.f32 %v4818_v24, 0.0 }
 0x449   : > { %v4055_v19 = vpop.eup %4054  ;;  %v2810_v36 = vadd.f32 %v2763_v12, %v2554_v15  ;;  %v2765_v40 = vmul.f32 0.6931472, %v4053_v2  ;;  %v2563_v21 = vmax.f32 %v4814_v14, 0.0  ;;  %v2564_v2 = vmax.f32 %v4829_v54, 0.0 }
 0x44a   : > { %v4057_v43 = vpop.eup %4056  ;;  %2925 = vperm.xlu1 %3959, %v2807_v61   ;;  %v2767_v34 = vmul.f32 0.6931472, %v4055_v19  ;;  %4080 = vlog2.f32 %v2726_v20  ;;  %v2565_v19 = vmax.f32 %v4825_v44, 0.0  ;;  %v2568_v20 = vmax.f32 %v4844_v6, 0.0  ;;  %v2828_v6 = vld [vmem:[%s4451_s18 + $0x10] sm:$0xff] }
 0x44b   : > { %v4059_v37 = vpop.eup %4058  ;;  %v2727_v28 = vadd.f32 1.0, %v4057_v43  ;;  %v2811_v9 = vadd.f32 %v2765_v40, %v2555_v55  ;;  %v2566_v43 = vmax.f32 %v4835_v17, 0.0 }
 0x44c   : > { %v4061_v46 = vpop.eup %4060  ;;  %2930 = vperm.xlu0 %3958, %v2808_v22   ;;  %v2728_v41 = vadd.f32 1.0, %v4059_v37  ;;  %v2812_v16 = vadd.f32 %v2767_v34, %v2556_v42  ;;  %v2567_v37 = vmax.f32 %v4840_v57, 0.0  ;;  %v2826_v57 = vld [vmem:[%s4451_s18] sm:$0xff] }
 0x44d   : > { %v4063_v35 = vpop.eup %4062  ;;  %v2769_v53 = vmul.f32 0.6931472, %v4061_v46  ;;  %4082 = vlog2.f32 %v2727_v28 }
 0x44e   : > { %2935 = vperm.xlu1 %3959, %v2809_v31   ;;  %v4065_v59 = vpop.eup %4064  ;;  %v2771_v47 = vmul.f32 0.6931472, %v4063_v35  ;;  %4084 = vlog2.f32 %v2728_v41  ;;  %v2569_v31 = vmax.f32 %v4850_v30, 0.0  ;;  %v2827_v30 = vld [vmem:[%s4451_s18 + $0x8] sm:$0xff]  ;;  %v2830_v41 = vld [vmem:[%s4451_s18 + $0x20] sm:$0xff] }
 0x44f   : > { %v4067_v50 = vpop.eup %4066  ;;  %v2729_v5 = vadd.f32 1.0, %v4065_v59  ;;  %v2813_v7 = vadd.f32 %v2769_v53, %v2557_v10  ;;  %v2829_v59 = vld [vmem:[%s4451_s18 + $0x18] sm:$0xff] }
 0x450   : > { %2940 = vperm.xlu0 %3958, %v2810_v36   ;;  %v4069_v48 = vpop.eup %4068  ;;  %v2814_v0 = vadd.f32 %v2771_v47, %v2558_v39  ;;  %v2773_v63 = vmul.f32 0.6931472, %v4067_v50  ;;  %v2831_v47 = vld [vmem:[%s4451_s18 + $0x28] sm:$0xff] }
 0x451   : > { %v4071_v49 = vpop.eup %4070  ;;  %v2775_v33 = vmul.f32 0.6931472, %v4069_v48  ;;  %4086 = vlog2.f32 %v2729_v5  ;;  %v2832_v48 = vld [vmem:[%s4451_s18 + $0x30] sm:$0xff] }
 0x452   : > { %2945 = vperm.xlu1 %3959, %v2811_v9   ;;  %v4073_v62 = vpop.eup %4072  ;;  %v2815_v45 = vadd.f32 %v2773_v63, %v2559_v3  ;;  %v2777_v51 = vmul.f32 0.6931472, %v4071_v49  ;;  %v2835_v3 = vld [vmem:[%s4451_s18 + $0x48] sm:$0xff] }
 0x453   : > { %v4075_v1 = vpop.eup %4074  ;;  %v2816_v13 = vadd.f32 %v2775_v33, %v2560_v38  ;;  %v2779_v32 = vmul.f32 0.6931472, %v4073_v62  ;;  %v2833_v62 = vld [vmem:[%s4451_s18 + $0x38] sm:$0xff] }
 0x454   : > { %2950 = vperm.xlu0 %3958, %v2812_v16   ;;  %v4077_v60 = vpop.eup %4076  ;;  %v2817_v27 = vadd.f32 %v2777_v51, %v2561_v8  ;;  %v2781_v4 = vmul.f32 0.6931472, %v4075_v1  ;;  %v2837_v51 = vld [vmem:[%s4451_s18 + $0x58] sm:$0xff] }
 0x455   : > { %v4079_v58 = vpop.eup %4078  ;;  %v2818_v18 = vadd.f32 %v2779_v32, %v2562_v11  ;;  %v2783_v23 = vmul.f32 0.6931472, %v4077_v60  ;;  %v2836_v60 = vld [vmem:[%s4451_s18 + $0x50] sm:$0xff]  ;;  %v2838_v11 = vld [vmem:[%s4451_s18 + $0x60] sm:$0xff] }
 0x456   : > { %2955 = vperm.xlu1 %3959, %v2813_v7   ;;  %v2819_v29 = vadd.f32 %v2781_v4, %v2563_v21  ;;  %v2785_v12 = vmul.f32 0.6931472, %v4079_v58 }
 0x457   : > { %v4081_v26 = vpop.eup %4080  ;;  %v2820_v56 = vadd.f32 %v2783_v23, %v2564_v2  ;;  %v2840_v23 = vld [vmem:[%s4451_s18 + $0x70] sm:$0xff] }
 0x458   : > { %2960 = vperm.xlu0 %3958, %v2814_v0   ;;  %v2787_v24 = vmul.f32 0.6931472, %v4081_v26  ;;  %v2821_v15 = vadd.f32 %v2785_v12, %v2565_v19  ;;  %v2834_v0 = vld [vmem:[%s4451_s18 + $0x40] sm:$0xff]  ;;  %v2843_v19 = vld [vmem:[%s4451_s18 + $0x88] sm:$0xff] }
 0x45a   : > { %2965 = vperm.xlu1 %3959, %v2815_v45   ;;  %v4083_v61 = vpop.eup %4082  ;;  %v2822_v14 = vadd.f32 %v2787_v24, %v2566_v43 }
 0x45b   : > { %v4085_v22 = vpop.eup %4084  ;;  %v2789_v25 = vmul.f32 0.6931472, %v4083_v61  ;;  %v2841_v61 = vld [vmem:[%s4451_s18 + $0x78] sm:$0xff] }
 0x45c   : > { %2970 = vperm.xlu0 %3958, %v2816_v13   ;;  %v2791_v54 = vmul.f32 0.6931472, %v4085_v22 }
 0x45d   : > { %v2823_v44 = vadd.f32 %v2789_v25, %v2567_v37 }
 0x45e   : > { %2975 = vperm.xlu1 %3959, %v2817_v27   ;;  %v4087_v52 = vpop.eup %4086  ;;  %v2824_v17 = vadd.f32 %v2791_v54, %v2568_v20  ;;  %v2839_v27 = vld [vmem:[%s4451_s18 + $0x68] sm:$0xff]  ;;  %v2845_v54 = vld [vmem:[%s4451_s18 + $0x98] sm:$0xff] }
 0x45f   : > { %v2793_v46 = vmul.f32 0.6931472, %v4087_v52 }
 0x460   : > { %2980 = vperm.xlu0 %3958, %v2818_v18  }
 0x461   : > { %v2825_v36 = vadd.f32 %v2793_v46, %v2569_v31  ;;  %v2847_v31 = vld [vmem:[%s4451_s18 + $0xa8] sm:$0xff] }
 0x462   : > { %2985 = vperm.xlu1 %3959, %v2819_v29  }
 0x464   : > { %2990 = vperm.xlu0 %3958, %v2820_v56   ;;  %v2842_v56 = vld [vmem:[%s4451_s18 + $0x80] sm:$0xff] }
 0x466   : > { %2995 = vperm.xlu1 %3959, %v2821_v15   ;;  %v2844_v15 = vld [vmem:[%s4451_s18 + $0x90] sm:$0xff] }
 0x468   : > { %3000 = vperm.xlu0 %3958, %v2822_v14  }
 0x46a   : > { %3005 = vperm.xlu1 %3959, %v2823_v44   ;;  %v2846_v44 = vld [vmem:[%s4451_s18 + $0xa0] sm:$0xff] }
 0x46c   : > { %3010 = vperm.xlu0 %3958, %v2824_v17  }
 0x46e   : > { %3015 = vperm.xlu1 %3959, %v2825_v36  }
 0x497   : > { %v2861_v40 = vpop.permute.xlu0 %2860 }
 0x498   : > { %v3018_v34 = vmul.f32 %v2861_v40, %v2826_v57  ;;  %v2848_v40 = vld [vmem:[%s4451_s18 + $0xb0] sm:$0xff] }
 0x49a   : > { %3050 = vst [vmem:[%s4468_s28] sm:$0xff] %v3018_v34 }
 0x49d   : > { %v2871_v35 = vpop.permute.xlu0 %2870 }
 0x49e   : > { %v3020_v55 = vmul.f32 %v2871_v35, %v2828_v6  ;;  %v2849_v35 = vld [vmem:[%s4451_s18 + $0xb8] sm:$0xff] }
 0x4a0   : > { %3052 = vst [vmem:[%s4468_s28 + $0x10] sm:$0xff] %v3020_v55 }
 0x4ac   : > { %v2866_v42 = vpop.permute.xlu1 %2865 }
 0x4ad   : > { %v3019_v28 = vmul.f32 %v2866_v42, %v2827_v30  ;;  %v2850_v42 = vld [vmem:[%s4451_s18 + $0xc0] sm:$0xff] }
 0x4af   : > { %3051 = vst [vmem:[%s4468_s28 + $0x8] sm:$0xff] %v3019_v28 }
 0x4b1   : > { %v2876_v50 = vpop.permute.xlu1 %2875 }
 0x4b2   : > { %v3021_v9 = vmul.f32 %v2876_v50, %v2829_v59  ;;  %v2881_v16 = vpop.permute.xlu0 %2880 }
 0x4b3   : > { %v3022_v53 = vmul.f32 %v2881_v16, %v2830_v41  ;;  %v2851_v41 = vld [vmem:[%s4451_s18 + $0xc8] sm:$0xff]  ;;  %v2852_v16 = vld [vmem:[%s4451_s18 + $0xd0] sm:$0xff] }
 0x4b4   : > { %3053 = vst [vmem:[%s4468_s28 + $0x18] sm:$0xff] %v3021_v9 }
 0x4b5   : > { %3054 = vst [vmem:[%s4468_s28 + $0x20] sm:$0xff] %v3022_v53  ;;  %v2886_v10 = vpop.permute.xlu1 %2885 }
 0x4b6   : > { %v3023_v39 = vmul.f32 %v2886_v10, %v2831_v47  ;;  %v2891_v49 = vpop.permute.xlu0 %2890 }
 0x4b7   : > { %v3024_v5 = vmul.f32 %v2891_v49, %v2832_v48  ;;  %v2853_v48 = vld [vmem:[%s4451_s18 + $0xd8] sm:$0xff]  ;;  %v2854_v49 = vld [vmem:[%s4451_s18 + $0xe0] sm:$0xff] }
 0x4b8   : > { %3055 = vst [vmem:[%s4468_s28 + $0x28] sm:$0xff] %v3023_v39 }
 0x4b9   : > { %3056 = vst [vmem:[%s4468_s28 + $0x30] sm:$0xff] %v3024_v5  ;;  %v2896_v7 = vpop.permute.xlu1 %2895 }
 0x4ba   : > { %v3025_v63 = vmul.f32 %v2896_v7, %v2833_v62  ;;  %v2855_v7 = vld [vmem:[%s4451_s18 + $0xe8] sm:$0xff] }
 0x4bb   : > { %v2901_v33 = vpop.permute.xlu0 %2900 }
 0x4bc   : > { %3057 = vst [vmem:[%s4468_s28 + $0x38] sm:$0xff] %v3025_v63  ;;  %v3026_v38 = vmul.f32 %v2901_v33, %v2834_v0  ;;  %v2856_v33 = vld [vmem:[%s4451_s18 + $0xf0] sm:$0xff] }
 0x4bd   : > { %v2906_v1 = vpop.permute.xlu1 %2905 }
 0x4be   : > { %3058 = vst [vmem:[%s4468_s28 + $0x40] sm:$0xff] %v3026_v38  ;;  %v3027_v45 = vmul.f32 %v2906_v1, %v2835_v3  ;;  %v2857_v1 = vld [vmem:[%s4451_s18 + $0xf8] sm:$0xff] }
 0x4bf   : > { %v2911_v13 = vpop.permute.xlu0 %2910 }
 0x4c0   : > { %3059 = vst [vmem:[%s4468_s28 + $0x48] sm:$0xff] %v3027_v45  ;;  %v3028_v32 = vmul.f32 %v2911_v13, %v2836_v60 }
 0x4c1   : > { %v2916_v8 = vpop.permute.xlu1 %2915 }
 0x4c2   : > { %3060 = vst [vmem:[%s4468_s28 + $0x50] sm:$0xff] %v3028_v32  ;;  %v3029_v58 = vmul.f32 %v2916_v8, %v2837_v51 }
 0x4c3   : > { %v2921_v26 = vpop.permute.xlu0 %2920 }
 0x4c4   : > { %3061 = vst [vmem:[%s4468_s28 + $0x58] sm:$0xff] %v3029_v58  ;;  %v3030_v18 = vmul.f32 %v2921_v26, %v2838_v11 }
 0x4c5   : > { %v2926_v4 = vpop.permute.xlu1 %2925 }
 0x4c6   : > { %3062 = vst [vmem:[%s4468_s28 + $0x60] sm:$0xff] %v3030_v18  ;;  %v3031_v21 = vmul.f32 %v2926_v4, %v2839_v27 }
 0x4c7   : > { %v2931_v2 = vpop.permute.xlu0 %2930 }
 0x4c8   : > { %3063 = vst [vmem:[%s4468_s28 + $0x68] sm:$0xff] %v3031_v21  ;;  %v3032_v22 = vmul.f32 %v2931_v2, %v2840_v23 }
 0x4c9   : > { %v2936_v29 = vpop.permute.xlu1 %2935 }
 0x4ca   : > { %3064 = vst [vmem:[%s4468_s28 + $0x70] sm:$0xff] %v3032_v22  ;;  %v3033_v12 = vmul.f32 %v2936_v29, %v2841_v61 }
 0x4cb   : > { %v2941_v24 = vpop.permute.xlu0 %2940 }
 0x4cc   : > { %3065 = vst [vmem:[%s4468_s28 + $0x78] sm:$0xff] %v3033_v12  ;;  %v3034_v43 = vmul.f32 %v2941_v24, %v2842_v56 }
 0x4cd   : > { %v2946_v52 = vpop.permute.xlu1 %2945 }
 0x4ce   : > { %3066 = vst [vmem:[%s4468_s28 + $0x80] sm:$0xff] %v3034_v43  ;;  %v3035_v14 = vmul.f32 %v2946_v52, %v2843_v19 }
 0x4cf   : > { %v2951_v25 = vpop.permute.xlu0 %2950 }
 0x4d0   : > { %3067 = vst [vmem:[%s4468_s28 + $0x88] sm:$0xff] %v3035_v14  ;;  %v3036_v37 = vmul.f32 %v2951_v25, %v2844_v15 }
 0x4d1   : > { %v2956_v20 = vpop.permute.xlu1 %2955 }
 0x4d2   : > { %3068 = vst [vmem:[%s4468_s28 + $0x90] sm:$0xff] %v3036_v37  ;;  %v3037_v17 = vmul.f32 %v2956_v20, %v2845_v54 }
 0x4d3   : > { %v2961_v46 = vpop.permute.xlu0 %2960 }
 0x4d4   : > { %3069 = vst [vmem:[%s4468_s28 + $0x98] sm:$0xff] %v3037_v17  ;;  %v3038_v36 = vmul.f32 %v2961_v46, %v2846_v44 }
 0x4d5   : > { %v2966_v57 = vpop.permute.xlu1 %2965 }
 0x4d6   : > { %3070 = vst [vmem:[%s4468_s28 + $0xa0] sm:$0xff] %v3038_v36  ;;  %v3039_v34 = vmul.f32 %v2966_v57, %v2847_v31 }
 0x4d7   : > { %v2971_v6 = vpop.permute.xlu0 %2970 }
 0x4d8   : > { %3071 = vst [vmem:[%s4468_s28 + $0xa8] sm:$0xff] %v3039_v34  ;;  %v3040_v55 = vmul.f32 %v2971_v6, %v2848_v40 }
 0x4d9   : > { %v2976_v30 = vpop.permute.xlu1 %2975 }
 0x4da   : > { %3072 = vst [vmem:[%s4468_s28 + $0xb0] sm:$0xff] %v3040_v55  ;;  %v3041_v28 = vmul.f32 %v2976_v30, %v2849_v35 }
 0x4db   : > { %v2981_v59 = vpop.permute.xlu0 %2980 }
 0x4dc   : > { %3073 = vst [vmem:[%s4468_s28 + $0xb8] sm:$0xff] %v3041_v28  ;;  %v3042_v50 = vmul.f32 %v2981_v59, %v2850_v42 }
 0x4dd   : > { %v2986_v9 = vpop.permute.xlu1 %2985 }
 0x4de   : > { %3074 = vst [vmem:[%s4468_s28 + $0xc0] sm:$0xff] %v3042_v50  ;;  %v3043_v53 = vmul.f32 %v2986_v9, %v2851_v41 }
 0x4df   : > { %v2991_v47 = vpop.permute.xlu0 %2990 }
 0x4e0   : > { %3075 = vst [vmem:[%s4468_s28 + $0xc8] sm:$0xff] %v3043_v53  ;;  %v3044_v10 = vmul.f32 %v2991_v47, %v2852_v16 }
 0x4e1   : > { %v2996_v39 = vpop.permute.xlu1 %2995 }
 0x4e2   : > { %3076 = vst [vmem:[%s4468_s28 + $0xd0] sm:$0xff] %v3044_v10  ;;  %v3045_v5 = vmul.f32 %v2996_v39, %v2853_v48 }
 0x4e3   : > { %v3001_v62 = vpop.permute.xlu0 %3000 }
 0x4e4   : > { %3077 = vst [vmem:[%s4468_s28 + $0xd8] sm:$0xff] %v3045_v5  ;;  %v3046_v0 = vmul.f32 %v3001_v62, %v2854_v49 }
 0x4e5   : > { %v3006_v63 = vpop.permute.xlu1 %3005 }
 0x4e6   : > { %3078 = vst [vmem:[%s4468_s28 + $0xe0] sm:$0xff] %v3046_v0  ;;  %v3047_v3 = vmul.f32 %v3006_v63, %v2855_v7 }
 0x4e7   : > { %v3011_v38 = vpop.permute.xlu0 %3010 }
 0x4e8   : > { %3079 = vst [vmem:[%s4468_s28 + $0xe8] sm:$0xff] %v3047_v3  ;;  %v3048_v60 = vmul.f32 %v3011_v38, %v2856_v33 }
 0x4e9   : > { %v3016_v45 = vpop.permute.xlu1 %3015 }
 0x4ea   : > { %3080 = vst [vmem:[%s4468_s28 + $0xf0] sm:$0xff] %v3048_v60  ;;  %v3049_v13 = vmul.f32 %v3016_v45, %v2857_v1 }
 0x4ec   : > { %3081 = vst [vmem:[%s4468_s28 + $0xf8] sm:$0xff] %v3049_v13 }
 0x4ed PF: > { %s3398_s8 = sshll.u32 %s4242_s30, 12  ;;  %s3096_s16 = sshll.u32 %s4468_s28, 4  ;;  %s4952_s16 = int_to_ptr.vmem [resolvable:$true] %s3096_s16 }
 0x4ee   : > { %s4949_s19 = scalar_lea.hbm %s5023_s7, %s3398_s8  ;;  %s5052_s18 = sand.u32 1, %s4222_s25  }
 0x4ef   : > { %s4956_s14 = scalar_lea.sflag [#allocation6], %s5052_s18  ;;  %s4136_s29 = scalar_lea.vmem %s4952_s16, 4096 }
 0x4f0   : > { %p4137_p9 = scmp.ne.s32.totalorder %s4952_s16, %s4136_s29  ;;  %s4266_s30 = smov [#allocation7]  }
 0x4f1   : > { %s4140_s13 = sshll.u32 %s4266_s30, 4  ;;  %s4141_s13 = int_to_ptr.vmem [resolvable:$false] %s4140_s13 }
 0x4f2   : > { %p4138_p10 = pnand %p4137_p9, %p4397_p12  ;;  %s4142_s12 = scalar_lea.vmem %s4141_s13, 8192 }
 0x4f3   : > { %p4143_p13 = scmp.lt.s32.totalorder %s4952_s16, %s4141_s13  ;;  %p4144_p3 = scmp.lt.s32.totalorder %s4142_s12, %s4136_s29 }
 0x4f4   : > { %p4139_p11 = pneg %p4138_p10 }
 0x4f5   : > { %p4145_p0 = por %p4144_p3, %p4143_p13 }
 0x4f7   : > { %p4146_p1 = pnand %p4145_p0, %p4139_p11 }
 0x4f9   : > { %4149 = shalt.err (!%p4146_p1)
}
 0x4fa   : > { %s4150_s28 = scalar_lea.hbm %s4949_s19, 4096  ;;  %s4154_s22 = scalar_lea.hbm %s5023_s7, 8192 }
 0x4fb   : > { %p4151_p5 = scmp.ne.s32.totalorder %s4949_s19, %s4150_s28  ;;  %p4155_p8 = scmp.lt.s32.totalorder %s4949_s19, %s5023_s7 }
 0x4fc   : > { %p4156_p7 = scmp.lt.s32.totalorder %s4154_s22, %s4150_s28 }
 0x4fd   : > { %p4152_p4 = pnand %p4151_p5, %p4397_p12 }
 0x4fe   : > { %p4157_p9 = por %p4156_p7, %p4155_p8 }
 0x4ff   : > { %p4153_p6 = pneg %p4152_p4 }
 0x501   : > { %p4158_p10 = pnand %p4157_p9, %p4153_p6 }
 0x503   : > { %4161 = shalt.err (!%p4158_p10)
}
 0x504   : > { %s4267_s21 = smov 128   ;;  %s4268_s15 = smov 8  }
 0x505   : > { %3808 = dma.vmem_to_hbm [thread:$0]  (%p4397_p12), %s4952_s16, 4096, %s4949_s19, %s4956_s14, %s4267_s21, %s4267_s21, %s4268_s15  }
 0x506 PF: > { %p3819_p11 = scmp.ge.s32.totalorder %s4258_s11, 2  ;;  %s3111_s17 = sand.u32 1, %s4218_s24  }
 0x507   : > { %s3112_s26 = scalar_lea.sflag [#allocation6], %s3111_s17 }
 0x508   : > { %p3815_p13 = pnand %p3819_p11, %p4405_p2 }
 0x50a   : > { %p3816_p3 = pneg %p3815_p13 }
 0x50c   : > { %4213 = dma.done.wait (%p3816_p3), %s3112_s26, 4096  }
 0x50d   : > { %4215 = vsyncadd (%p3816_p3), %s3112_s26, 4294963200  ;;  %s23_s11 = sadd.s32 1, %s4258_s11   ;;  %s5053_s8 = sld [smem:[#allocation16_spill]] }
 0x50e   : > { %p20_p0 = scmp.ge.s32.totalorder %s23_s11, 6   ;;  %s5054_s26 = sld [smem:[#allocation23_spill]] }
 0x50f   : > { %s5055_s27 = sld [smem:[#allocation17_spill]]  ;;  %s5062_s24 = smov %s4222_s25 }
 0x510   : > { %s5056_s28 = sld [smem:[#allocation18_spill]] }
 0x511   : > { %s5057_s29 = sld [smem:[#allocation24_spill]] }
 0x512   : > { %s5058_s30 = sld [smem:[#allocation19_spill]] }
 0x513   : > { %s5059_s23 = sld [smem:[#allocation20_spill]]  ;;  %s5063_s25 = smov %s5053_s8 }
 0x514   : > { %s5060_s9 = sld [smem:[#allocation21_spill]] }
 0x515   : > { %s5061_s10 = sld [smem:[#allocation22_spill]]  ;;  %22 = sbr.rel (!%p20_p0) target bundleno = 13 (0xd), region = 127 }
 0x519   : > { %s5064_s8 = smov %s5059_s23 }
 0x51a   :  { %3117 = vsyncpa [#allocation5], 1 }
 0x51b   :  { %3119 = vsyncpa [#allocation5 + $0x1], 1 }
 0x51c   :  { %3120 = vsyncpa [#allocation6], 1 }
 0x51d   :  { %3122 = vsyncpa [#allocation6 + $0x1], 1 }

</bundles_post_ra>
